<compile_context>
chip_gen: v5e
topology: v5e:2x2
jax: 0.10.0
libtpu: 0.0.40
codegen_flags: <defaults>
</compile_context>

<pallas_src>
import functools

import jax
import jax.numpy as jnp
from jax.experimental import pallas as pl
from jax.experimental.pallas import tpu as pltpu


def cbam_kernel(x_ref, w1_ref, b1_ref, w2t_ref, b2_ref, colmask_ref, rowmask_ref,
                wsp_ref, bsp_ref, o_ref, *, W, c_chunk=8):
    BT, C, HW = x_ref.shape
    Cr = w1_ref.shape[0]

    # ---------------- channel gate: global avg pool + 2-layer MLP + sigmoid --
    avg = jnp.mean(x_ref[...].astype(jnp.float32), axis=2)          # (BT, C), lane-dense

    # Lane-dense FMAs unrolled over Cr (bottleneck dim); avoids (BT,Cr,C) blow-up.
    acc2 = b2_ref[...]                                               # (1, C)
    for r in range(Cr):
        zr = jnp.sum(avg * w1_ref[r:r + 1, :], axis=1, keepdims=True) + b1_ref[r]  # (BT,1)
        zr = jnp.maximum(zr, 0.0)                                    # ReLU
        acc2 = acc2 + zr * w2t_ref[r:r + 1, :]                       # (BT, C)
    cw = 1.0 / (1.0 + jnp.exp(-acc2))                                # sigmoid (exact), (BT, C)
    cwb = cw[:, :, None]                                             # (BT, C, 1)

    # ---------------- spatial gate input (cw fused; xc never materialized) ---
    mx = None
    sm = None
    cc = min(c_chunk, C)
    for c0 in range(0, C, cc):
        xi = x_ref[:, c0:c0 + cc, :].astype(jnp.float32) * cwb[:, c0:c0 + cc, :]
        pmx = jnp.max(xi, axis=1)                                    # (BT, HW)
        psm = jnp.sum(xi, axis=1)                                    # (BT, HW)
        mx = pmx if mx is None else jnp.maximum(mx, pmx)
        sm = psm if sm is None else sm + psm
    mn = sm * (1.0 / C)
    sp = jnp.concatenate([mx, mn], axis=0)                           # (2*BT, HW): [max; mean]

    # ---------------- separable 7x7 conv (2->1, pad 3) on flat H*W lanes -----
    # Column pass: one lane roll + column mask per kx (6 rolls, 7 masks),
    # accumulating 7 per-ky weighted partials (weights are SMEM scalars).
    parts = [None] * 7
    for kx in range(7):
        shift = (3 - kx) % HW
        r = sp if shift == 0 else pltpu.roll(sp, shift=shift, axis=1)
        r = r * colmask_ref[kx:kx + 1, :]                            # zero wrapped columns
        rmax = r[:BT, :]
        rmean = r[BT:, :]
        for ky in range(7):
            t = ky * 7 + kx
            tap = wsp_ref[t] * rmax + wsp_ref[49 + t] * rmean        # (BT, HW)
            parts[ky] = tap if parts[ky] is None else parts[ky] + tap
    # Row pass: one lane roll (multiple of W) + row mask per ky (6 rolls, 7 masks).
    rowed = []
    for ky in range(7):
        shift = ((3 - ky) * W) % HW
        p = parts[ky] if shift == 0 else pltpu.roll(parts[ky], shift=shift, axis=1)
        rowed.append(p * rowmask_ref[ky:ky + 1, :])                  # zero wrapped rows
    acc = (bsp_ref[0]
           + ((rowed[0] + rowed[1]) + (rowed[2] + rowed[3]))
           + ((rowed[4] + rowed[5]) + rowed[6]))
    sw = 1.0 / (1.0 + jnp.exp(-acc))                                 # sigmoid (exact), (BT, HW)

    # ---------------- output: recompute x*cw at store time (streams) ---------
    o_ref[...] = (x_ref[...].astype(jnp.float32) * cwb
                  * sw[:, None, :]).astype(o_ref.dtype)


def cbam_pallas(x, w1, b1, w2, b2, wsp, bsp, *, block_b=8):
    """x: (B, C, H, W).  w1:(Cr,C) b1:(Cr,) w2:(C,Cr) b2:(C,) wsp:(1,2,7,7) bsp:(1,)."""
    B, C, H, W = x.shape
    Cr = w1.shape[0]
    HW = H * W
    # Lane-dense layout assumes HW is a multiple of 128 for full vregs / unmasked
    # stores; other sizes are still correct, just slower (masked partial tiles).

    # Batch tile: largest divisor of B not exceeding block_b -> no pad/unpad HBM
    # passes.  Prefer >= 2 grid steps so v7x can shard across both TensorCores.
    bt = 1
    for d in range(min(block_b, B), 0, -1):
        if B % d == 0:
            bt = d
            break

    xf = x.reshape(B, C, HW)                               # DMA in input dtype
    w1f = w1.astype(jnp.float32)                           # (Cr, C)
    w2t = jnp.transpose(w2).astype(jnp.float32)            # (Cr, C)
    b1f = b1.reshape(Cr).astype(jnp.float32)               # SMEM scalars
    b2f = b2.reshape(1, C).astype(jnp.float32)
    wsp_flat = wsp.reshape(-1).astype(jnp.float32)         # (98,), OIHW tap order
    bsp_flat = bsp.reshape(-1).astype(jnp.float32)         # (1,)

    # Separable zero-padding masks in flat (H*W,) layout: colmask[k, y*W+x] is 1
    # iff column x+k-3 is in range; rowmask[k, y*W+x] iff row y+k-3 is in range.
    cx = jnp.arange(W)
    ry = jnp.arange(H)
    colmask = jnp.stack(
        [jnp.tile(((cx + (k - 3) >= 0) & (cx + (k - 3) < W)).astype(jnp.float32), H)
         for k in range(7)], axis=0)                       # (7, HW)
    rowmask = jnp.stack(
        [jnp.repeat(((ry + (k - 3) >= 0) & (ry + (k - 3) < H)).astype(jnp.float32), W)
         for k in range(7)], axis=0)                       # (7, HW)

    kernel = functools.partial(cbam_kernel, W=W)

    grid_spec = pltpu.PrefetchScalarGridSpec(
        num_scalar_prefetch=0,
        grid=(B // bt,),
        in_specs=[
            pl.BlockSpec((bt, C, HW), lambda i: (i, 0, 0)),    # x (lane-dense)
            pl.BlockSpec((Cr, C), lambda i: (0, 0)),           # w1
            pl.BlockSpec(memory_space=pltpu.SMEM),             # b1 (scalars)
            pl.BlockSpec((Cr, C), lambda i: (0, 0)),           # w2^T
            pl.BlockSpec((1, C), lambda i: (0, 0)),            # b2
            pl.BlockSpec((7, HW), lambda i: (0, 0)),           # column masks
            pl.BlockSpec((7, HW), lambda i: (0, 0)),           # row masks
            pl.BlockSpec(memory_space=pltpu.SMEM),             # wsp (flat scalars)
            pl.BlockSpec(memory_space=pltpu.SMEM),             # bsp
        ],
        out_specs=pl.BlockSpec((bt, C, HW), lambda i: (i, 0, 0)),
    )

    out = pl.pallas_call(
        kernel,
        out_shape=jax.ShapeDtypeStruct((B, C, HW), x.dtype),   # output in input dtype
        grid_spec=grid_spec,
        compiler_params=pltpu.CompilerParams(
            dimension_semantics=("parallel",)),
    )(xf, w1f, b1f, w2t, b2f, colmask, rowmask, wsp_flat, bsp_flat)

    return out.reshape(B, C, H, W)


def cbam_ref(x, w1, b1, w2, b2, wsp, bsp):
    """Pure-JAX reference matching the PyTorch forward."""
    avg = jnp.mean(x, axis=(2, 3), keepdims=True)                        # (B,C,1,1)
    z = jnp.maximum(
        jnp.einsum('oc,bcxy->boxy', w1, avg) + b1[None, :, None, None], 0.0)
    cw = jax.nn.sigmoid(
        jnp.einsum('oc,bcxy->boxy', w2, z) + b2[None, :, None, None])
    xc = x * cw
    mx = jnp.max(xc, axis=1, keepdims=True)
    mn = jnp.mean(xc, axis=1, keepdims=True)
    sp = jnp.concatenate([mx, mn], axis=1)                               # (B,2,H,W)
    conv = jax.lax.conv_general_dilated(
        sp, wsp, window_strides=(1, 1), padding=[(3, 3), (3, 3)],
        dimension_numbers=('NCHW', 'OIHW', 'NCHW'))
    sw = jax.nn.sigmoid(conv + bsp[None, :, None, None])
    return xc * sw


if __name__ == "__main__":
    B, C, H, W = 16, 32, 16, 16          # B divisible by the batch tile -> no padding
    reduction = 16
    Cr = C // reduction

    key = jax.random.PRNGKey(0)
    ks = jax.random.split(key, 7)
    x = jax.random.normal(ks[0], (B, C, H, W), jnp.float32)
    w1 = jax.random.normal(ks[1], (Cr, C), jnp.float32) * 0.2     # conv1x1 C->Cr
    b1 = jax.random.normal(ks[2], (Cr,), jnp.float32) * 0.1
    w2 = jax.random.normal(ks[3], (C, Cr), jnp.float32) * 0.2     # conv1x1 Cr->C
    b2 = jax.random.normal(ks[4], (C,), jnp.float32) * 0.1
    wsp = jax.random.normal(ks[5], (1, 2, 7, 7), jnp.float32) * 0.1  # 7x7 conv 2->1
    bsp = jax.random.normal(ks[6], (1,), jnp.float32) * 0.1

    out = jax.block_until_ready(cbam_pallas(x, w1, b1, w2, b2, wsp, bsp))
    ref = cbam_ref(x, w1, b1, w2, b2, wsp, bsp)
    assert out.shape == (B, C, H, W)
    assert bool(jnp.allclose(out, ref, rtol=1e-4, atol=1e-4)), "mismatch vs reference"

    print("KERNEL_OK")
</pallas_src>

<mosaic_0001>
module attributes {stable_mosaic.version = 11 : i64} {
  func.func @cbam_kernel(%arg0: i32, %arg1: memref<8x32x256xf32, #tpu.memory_space<vmem>>, %arg2: memref<2x32xf32, #tpu.memory_space<vmem>>, %arg3: memref<2xf32, #tpu.memory_space<smem>>, %arg4: memref<2x32xf32, #tpu.memory_space<vmem>>, %arg5: memref<1x32xf32, #tpu.memory_space<vmem>>, %arg6: memref<7x256xf32, #tpu.memory_space<vmem>>, %arg7: memref<7x256xf32, #tpu.memory_space<vmem>>, %arg8: memref<98xf32, #tpu.memory_space<smem>>, %arg9: memref<1xf32, #tpu.memory_space<smem>>, %arg10: memref<8x32x256xf32, #tpu.memory_space<vmem>>) attributes {dimension_semantics = [#tpu.dimension_semantics<parallel>], iteration_bounds = array<i64: 2>, scalar_prefetch = 0 : i64, scratch_operands = 0 : i64, tpu.core_type = #tpu.core_type<tc>, window_params = [{transform_indices = @transform_0, window_bounds = array<i64: 8, 32, 256>}, {pipeline_mode = #tpu.pipeline_mode<synchronous>, transform_indices = @transform_1, window_bounds = array<i64: 2, 32>}, {transform_indices = @transform_2, window_bounds = array<i64: 2>}, {pipeline_mode = #tpu.pipeline_mode<synchronous>, transform_indices = @transform_3, window_bounds = array<i64: 2, 32>}, {pipeline_mode = #tpu.pipeline_mode<synchronous>, transform_indices = @transform_4, window_bounds = array<i64: 1, 32>}, {pipeline_mode = #tpu.pipeline_mode<synchronous>, transform_indices = @transform_5, window_bounds = array<i64: 7, 256>}, {pipeline_mode = #tpu.pipeline_mode<synchronous>, transform_indices = @transform_6, window_bounds = array<i64: 7, 256>}, {transform_indices = @transform_7, window_bounds = array<i64: 98>}, {transform_indices = @transform_8, window_bounds = array<i64: 1>}, {transform_indices = @transform_9, window_bounds = array<i64: 8, 32, 256>}]} {
    %c0 = arith.constant 0 : index
    %c0_0 = arith.constant 0 : index
    %c0_1 = arith.constant 0 : index
    %0 = vector.load %arg1[%c0, %c0_0, %c0_1] : memref<8x32x256xf32, #tpu.memory_space<vmem>>, vector<8x32x256xf32>
    %cst = arith.constant dense<0.000000e+00> : vector<8x32xf32>
    %1 = vector.multi_reduction <add>, %0, %cst [2] : vector<8x32x256xf32> to vector<8x32xf32>
    %cst_2 = arith.constant 2.560000e+02 : f32
    %2 = vector.broadcast %cst_2 : f32 to vector<8x32xf32>
    %3 = arith.divf %1, %2 : vector<8x32xf32>
    %c0_3 = arith.constant 0 : index
    %c0_4 = arith.constant 0 : index
    %4 = vector.load %arg5[%c0_3, %c0_4] : memref<1x32xf32, #tpu.memory_space<vmem>>, vector<1x32xf32>
    %c0_5 = arith.constant 0 : index
    %c0_6 = arith.constant 0 : index
    %5 = vector.load %arg2[%c0_5, %c0_6] : memref<2x32xf32, #tpu.memory_space<vmem>>, vector<1x32xf32>
    %6 = vector.broadcast %5 : vector<1x32xf32> to vector<8x32xf32>
    %7 = arith.mulf %3, %6 : vector<8x32xf32>
    %cst_7 = arith.constant dense<0.000000e+00> : vector<8xf32>
    %8 = vector.multi_reduction <add>, %7, %cst_7 [1] : vector<8x32xf32> to vector<8xf32>
    %9 = vector.shape_cast %8 : vector<8xf32> to vector<8x1xf32>
    %c0_8 = arith.constant 0 : index
    %10 = memref.load %arg3[%c0_8] : memref<2xf32, #tpu.memory_space<smem>>
    %11 = vector.broadcast %10 : f32 to vector<8x1xf32>
    %12 = arith.addf %9, %11 : vector<8x1xf32>
    %cst_9 = arith.constant 0.000000e+00 : f32
    %13 = vector.broadcast %cst_9 : f32 to vector<8x1xf32>
    %14 = arith.maximumf %12, %13 : vector<8x1xf32>
    %c0_10 = arith.constant 0 : index
    %c0_11 = arith.constant 0 : index
    %15 = vector.load %arg4[%c0_10, %c0_11] : memref<2x32xf32, #tpu.memory_space<vmem>>, vector<1x32xf32>
    %16 = vector.broadcast %14 : vector<8x1xf32> to vector<8x32xf32>
    %17 = vector.broadcast %15 : vector<1x32xf32> to vector<8x32xf32>
    %18 = arith.mulf %16, %17 : vector<8x32xf32>
    %19 = vector.broadcast %4 : vector<1x32xf32> to vector<8x32xf32>
    %20 = arith.addf %19, %18 : vector<8x32xf32>
    %c1 = arith.constant 1 : index
    %c0_12 = arith.constant 0 : index
    %21 = vector.load %arg2[%c1, %c0_12] : memref<2x32xf32, #tpu.memory_space<vmem>>, vector<1x32xf32>
    %22 = vector.broadcast %21 : vector<1x32xf32> to vector<8x32xf32>
    %23 = arith.mulf %3, %22 : vector<8x32xf32>
    %cst_13 = arith.constant dense<0.000000e+00> : vector<8xf32>
    %24 = vector.multi_reduction <add>, %23, %cst_13 [1] : vector<8x32xf32> to vector<8xf32>
    %25 = vector.shape_cast %24 : vector<8xf32> to vector<8x1xf32>
    %c1_14 = arith.constant 1 : index
    %26 = memref.load %arg3[%c1_14] : memref<2xf32, #tpu.memory_space<smem>>
    %27 = vector.broadcast %26 : f32 to vector<8x1xf32>
    %28 = arith.addf %25, %27 : vector<8x1xf32>
    %cst_15 = arith.constant 0.000000e+00 : f32
    %29 = vector.broadcast %cst_15 : f32 to vector<8x1xf32>
    %30 = arith.maximumf %28, %29 : vector<8x1xf32>
    %c1_16 = arith.constant 1 : index
    %c0_17 = arith.constant 0 : index
    %31 = vector.load %arg4[%c1_16, %c0_17] : memref<2x32xf32, #tpu.memory_space<vmem>>, vector<1x32xf32>
    %32 = vector.broadcast %30 : vector<8x1xf32> to vector<8x32xf32>
    %33 = vector.broadcast %31 : vector<1x32xf32> to vector<8x32xf32>
    %34 = arith.mulf %32, %33 : vector<8x32xf32>
    %35 = arith.addf %20, %34 : vector<8x32xf32>
    %cst_18 = arith.constant 0.000000e+00 : f32
    %36 = vector.broadcast %cst_18 : f32 to vector<8x32xf32>
    %37 = arith.subf %36, %35 : vector<8x32xf32>
    %38 = math.exp %37 : vector<8x32xf32>
    %cst_19 = arith.constant 1.000000e+00 : f32
    %39 = vector.broadcast %cst_19 : f32 to vector<8x32xf32>
    %40 = arith.addf %39, %38 : vector<8x32xf32>
    %cst_20 = arith.constant 1.000000e+00 : f32
    %41 = vector.broadcast %cst_20 : f32 to vector<8x32xf32>
    %42 = arith.divf %41, %40 : vector<8x32xf32>
    %43 = vector.shape_cast %42 : vector<8x32xf32> to vector<8x32x1xf32>
    %c0_21 = arith.constant 0 : index
    %c0_22 = arith.constant 0 : index
    %c0_23 = arith.constant 0 : index
    %44 = vector.load %arg1[%c0_21, %c0_22, %c0_23] : memref<8x32x256xf32, #tpu.memory_space<vmem>>, vector<8x8x256xf32>
    %45 = vector.extract_strided_slice %43 {offsets = [0, 0, 0], sizes = [8, 8, 1], strides = [1, 1, 1]} : vector<8x32x1xf32> to vector<8x8x1xf32>
    %46 = vector.broadcast %45 : vector<8x8x1xf32> to vector<8x8x256xf32>
    %47 = arith.mulf %44, %46 : vector<8x8x256xf32>
    %cst_24 = arith.constant dense<0xFF800000> : vector<8x256xf32>
    %48 = vector.multi_reduction <maximumf>, %47, %cst_24 [1] : vector<8x8x256xf32> to vector<8x256xf32>
    %cst_25 = arith.constant dense<0.000000e+00> : vector<8x256xf32>
    %49 = vector.multi_reduction <add>, %47, %cst_25 [1] : vector<8x8x256xf32> to vector<8x256xf32>
    %c0_26 = arith.constant 0 : index
    %c8 = arith.constant 8 : index
    %c0_27 = arith.constant 0 : index
    %50 = vector.load %arg1[%c0_26, %c8, %c0_27] : memref<8x32x256xf32, #tpu.memory_space<vmem>>, vector<8x8x256xf32>
    %51 = vector.extract_strided_slice %43 {offsets = [0, 8, 0], sizes = [8, 8, 1], strides = [1, 1, 1]} : vector<8x32x1xf32> to vector<8x8x1xf32>
    %52 = vector.broadcast %51 : vector<8x8x1xf32> to vector<8x8x256xf32>
    %53 = arith.mulf %50, %52 : vector<8x8x256xf32>
    %cst_28 = arith.constant dense<0xFF800000> : vector<8x256xf32>
    %54 = vector.multi_reduction <maximumf>, %53, %cst_28 [1] : vector<8x8x256xf32> to vector<8x256xf32>
    %cst_29 = arith.constant dense<0.000000e+00> : vector<8x256xf32>
    %55 = vector.multi_reduction <add>, %53, %cst_29 [1] : vector<8x8x256xf32> to vector<8x256xf32>
    %56 = arith.maximumf %48, %54 : vector<8x256xf32>
    %57 = arith.addf %49, %55 : vector<8x256xf32>
    %c0_30 = arith.constant 0 : index
    %c16 = arith.constant 16 : index
    %c0_31 = arith.constant 0 : index
    %58 = vector.load %arg1[%c0_30, %c16, %c0_31] : memref<8x32x256xf32, #tpu.memory_space<vmem>>, vector<8x8x256xf32>
    %59 = vector.extract_strided_slice %43 {offsets = [0, 16, 0], sizes = [8, 8, 1], strides = [1, 1, 1]} : vector<8x32x1xf32> to vector<8x8x1xf32>
    %60 = vector.broadcast %59 : vector<8x8x1xf32> to vector<8x8x256xf32>
    %61 = arith.mulf %58, %60 : vector<8x8x256xf32>
    %cst_32 = arith.constant dense<0xFF800000> : vector<8x256xf32>
    %62 = vector.multi_reduction <maximumf>, %61, %cst_32 [1] : vector<8x8x256xf32> to vector<8x256xf32>
    %cst_33 = arith.constant dense<0.000000e+00> : vector<8x256xf32>
    %63 = vector.multi_reduction <add>, %61, %cst_33 [1] : vector<8x8x256xf32> to vector<8x256xf32>
    %64 = arith.maximumf %56, %62 : vector<8x256xf32>
    %65 = arith.addf %57, %63 : vector<8x256xf32>
    %c0_34 = arith.constant 0 : index
    %c24 = arith.constant 24 : index
    %c0_35 = arith.constant 0 : index
    %66 = vector.load %arg1[%c0_34, %c24, %c0_35] : memref<8x32x256xf32, #tpu.memory_space<vmem>>, vector<8x8x256xf32>
    %67 = vector.extract_strided_slice %43 {offsets = [0, 24, 0], sizes = [8, 8, 1], strides = [1, 1, 1]} : vector<8x32x1xf32> to vector<8x8x1xf32>
    %68 = vector.broadcast %67 : vector<8x8x1xf32> to vector<8x8x256xf32>
    %69 = arith.mulf %66, %68 : vector<8x8x256xf32>
    %cst_36 = arith.constant dense<0xFF800000> : vector<8x256xf32>
    %70 = vector.multi_reduction <maximumf>, %69, %cst_36 [1] : vector<8x8x256xf32> to vector<8x256xf32>
    %cst_37 = arith.constant dense<0.000000e+00> : vector<8x256xf32>
    %71 = vector.multi_reduction <add>, %69, %cst_37 [1] : vector<8x8x256xf32> to vector<8x256xf32>
    %72 = arith.maximumf %64, %70 : vector<8x256xf32>
    %73 = arith.addf %65, %71 : vector<8x256xf32>
    %cst_38 = arith.constant 3.125000e-02 : f32
    %74 = vector.broadcast %cst_38 : f32 to vector<8x256xf32>
    %75 = arith.mulf %73, %74 : vector<8x256xf32>
    %76 = tpu.concatenate %72, %75 in 0 : vector<8x256xf32>, vector<8x256xf32> -> vector<16x256xf32>
    %c3_i32 = arith.constant 3 : i32
    %77 = tpu.dynamic_rotate %76 by %c3_i32 dim 1 : vector<16x256xf32>, i32 -> vector<16x256xf32>
    %c0_39 = arith.constant 0 : index
    %c0_40 = arith.constant 0 : index
    %78 = vector.load %arg6[%c0_39, %c0_40] : memref<7x256xf32, #tpu.memory_space<vmem>>, vector<1x256xf32>
    %79 = vector.broadcast %78 : vector<1x256xf32> to vector<16x256xf32>
    %80 = arith.mulf %77, %79 : vector<16x256xf32>
    %81 = vector.extract_strided_slice %80 {offsets = [0, 0], sizes = [8, 256], strides = [1, 1]} : vector<16x256xf32> to vector<8x256xf32>
    %82 = vector.extract_strided_slice %80 {offsets = [8, 0], sizes = [8, 256], strides = [1, 1]} : vector<16x256xf32> to vector<8x256xf32>
    %c0_41 = arith.constant 0 : index
    %83 = memref.load %arg8[%c0_41] : memref<98xf32, #tpu.memory_space<smem>>
    %84 = vector.broadcast %83 : f32 to vector<8x256xf32>
    %85 = arith.mulf %84, %81 : vector<8x256xf32>
    %c49 = arith.constant 49 : index
    %86 = memref.load %arg8[%c49] : memref<98xf32, #tpu.memory_space<smem>>
    %87 = vector.broadcast %86 : f32 to vector<8x256xf32>
    %88 = arith.mulf %87, %82 : vector<8x256xf32>
    %89 = arith.addf %85, %88 : vector<8x256xf32>
    %c7 = arith.constant 7 : index
    %90 = memref.load %arg8[%c7] : memref<98xf32, #tpu.memory_space<smem>>
    %91 = vector.broadcast %90 : f32 to vector<8x256xf32>
    %92 = arith.mulf %91, %81 : vector<8x256xf32>
    %c56 = arith.constant 56 : index
    %93 = memref.load %arg8[%c56] : memref<98xf32, #tpu.memory_space<smem>>
    %94 = vector.broadcast %93 : f32 to vector<8x256xf32>
    %95 = arith.mulf %94, %82 : vector<8x256xf32>
    %96 = arith.addf %92, %95 : vector<8x256xf32>
    %c14 = arith.constant 14 : index
    %97 = memref.load %arg8[%c14] : memref<98xf32, #tpu.memory_space<smem>>
    %98 = vector.broadcast %97 : f32 to vector<8x256xf32>
    %99 = arith.mulf %98, %81 : vector<8x256xf32>
    %c63 = arith.constant 63 : index
    %100 = memref.load %arg8[%c63] : memref<98xf32, #tpu.memory_space<smem>>
    %101 = vector.broadcast %100 : f32 to vector<8x256xf32>
    %102 = arith.mulf %101, %82 : vector<8x256xf32>
    %103 = arith.addf %99, %102 : vector<8x256xf32>
    %c21 = arith.constant 21 : index
    %104 = memref.load %arg8[%c21] : memref<98xf32, #tpu.memory_space<smem>>
    %105 = vector.broadcast %104 : f32 to vector<8x256xf32>
    %106 = arith.mulf %105, %81 : vector<8x256xf32>
    %c70 = arith.constant 70 : index
    %107 = memref.load %arg8[%c70] : memref<98xf32, #tpu.memory_space<smem>>
    %108 = vector.broadcast %107 : f32 to vector<8x256xf32>
    %109 = arith.mulf %108, %82 : vector<8x256xf32>
    %110 = arith.addf %106, %109 : vector<8x256xf32>
    %c28 = arith.constant 28 : index
    %111 = memref.load %arg8[%c28] : memref<98xf32, #tpu.memory_space<smem>>
    %112 = vector.broadcast %111 : f32 to vector<8x256xf32>
    %113 = arith.mulf %112, %81 : vector<8x256xf32>
    %c77 = arith.constant 77 : index
    %114 = memref.load %arg8[%c77] : memref<98xf32, #tpu.memory_space<smem>>
    %115 = vector.broadcast %114 : f32 to vector<8x256xf32>
    %116 = arith.mulf %115, %82 : vector<8x256xf32>
    %117 = arith.addf %113, %116 : vector<8x256xf32>
    %c35 = arith.constant 35 : index
    %118 = memref.load %arg8[%c35] : memref<98xf32, #tpu.memory_space<smem>>
    %119 = vector.broadcast %118 : f32 to vector<8x256xf32>
    %120 = arith.mulf %119, %81 : vector<8x256xf32>
    %c84 = arith.constant 84 : index
    %121 = memref.load %arg8[%c84] : memref<98xf32, #tpu.memory_space<smem>>
    %122 = vector.broadcast %121 : f32 to vector<8x256xf32>
    %123 = arith.mulf %122, %82 : vector<8x256xf32>
    %124 = arith.addf %120, %123 : vector<8x256xf32>
    %c42 = arith.constant 42 : index
    %125 = memref.load %arg8[%c42] : memref<98xf32, #tpu.memory_space<smem>>
    %126 = vector.broadcast %125 : f32 to vector<8x256xf32>
    %127 = arith.mulf %126, %81 : vector<8x256xf32>
    %c91 = arith.constant 91 : index
    %128 = memref.load %arg8[%c91] : memref<98xf32, #tpu.memory_space<smem>>
    %129 = vector.broadcast %128 : f32 to vector<8x256xf32>
    %130 = arith.mulf %129, %82 : vector<8x256xf32>
    %131 = arith.addf %127, %130 : vector<8x256xf32>
    %c2_i32 = arith.constant 2 : i32
    %132 = tpu.dynamic_rotate %76 by %c2_i32 dim 1 : vector<16x256xf32>, i32 -> vector<16x256xf32>
    %c1_42 = arith.constant 1 : index
    %c0_43 = arith.constant 0 : index
    %133 = vector.load %arg6[%c1_42, %c0_43] : memref<7x256xf32, #tpu.memory_space<vmem>>, vector<1x256xf32>
    %134 = vector.broadcast %133 : vector<1x256xf32> to vector<16x256xf32>
    %135 = arith.mulf %132, %134 : vector<16x256xf32>
    %136 = vector.extract_strided_slice %135 {offsets = [0, 0], sizes = [8, 256], strides = [1, 1]} : vector<16x256xf32> to vector<8x256xf32>
    %137 = vector.extract_strided_slice %135 {offsets = [8, 0], sizes = [8, 256], strides = [1, 1]} : vector<16x256xf32> to vector<8x256xf32>
    %c1_44 = arith.constant 1 : index
    %138 = memref.load %arg8[%c1_44] : memref<98xf32, #tpu.memory_space<smem>>
    %139 = vector.broadcast %138 : f32 to vector<8x256xf32>
    %140 = arith.mulf %139, %136 : vector<8x256xf32>
    %c50 = arith.constant 50 : index
    %141 = memref.load %arg8[%c50] : memref<98xf32, #tpu.memory_space<smem>>
    %142 = vector.broadcast %141 : f32 to vector<8x256xf32>
    %143 = arith.mulf %142, %137 : vector<8x256xf32>
    %144 = arith.addf %140, %143 : vector<8x256xf32>
    %145 = arith.addf %89, %144 : vector<8x256xf32>
    %c8_45 = arith.constant 8 : index
    %146 = memref.load %arg8[%c8_45] : memref<98xf32, #tpu.memory_space<smem>>
    %147 = vector.broadcast %146 : f32 to vector<8x256xf32>
    %148 = arith.mulf %147, %136 : vector<8x256xf32>
    %c57 = arith.constant 57 : index
    %149 = memref.load %arg8[%c57] : memref<98xf32, #tpu.memory_space<smem>>
    %150 = vector.broadcast %149 : f32 to vector<8x256xf32>
    %151 = arith.mulf %150, %137 : vector<8x256xf32>
    %152 = arith.addf %148, %151 : vector<8x256xf32>
    %153 = arith.addf %96, %152 : vector<8x256xf32>
    %c15 = arith.constant 15 : index
    %154 = memref.load %arg8[%c15] : memref<98xf32, #tpu.memory_space<smem>>
    %155 = vector.broadcast %154 : f32 to vector<8x256xf32>
    %156 = arith.mulf %155, %136 : vector<8x256xf32>
    %c64 = arith.constant 64 : index
    %157 = memref.load %arg8[%c64] : memref<98xf32, #tpu.memory_space<smem>>
    %158 = vector.broadcast %157 : f32 to vector<8x256xf32>
    %159 = arith.mulf %158, %137 : vector<8x256xf32>
    %160 = arith.addf %156, %159 : vector<8x256xf32>
    %161 = arith.addf %103, %160 : vector<8x256xf32>
    %c22 = arith.constant 22 : index
    %162 = memref.load %arg8[%c22] : memref<98xf32, #tpu.memory_space<smem>>
    %163 = vector.broadcast %162 : f32 to vector<8x256xf32>
    %164 = arith.mulf %163, %136 : vector<8x256xf32>
    %c71 = arith.constant 71 : index
    %165 = memref.load %arg8[%c71] : memref<98xf32, #tpu.memory_space<smem>>
    %166 = vector.broadcast %165 : f32 to vector<8x256xf32>
    %167 = arith.mulf %166, %137 : vector<8x256xf32>
    %168 = arith.addf %164, %167 : vector<8x256xf32>
    %169 = arith.addf %110, %168 : vector<8x256xf32>
    %c29 = arith.constant 29 : index
    %170 = memref.load %arg8[%c29] : memref<98xf32, #tpu.memory_space<smem>>
    %171 = vector.broadcast %170 : f32 to vector<8x256xf32>
    %172 = arith.mulf %171, %136 : vector<8x256xf32>
    %c78 = arith.constant 78 : index
    %173 = memref.load %arg8[%c78] : memref<98xf32, #tpu.memory_space<smem>>
    %174 = vector.broadcast %173 : f32 to vector<8x256xf32>
    %175 = arith.mulf %174, %137 : vector<8x256xf32>
    %176 = arith.addf %172, %175 : vector<8x256xf32>
    %177 = arith.addf %117, %176 : vector<8x256xf32>
    %c36 = arith.constant 36 : index
    %178 = memref.load %arg8[%c36] : memref<98xf32, #tpu.memory_space<smem>>
    %179 = vector.broadcast %178 : f32 to vector<8x256xf32>
    %180 = arith.mulf %179, %136 : vector<8x256xf32>
    %c85 = arith.constant 85 : index
    %181 = memref.load %arg8[%c85] : memref<98xf32, #tpu.memory_space<smem>>
    %182 = vector.broadcast %181 : f32 to vector<8x256xf32>
    %183 = arith.mulf %182, %137 : vector<8x256xf32>
    %184 = arith.addf %180, %183 : vector<8x256xf32>
    %185 = arith.addf %124, %184 : vector<8x256xf32>
    %c43 = arith.constant 43 : index
    %186 = memref.load %arg8[%c43] : memref<98xf32, #tpu.memory_space<smem>>
    %187 = vector.broadcast %186 : f32 to vector<8x256xf32>
    %188 = arith.mulf %187, %136 : vector<8x256xf32>
    %c92 = arith.constant 92 : index
    %189 = memref.load %arg8[%c92] : memref<98xf32, #tpu.memory_space<smem>>
    %190 = vector.broadcast %189 : f32 to vector<8x256xf32>
    %191 = arith.mulf %190, %137 : vector<8x256xf32>
    %192 = arith.addf %188, %191 : vector<8x256xf32>
    %193 = arith.addf %131, %192 : vector<8x256xf32>
    %c1_i32 = arith.constant 1 : i32
    %194 = tpu.dynamic_rotate %76 by %c1_i32 dim 1 : vector<16x256xf32>, i32 -> vector<16x256xf32>
    %c2 = arith.constant 2 : index
    %c0_46 = arith.constant 0 : index
    %195 = vector.load %arg6[%c2, %c0_46] : memref<7x256xf32, #tpu.memory_space<vmem>>, vector<1x256xf32>
    %196 = vector.broadcast %195 : vector<1x256xf32> to vector<16x256xf32>
    %197 = arith.mulf %194, %196 : vector<16x256xf32>
    %198 = vector.extract_strided_slice %197 {offsets = [0, 0], sizes = [8, 256], strides = [1, 1]} : vector<16x256xf32> to vector<8x256xf32>
    %199 = vector.extract_strided_slice %197 {offsets = [8, 0], sizes = [8, 256], strides = [1, 1]} : vector<16x256xf32> to vector<8x256xf32>
    %c2_47 = arith.constant 2 : index
    %200 = memref.load %arg8[%c2_47] : memref<98xf32, #tpu.memory_space<smem>>
    %201 = vector.broadcast %200 : f32 to vector<8x256xf32>
    %202 = arith.mulf %201, %198 : vector<8x256xf32>
    %c51 = arith.constant 51 : index
    %203 = memref.load %arg8[%c51] : memref<98xf32, #tpu.memory_space<smem>>
    %204 = vector.broadcast %203 : f32 to vector<8x256xf32>
    %205 = arith.mulf %204, %199 : vector<8x256xf32>
    %206 = arith.addf %202, %205 : vector<8x256xf32>
    %207 = arith.addf %145, %206 : vector<8x256xf32>
    %c9 = arith.constant 9 : index
    %208 = memref.load %arg8[%c9] : memref<98xf32, #tpu.memory_space<smem>>
    %209 = vector.broadcast %208 : f32 to vector<8x256xf32>
    %210 = arith.mulf %209, %198 : vector<8x256xf32>
    %c58 = arith.constant 58 : index
    %211 = memref.load %arg8[%c58] : memref<98xf32, #tpu.memory_space<smem>>
    %212 = vector.broadcast %211 : f32 to vector<8x256xf32>
    %213 = arith.mulf %212, %199 : vector<8x256xf32>
    %214 = arith.addf %210, %213 : vector<8x256xf32>
    %215 = arith.addf %153, %214 : vector<8x256xf32>
    %c16_48 = arith.constant 16 : index
    %216 = memref.load %arg8[%c16_48] : memref<98xf32, #tpu.memory_space<smem>>
    %217 = vector.broadcast %216 : f32 to vector<8x256xf32>
    %218 = arith.mulf %217, %198 : vector<8x256xf32>
    %c65 = arith.constant 65 : index
    %219 = memref.load %arg8[%c65] : memref<98xf32, #tpu.memory_space<smem>>
    %220 = vector.broadcast %219 : f32 to vector<8x256xf32>
    %221 = arith.mulf %220, %199 : vector<8x256xf32>
    %222 = arith.addf %218, %221 : vector<8x256xf32>
    %223 = arith.addf %161, %222 : vector<8x256xf32>
    %c23 = arith.constant 23 : index
    %224 = memref.load %arg8[%c23] : memref<98xf32, #tpu.memory_space<smem>>
    %225 = vector.broadcast %224 : f32 to vector<8x256xf32>
    %226 = arith.mulf %225, %198 : vector<8x256xf32>
    %c72 = arith.constant 72 : index
    %227 = memref.load %arg8[%c72] : memref<98xf32, #tpu.memory_space<smem>>
    %228 = vector.broadcast %227 : f32 to vector<8x256xf32>
    %229 = arith.mulf %228, %199 : vector<8x256xf32>
    %230 = arith.addf %226, %229 : vector<8x256xf32>
    %231 = arith.addf %169, %230 : vector<8x256xf32>
    %c30 = arith.constant 30 : index
    %232 = memref.load %arg8[%c30] : memref<98xf32, #tpu.memory_space<smem>>
    %233 = vector.broadcast %232 : f32 to vector<8x256xf32>
    %234 = arith.mulf %233, %198 : vector<8x256xf32>
    %c79 = arith.constant 79 : index
    %235 = memref.load %arg8[%c79] : memref<98xf32, #tpu.memory_space<smem>>
    %236 = vector.broadcast %235 : f32 to vector<8x256xf32>
    %237 = arith.mulf %236, %199 : vector<8x256xf32>
    %238 = arith.addf %234, %237 : vector<8x256xf32>
    %239 = arith.addf %177, %238 : vector<8x256xf32>
    %c37 = arith.constant 37 : index
    %240 = memref.load %arg8[%c37] : memref<98xf32, #tpu.memory_space<smem>>
    %241 = vector.broadcast %240 : f32 to vector<8x256xf32>
    %242 = arith.mulf %241, %198 : vector<8x256xf32>
    %c86 = arith.constant 86 : index
    %243 = memref.load %arg8[%c86] : memref<98xf32, #tpu.memory_space<smem>>
    %244 = vector.broadcast %243 : f32 to vector<8x256xf32>
    %245 = arith.mulf %244, %199 : vector<8x256xf32>
    %246 = arith.addf %242, %245 : vector<8x256xf32>
    %247 = arith.addf %185, %246 : vector<8x256xf32>
    %c44 = arith.constant 44 : index
    %248 = memref.load %arg8[%c44] : memref<98xf32, #tpu.memory_space<smem>>
    %249 = vector.broadcast %248 : f32 to vector<8x256xf32>
    %250 = arith.mulf %249, %198 : vector<8x256xf32>
    %c93 = arith.constant 93 : index
    %251 = memref.load %arg8[%c93] : memref<98xf32, #tpu.memory_space<smem>>
    %252 = vector.broadcast %251 : f32 to vector<8x256xf32>
    %253 = arith.mulf %252, %199 : vector<8x256xf32>
    %254 = arith.addf %250, %253 : vector<8x256xf32>
    %255 = arith.addf %193, %254 : vector<8x256xf32>
    %c3 = arith.constant 3 : index
    %c0_49 = arith.constant 0 : index
    %256 = vector.load %arg6[%c3, %c0_49] : memref<7x256xf32, #tpu.memory_space<vmem>>, vector<1x256xf32>
    %257 = vector.broadcast %256 : vector<1x256xf32> to vector<16x256xf32>
    %258 = arith.mulf %76, %257 : vector<16x256xf32>
    %259 = vector.extract_strided_slice %258 {offsets = [0, 0], sizes = [8, 256], strides = [1, 1]} : vector<16x256xf32> to vector<8x256xf32>
    %260 = vector.extract_strided_slice %258 {offsets = [8, 0], sizes = [8, 256], strides = [1, 1]} : vector<16x256xf32> to vector<8x256xf32>
    %c3_50 = arith.constant 3 : index
    %261 = memref.load %arg8[%c3_50] : memref<98xf32, #tpu.memory_space<smem>>
    %262 = vector.broadcast %261 : f32 to vector<8x256xf32>
    %263 = arith.mulf %262, %259 : vector<8x256xf32>
    %c52 = arith.constant 52 : index
    %264 = memref.load %arg8[%c52] : memref<98xf32, #tpu.memory_space<smem>>
    %265 = vector.broadcast %264 : f32 to vector<8x256xf32>
    %266 = arith.mulf %265, %260 : vector<8x256xf32>
    %267 = arith.addf %263, %266 : vector<8x256xf32>
    %268 = arith.addf %207, %267 : vector<8x256xf32>
    %c10 = arith.constant 10 : index
    %269 = memref.load %arg8[%c10] : memref<98xf32, #tpu.memory_space<smem>>
    %270 = vector.broadcast %269 : f32 to vector<8x256xf32>
    %271 = arith.mulf %270, %259 : vector<8x256xf32>
    %c59 = arith.constant 59 : index
    %272 = memref.load %arg8[%c59] : memref<98xf32, #tpu.memory_space<smem>>
    %273 = vector.broadcast %272 : f32 to vector<8x256xf32>
    %274 = arith.mulf %273, %260 : vector<8x256xf32>
    %275 = arith.addf %271, %274 : vector<8x256xf32>
    %276 = arith.addf %215, %275 : vector<8x256xf32>
    %c17 = arith.constant 17 : index
    %277 = memref.load %arg8[%c17] : memref<98xf32, #tpu.memory_space<smem>>
    %278 = vector.broadcast %277 : f32 to vector<8x256xf32>
    %279 = arith.mulf %278, %259 : vector<8x256xf32>
    %c66 = arith.constant 66 : index
    %280 = memref.load %arg8[%c66] : memref<98xf32, #tpu.memory_space<smem>>
    %281 = vector.broadcast %280 : f32 to vector<8x256xf32>
    %282 = arith.mulf %281, %260 : vector<8x256xf32>
    %283 = arith.addf %279, %282 : vector<8x256xf32>
    %284 = arith.addf %223, %283 : vector<8x256xf32>
    %c24_51 = arith.constant 24 : index
    %285 = memref.load %arg8[%c24_51] : memref<98xf32, #tpu.memory_space<smem>>
    %286 = vector.broadcast %285 : f32 to vector<8x256xf32>
    %287 = arith.mulf %286, %259 : vector<8x256xf32>
    %c73 = arith.constant 73 : index
    %288 = memref.load %arg8[%c73] : memref<98xf32, #tpu.memory_space<smem>>
    %289 = vector.broadcast %288 : f32 to vector<8x256xf32>
    %290 = arith.mulf %289, %260 : vector<8x256xf32>
    %291 = arith.addf %287, %290 : vector<8x256xf32>
    %292 = arith.addf %231, %291 : vector<8x256xf32>
    %c31 = arith.constant 31 : index
    %293 = memref.load %arg8[%c31] : memref<98xf32, #tpu.memory_space<smem>>
    %294 = vector.broadcast %293 : f32 to vector<8x256xf32>
    %295 = arith.mulf %294, %259 : vector<8x256xf32>
    %c80 = arith.constant 80 : index
    %296 = memref.load %arg8[%c80] : memref<98xf32, #tpu.memory_space<smem>>
    %297 = vector.broadcast %296 : f32 to vector<8x256xf32>
    %298 = arith.mulf %297, %260 : vector<8x256xf32>
    %299 = arith.addf %295, %298 : vector<8x256xf32>
    %300 = arith.addf %239, %299 : vector<8x256xf32>
    %c38 = arith.constant 38 : index
    %301 = memref.load %arg8[%c38] : memref<98xf32, #tpu.memory_space<smem>>
    %302 = vector.broadcast %301 : f32 to vector<8x256xf32>
    %303 = arith.mulf %302, %259 : vector<8x256xf32>
    %c87 = arith.constant 87 : index
    %304 = memref.load %arg8[%c87] : memref<98xf32, #tpu.memory_space<smem>>
    %305 = vector.broadcast %304 : f32 to vector<8x256xf32>
    %306 = arith.mulf %305, %260 : vector<8x256xf32>
    %307 = arith.addf %303, %306 : vector<8x256xf32>
    %308 = arith.addf %247, %307 : vector<8x256xf32>
    %c45 = arith.constant 45 : index
    %309 = memref.load %arg8[%c45] : memref<98xf32, #tpu.memory_space<smem>>
    %310 = vector.broadcast %309 : f32 to vector<8x256xf32>
    %311 = arith.mulf %310, %259 : vector<8x256xf32>
    %c94 = arith.constant 94 : index
    %312 = memref.load %arg8[%c94] : memref<98xf32, #tpu.memory_space<smem>>
    %313 = vector.broadcast %312 : f32 to vector<8x256xf32>
    %314 = arith.mulf %313, %260 : vector<8x256xf32>
    %315 = arith.addf %311, %314 : vector<8x256xf32>
    %316 = arith.addf %255, %315 : vector<8x256xf32>
    %c255_i32 = arith.constant 255 : i32
    %317 = tpu.dynamic_rotate %76 by %c255_i32 dim 1 : vector<16x256xf32>, i32 -> vector<16x256xf32>
    %c4 = arith.constant 4 : index
    %c0_52 = arith.constant 0 : index
    %318 = vector.load %arg6[%c4, %c0_52] : memref<7x256xf32, #tpu.memory_space<vmem>>, vector<1x256xf32>
    %319 = vector.broadcast %318 : vector<1x256xf32> to vector<16x256xf32>
    %320 = arith.mulf %317, %319 : vector<16x256xf32>
    %321 = vector.extract_strided_slice %320 {offsets = [0, 0], sizes = [8, 256], strides = [1, 1]} : vector<16x256xf32> to vector<8x256xf32>
    %322 = vector.extract_strided_slice %320 {offsets = [8, 0], sizes = [8, 256], strides = [1, 1]} : vector<16x256xf32> to vector<8x256xf32>
    %c4_53 = arith.constant 4 : index
    %323 = memref.load %arg8[%c4_53] : memref<98xf32, #tpu.memory_space<smem>>
    %324 = vector.broadcast %323 : f32 to vector<8x256xf32>
    %325 = arith.mulf %324, %321 : vector<8x256xf32>
    %c53 = arith.constant 53 : index
    %326 = memref.load %arg8[%c53] : memref<98xf32, #tpu.memory_space<smem>>
    %327 = vector.broadcast %326 : f32 to vector<8x256xf32>
    %328 = arith.mulf %327, %322 : vector<8x256xf32>
    %329 = arith.addf %325, %328 : vector<8x256xf32>
    %330 = arith.addf %268, %329 : vector<8x256xf32>
    %c11 = arith.constant 11 : index
    %331 = memref.load %arg8[%c11] : memref<98xf32, #tpu.memory_space<smem>>
    %332 = vector.broadcast %331 : f32 to vector<8x256xf32>
    %333 = arith.mulf %332, %321 : vector<8x256xf32>
    %c60 = arith.constant 60 : index
    %334 = memref.load %arg8[%c60] : memref<98xf32, #tpu.memory_space<smem>>
    %335 = vector.broadcast %334 : f32 to vector<8x256xf32>
    %336 = arith.mulf %335, %322 : vector<8x256xf32>
    %337 = arith.addf %333, %336 : vector<8x256xf32>
    %338 = arith.addf %276, %337 : vector<8x256xf32>
    %c18 = arith.constant 18 : index
    %339 = memref.load %arg8[%c18] : memref<98xf32, #tpu.memory_space<smem>>
    %340 = vector.broadcast %339 : f32 to vector<8x256xf32>
    %341 = arith.mulf %340, %321 : vector<8x256xf32>
    %c67 = arith.constant 67 : index
    %342 = memref.load %arg8[%c67] : memref<98xf32, #tpu.memory_space<smem>>
    %343 = vector.broadcast %342 : f32 to vector<8x256xf32>
    %344 = arith.mulf %343, %322 : vector<8x256xf32>
    %345 = arith.addf %341, %344 : vector<8x256xf32>
    %346 = arith.addf %284, %345 : vector<8x256xf32>
    %c25 = arith.constant 25 : index
    %347 = memref.load %arg8[%c25] : memref<98xf32, #tpu.memory_space<smem>>
    %348 = vector.broadcast %347 : f32 to vector<8x256xf32>
    %349 = arith.mulf %348, %321 : vector<8x256xf32>
    %c74 = arith.constant 74 : index
    %350 = memref.load %arg8[%c74] : memref<98xf32, #tpu.memory_space<smem>>
    %351 = vector.broadcast %350 : f32 to vector<8x256xf32>
    %352 = arith.mulf %351, %322 : vector<8x256xf32>
    %353 = arith.addf %349, %352 : vector<8x256xf32>
    %354 = arith.addf %292, %353 : vector<8x256xf32>
    %c32 = arith.constant 32 : index
    %355 = memref.load %arg8[%c32] : memref<98xf32, #tpu.memory_space<smem>>
    %356 = vector.broadcast %355 : f32 to vector<8x256xf32>
    %357 = arith.mulf %356, %321 : vector<8x256xf32>
    %c81 = arith.constant 81 : index
    %358 = memref.load %arg8[%c81] : memref<98xf32, #tpu.memory_space<smem>>
    %359 = vector.broadcast %358 : f32 to vector<8x256xf32>
    %360 = arith.mulf %359, %322 : vector<8x256xf32>
    %361 = arith.addf %357, %360 : vector<8x256xf32>
    %362 = arith.addf %300, %361 : vector<8x256xf32>
    %c39 = arith.constant 39 : index
    %363 = memref.load %arg8[%c39] : memref<98xf32, #tpu.memory_space<smem>>
    %364 = vector.broadcast %363 : f32 to vector<8x256xf32>
    %365 = arith.mulf %364, %321 : vector<8x256xf32>
    %c88 = arith.constant 88 : index
    %366 = memref.load %arg8[%c88] : memref<98xf32, #tpu.memory_space<smem>>
    %367 = vector.broadcast %366 : f32 to vector<8x256xf32>
    %368 = arith.mulf %367, %322 : vector<8x256xf32>
    %369 = arith.addf %365, %368 : vector<8x256xf32>
    %370 = arith.addf %308, %369 : vector<8x256xf32>
    %c46 = arith.constant 46 : index
    %371 = memref.load %arg8[%c46] : memref<98xf32, #tpu.memory_space<smem>>
    %372 = vector.broadcast %371 : f32 to vector<8x256xf32>
    %373 = arith.mulf %372, %321 : vector<8x256xf32>
    %c95 = arith.constant 95 : index
    %374 = memref.load %arg8[%c95] : memref<98xf32, #tpu.memory_space<smem>>
    %375 = vector.broadcast %374 : f32 to vector<8x256xf32>
    %376 = arith.mulf %375, %322 : vector<8x256xf32>
    %377 = arith.addf %373, %376 : vector<8x256xf32>
    %378 = arith.addf %316, %377 : vector<8x256xf32>
    %c254_i32 = arith.constant 254 : i32
    %379 = tpu.dynamic_rotate %76 by %c254_i32 dim 1 : vector<16x256xf32>, i32 -> vector<16x256xf32>
    %c5 = arith.constant 5 : index
    %c0_54 = arith.constant 0 : index
    %380 = vector.load %arg6[%c5, %c0_54] : memref<7x256xf32, #tpu.memory_space<vmem>>, vector<1x256xf32>
    %381 = vector.broadcast %380 : vector<1x256xf32> to vector<16x256xf32>
    %382 = arith.mulf %379, %381 : vector<16x256xf32>
    %383 = vector.extract_strided_slice %382 {offsets = [0, 0], sizes = [8, 256], strides = [1, 1]} : vector<16x256xf32> to vector<8x256xf32>
    %384 = vector.extract_strided_slice %382 {offsets = [8, 0], sizes = [8, 256], strides = [1, 1]} : vector<16x256xf32> to vector<8x256xf32>
    %c5_55 = arith.constant 5 : index
    %385 = memref.load %arg8[%c5_55] : memref<98xf32, #tpu.memory_space<smem>>
    %386 = vector.broadcast %385 : f32 to vector<8x256xf32>
    %387 = arith.mulf %386, %383 : vector<8x256xf32>
    %c54 = arith.constant 54 : index
    %388 = memref.load %arg8[%c54] : memref<98xf32, #tpu.memory_space<smem>>
    %389 = vector.broadcast %388 : f32 to vector<8x256xf32>
    %390 = arith.mulf %389, %384 : vector<8x256xf32>
    %391 = arith.addf %387, %390 : vector<8x256xf32>
    %392 = arith.addf %330, %391 : vector<8x256xf32>
    %c12 = arith.constant 12 : index
    %393 = memref.load %arg8[%c12] : memref<98xf32, #tpu.memory_space<smem>>
    %394 = vector.broadcast %393 : f32 to vector<8x256xf32>
    %395 = arith.mulf %394, %383 : vector<8x256xf32>
    %c61 = arith.constant 61 : index
    %396 = memref.load %arg8[%c61] : memref<98xf32, #tpu.memory_space<smem>>
    %397 = vector.broadcast %396 : f32 to vector<8x256xf32>
    %398 = arith.mulf %397, %384 : vector<8x256xf32>
    %399 = arith.addf %395, %398 : vector<8x256xf32>
    %400 = arith.addf %338, %399 : vector<8x256xf32>
    %c19 = arith.constant 19 : index
    %401 = memref.load %arg8[%c19] : memref<98xf32, #tpu.memory_space<smem>>
    %402 = vector.broadcast %401 : f32 to vector<8x256xf32>
    %403 = arith.mulf %402, %383 : vector<8x256xf32>
    %c68 = arith.constant 68 : index
    %404 = memref.load %arg8[%c68] : memref<98xf32, #tpu.memory_space<smem>>
    %405 = vector.broadcast %404 : f32 to vector<8x256xf32>
    %406 = arith.mulf %405, %384 : vector<8x256xf32>
    %407 = arith.addf %403, %406 : vector<8x256xf32>
    %408 = arith.addf %346, %407 : vector<8x256xf32>
    %c26 = arith.constant 26 : index
    %409 = memref.load %arg8[%c26] : memref<98xf32, #tpu.memory_space<smem>>
    %410 = vector.broadcast %409 : f32 to vector<8x256xf32>
    %411 = arith.mulf %410, %383 : vector<8x256xf32>
    %c75 = arith.constant 75 : index
    %412 = memref.load %arg8[%c75] : memref<98xf32, #tpu.memory_space<smem>>
    %413 = vector.broadcast %412 : f32 to vector<8x256xf32>
    %414 = arith.mulf %413, %384 : vector<8x256xf32>
    %415 = arith.addf %411, %414 : vector<8x256xf32>
    %416 = arith.addf %354, %415 : vector<8x256xf32>
    %c33 = arith.constant 33 : index
    %417 = memref.load %arg8[%c33] : memref<98xf32, #tpu.memory_space<smem>>
    %418 = vector.broadcast %417 : f32 to vector<8x256xf32>
    %419 = arith.mulf %418, %383 : vector<8x256xf32>
    %c82 = arith.constant 82 : index
    %420 = memref.load %arg8[%c82] : memref<98xf32, #tpu.memory_space<smem>>
    %421 = vector.broadcast %420 : f32 to vector<8x256xf32>
    %422 = arith.mulf %421, %384 : vector<8x256xf32>
    %423 = arith.addf %419, %422 : vector<8x256xf32>
    %424 = arith.addf %362, %423 : vector<8x256xf32>
    %c40 = arith.constant 40 : index
    %425 = memref.load %arg8[%c40] : memref<98xf32, #tpu.memory_space<smem>>
    %426 = vector.broadcast %425 : f32 to vector<8x256xf32>
    %427 = arith.mulf %426, %383 : vector<8x256xf32>
    %c89 = arith.constant 89 : index
    %428 = memref.load %arg8[%c89] : memref<98xf32, #tpu.memory_space<smem>>
    %429 = vector.broadcast %428 : f32 to vector<8x256xf32>
    %430 = arith.mulf %429, %384 : vector<8x256xf32>
    %431 = arith.addf %427, %430 : vector<8x256xf32>
    %432 = arith.addf %370, %431 : vector<8x256xf32>
    %c47 = arith.constant 47 : index
    %433 = memref.load %arg8[%c47] : memref<98xf32, #tpu.memory_space<smem>>
    %434 = vector.broadcast %433 : f32 to vector<8x256xf32>
    %435 = arith.mulf %434, %383 : vector<8x256xf32>
    %c96 = arith.constant 96 : index
    %436 = memref.load %arg8[%c96] : memref<98xf32, #tpu.memory_space<smem>>
    %437 = vector.broadcast %436 : f32 to vector<8x256xf32>
    %438 = arith.mulf %437, %384 : vector<8x256xf32>
    %439 = arith.addf %435, %438 : vector<8x256xf32>
    %440 = arith.addf %378, %439 : vector<8x256xf32>
    %c253_i32 = arith.constant 253 : i32
    %441 = tpu.dynamic_rotate %76 by %c253_i32 dim 1 : vector<16x256xf32>, i32 -> vector<16x256xf32>
    %c6 = arith.constant 6 : index
    %c0_56 = arith.constant 0 : index
    %442 = vector.load %arg6[%c6, %c0_56] : memref<7x256xf32, #tpu.memory_space<vmem>>, vector<1x256xf32>
    %443 = vector.broadcast %442 : vector<1x256xf32> to vector<16x256xf32>
    %444 = arith.mulf %441, %443 : vector<16x256xf32>
    %445 = vector.extract_strided_slice %444 {offsets = [0, 0], sizes = [8, 256], strides = [1, 1]} : vector<16x256xf32> to vector<8x256xf32>
    %446 = vector.extract_strided_slice %444 {offsets = [8, 0], sizes = [8, 256], strides = [1, 1]} : vector<16x256xf32> to vector<8x256xf32>
    %c6_57 = arith.constant 6 : index
    %447 = memref.load %arg8[%c6_57] : memref<98xf32, #tpu.memory_space<smem>>
    %448 = vector.broadcast %447 : f32 to vector<8x256xf32>
    %449 = arith.mulf %448, %445 : vector<8x256xf32>
    %c55 = arith.constant 55 : index
    %450 = memref.load %arg8[%c55] : memref<98xf32, #tpu.memory_space<smem>>
    %451 = vector.broadcast %450 : f32 to vector<8x256xf32>
    %452 = arith.mulf %451, %446 : vector<8x256xf32>
    %453 = arith.addf %449, %452 : vector<8x256xf32>
    %454 = arith.addf %392, %453 : vector<8x256xf32>
    %c13 = arith.constant 13 : index
    %455 = memref.load %arg8[%c13] : memref<98xf32, #tpu.memory_space<smem>>
    %456 = vector.broadcast %455 : f32 to vector<8x256xf32>
    %457 = arith.mulf %456, %445 : vector<8x256xf32>
    %c62 = arith.constant 62 : index
    %458 = memref.load %arg8[%c62] : memref<98xf32, #tpu.memory_space<smem>>
    %459 = vector.broadcast %458 : f32 to vector<8x256xf32>
    %460 = arith.mulf %459, %446 : vector<8x256xf32>
    %461 = arith.addf %457, %460 : vector<8x256xf32>
    %462 = arith.addf %400, %461 : vector<8x256xf32>
    %c20 = arith.constant 20 : index
    %463 = memref.load %arg8[%c20] : memref<98xf32, #tpu.memory_space<smem>>
    %464 = vector.broadcast %463 : f32 to vector<8x256xf32>
    %465 = arith.mulf %464, %445 : vector<8x256xf32>
    %c69 = arith.constant 69 : index
    %466 = memref.load %arg8[%c69] : memref<98xf32, #tpu.memory_space<smem>>
    %467 = vector.broadcast %466 : f32 to vector<8x256xf32>
    %468 = arith.mulf %467, %446 : vector<8x256xf32>
    %469 = arith.addf %465, %468 : vector<8x256xf32>
    %470 = arith.addf %408, %469 : vector<8x256xf32>
    %c27 = arith.constant 27 : index
    %471 = memref.load %arg8[%c27] : memref<98xf32, #tpu.memory_space<smem>>
    %472 = vector.broadcast %471 : f32 to vector<8x256xf32>
    %473 = arith.mulf %472, %445 : vector<8x256xf32>
    %c76 = arith.constant 76 : index
    %474 = memref.load %arg8[%c76] : memref<98xf32, #tpu.memory_space<smem>>
    %475 = vector.broadcast %474 : f32 to vector<8x256xf32>
    %476 = arith.mulf %475, %446 : vector<8x256xf32>
    %477 = arith.addf %473, %476 : vector<8x256xf32>
    %478 = arith.addf %416, %477 : vector<8x256xf32>
    %c34 = arith.constant 34 : index
    %479 = memref.load %arg8[%c34] : memref<98xf32, #tpu.memory_space<smem>>
    %480 = vector.broadcast %479 : f32 to vector<8x256xf32>
    %481 = arith.mulf %480, %445 : vector<8x256xf32>
    %c83 = arith.constant 83 : index
    %482 = memref.load %arg8[%c83] : memref<98xf32, #tpu.memory_space<smem>>
    %483 = vector.broadcast %482 : f32 to vector<8x256xf32>
    %484 = arith.mulf %483, %446 : vector<8x256xf32>
    %485 = arith.addf %481, %484 : vector<8x256xf32>
    %486 = arith.addf %424, %485 : vector<8x256xf32>
    %c41 = arith.constant 41 : index
    %487 = memref.load %arg8[%c41] : memref<98xf32, #tpu.memory_space<smem>>
    %488 = vector.broadcast %487 : f32 to vector<8x256xf32>
    %489 = arith.mulf %488, %445 : vector<8x256xf32>
    %c90 = arith.constant 90 : index
    %490 = memref.load %arg8[%c90] : memref<98xf32, #tpu.memory_space<smem>>
    %491 = vector.broadcast %490 : f32 to vector<8x256xf32>
    %492 = arith.mulf %491, %446 : vector<8x256xf32>
    %493 = arith.addf %489, %492 : vector<8x256xf32>
    %494 = arith.addf %432, %493 : vector<8x256xf32>
    %c48 = arith.constant 48 : index
    %495 = memref.load %arg8[%c48] : memref<98xf32, #tpu.memory_space<smem>>
    %496 = vector.broadcast %495 : f32 to vector<8x256xf32>
    %497 = arith.mulf %496, %445 : vector<8x256xf32>
    %c97 = arith.constant 97 : index
    %498 = memref.load %arg8[%c97] : memref<98xf32, #tpu.memory_space<smem>>
    %499 = vector.broadcast %498 : f32 to vector<8x256xf32>
    %500 = arith.mulf %499, %446 : vector<8x256xf32>
    %501 = arith.addf %497, %500 : vector<8x256xf32>
    %502 = arith.addf %440, %501 : vector<8x256xf32>
    %c48_i32 = arith.constant 48 : i32
    %503 = tpu.dynamic_rotate %454 by %c48_i32 dim 1 : vector<8x256xf32>, i32 -> vector<8x256xf32>
    %c0_58 = arith.constant 0 : index
    %c0_59 = arith.constant 0 : index
    %504 = vector.load %arg7[%c0_58, %c0_59] : memref<7x256xf32, #tpu.memory_space<vmem>>, vector<1x256xf32>
    %505 = vector.broadcast %504 : vector<1x256xf32> to vector<8x256xf32>
    %506 = arith.mulf %503, %505 : vector<8x256xf32>
    %c32_i32 = arith.constant 32 : i32
    %507 = tpu.dynamic_rotate %462 by %c32_i32 dim 1 : vector<8x256xf32>, i32 -> vector<8x256xf32>
    %c1_60 = arith.constant 1 : index
    %c0_61 = arith.constant 0 : index
    %508 = vector.load %arg7[%c1_60, %c0_61] : memref<7x256xf32, #tpu.memory_space<vmem>>, vector<1x256xf32>
    %509 = vector.broadcast %508 : vector<1x256xf32> to vector<8x256xf32>
    %510 = arith.mulf %507, %509 : vector<8x256xf32>
    %c16_i32 = arith.constant 16 : i32
    %511 = tpu.dynamic_rotate %470 by %c16_i32 dim 1 : vector<8x256xf32>, i32 -> vector<8x256xf32>
    %c2_62 = arith.constant 2 : index
    %c0_63 = arith.constant 0 : index
    %512 = vector.load %arg7[%c2_62, %c0_63] : memref<7x256xf32, #tpu.memory_space<vmem>>, vector<1x256xf32>
    %513 = vector.broadcast %512 : vector<1x256xf32> to vector<8x256xf32>
    %514 = arith.mulf %511, %513 : vector<8x256xf32>
    %c3_64 = arith.constant 3 : index
    %c0_65 = arith.constant 0 : index
    %515 = vector.load %arg7[%c3_64, %c0_65] : memref<7x256xf32, #tpu.memory_space<vmem>>, vector<1x256xf32>
    %516 = vector.broadcast %515 : vector<1x256xf32> to vector<8x256xf32>
    %517 = arith.mulf %478, %516 : vector<8x256xf32>
    %c240_i32 = arith.constant 240 : i32
    %518 = tpu.dynamic_rotate %486 by %c240_i32 dim 1 : vector<8x256xf32>, i32 -> vector<8x256xf32>
    %c4_66 = arith.constant 4 : index
    %c0_67 = arith.constant 0 : index
    %519 = vector.load %arg7[%c4_66, %c0_67] : memref<7x256xf32, #tpu.memory_space<vmem>>, vector<1x256xf32>
    %520 = vector.broadcast %519 : vector<1x256xf32> to vector<8x256xf32>
    %521 = arith.mulf %518, %520 : vector<8x256xf32>
    %c224_i32 = arith.constant 224 : i32
    %522 = tpu.dynamic_rotate %494 by %c224_i32 dim 1 : vector<8x256xf32>, i32 -> vector<8x256xf32>
    %c5_68 = arith.constant 5 : index
    %c0_69 = arith.constant 0 : index
    %523 = vector.load %arg7[%c5_68, %c0_69] : memref<7x256xf32, #tpu.memory_space<vmem>>, vector<1x256xf32>
    %524 = vector.broadcast %523 : vector<1x256xf32> to vector<8x256xf32>
    %525 = arith.mulf %522, %524 : vector<8x256xf32>
    %c208_i32 = arith.constant 208 : i32
    %526 = tpu.dynamic_rotate %502 by %c208_i32 dim 1 : vector<8x256xf32>, i32 -> vector<8x256xf32>
    %c6_70 = arith.constant 6 : index
    %c0_71 = arith.constant 0 : index
    %527 = vector.load %arg7[%c6_70, %c0_71] : memref<7x256xf32, #tpu.memory_space<vmem>>, vector<1x256xf32>
    %528 = vector.broadcast %527 : vector<1x256xf32> to vector<8x256xf32>
    %529 = arith.mulf %526, %528 : vector<8x256xf32>
    %c0_72 = arith.constant 0 : index
    %530 = memref.load %arg9[%c0_72] : memref<1xf32, #tpu.memory_space<smem>>
    %531 = arith.addf %506, %510 : vector<8x256xf32>
    %532 = arith.addf %514, %517 : vector<8x256xf32>
    %533 = arith.addf %531, %532 : vector<8x256xf32>
    %534 = vector.broadcast %530 : f32 to vector<8x256xf32>
    %535 = arith.addf %534, %533 : vector<8x256xf32>
    %536 = arith.addf %521, %525 : vector<8x256xf32>
    %537 = arith.addf %536, %529 : vector<8x256xf32>
    %538 = arith.addf %535, %537 : vector<8x256xf32>
    %cst_73 = arith.constant 0.000000e+00 : f32
    %539 = vector.broadcast %cst_73 : f32 to vector<8x256xf32>
    %540 = arith.subf %539, %538 : vector<8x256xf32>
    %541 = math.exp %540 : vector<8x256xf32>
    %cst_74 = arith.constant 1.000000e+00 : f32
    %542 = vector.broadcast %cst_74 : f32 to vector<8x256xf32>
    %543 = arith.addf %542, %541 : vector<8x256xf32>
    %cst_75 = arith.constant 1.000000e+00 : f32
    %544 = vector.broadcast %cst_75 : f32 to vector<8x256xf32>
    %545 = arith.divf %544, %543 : vector<8x256xf32>
    %c0_76 = arith.constant 0 : index
    %c0_77 = arith.constant 0 : index
    %c0_78 = arith.constant 0 : index
    %546 = vector.load %arg1[%c0_76, %c0_77, %c0_78] : memref<8x32x256xf32, #tpu.memory_space<vmem>>, vector<8x32x256xf32>
    %547 = vector.broadcast %43 : vector<8x32x1xf32> to vector<8x32x256xf32>
    %548 = arith.mulf %546, %547 : vector<8x32x256xf32>
    %549 = vector.shape_cast %545 : vector<8x256xf32> to vector<8x1x256xf32>
    %550 = vector.broadcast %549 : vector<8x1x256xf32> to vector<8x32x256xf32>
    %551 = arith.mulf %548, %550 : vector<8x32x256xf32>
    %c0_79 = arith.constant 0 : index
    %c0_80 = arith.constant 0 : index
    %c0_81 = arith.constant 0 : index
    %552 = vector.load %arg10[%c0_79, %c0_80, %c0_81] : memref<8x32x256xf32, #tpu.memory_space<vmem>>, vector<8x32x256xf32>
    tpu.vector_store %arg10[%c0_79, %c0_80, %c0_81], %551 {strides = array<i32>} : memref<8x32x256xf32, #tpu.memory_space<vmem>>, vector<8x32x256xf32>,
    return
  }
  func.func @transform_0(%arg0: i32) -> (i32, i32, i32) {
    %c0_i32 = arith.constant 0 : i32
    %c0_i32_0 = arith.constant 0 : i32
    %c0_i32_1 = arith.constant 0 : i32
    return %arg0, %c0_i32, %c0_i32_0 : i32, i32, i32
  }
  func.func @transform_1(%arg0: i32) -> (i32, i32) {
    %c0_i32 = arith.constant 0 : i32
    %c0_i32_0 = arith.constant 0 : i32
    %c0_i32_1 = arith.constant 0 : i32
    return %c0_i32, %c0_i32_0 : i32, i32
  }
  func.func @transform_2(%arg0: i32) -> i32 {
    %c0_i32 = arith.constant 0 : i32
    %c0_i32_0 = arith.constant 0 : i32
    return %c0_i32 : i32
  }
  func.func @transform_3(%arg0: i32) -> (i32, i32) {
    %c0_i32 = arith.constant 0 : i32
    %c0_i32_0 = arith.constant 0 : i32
    %c0_i32_1 = arith.constant 0 : i32
    return %c0_i32, %c0_i32_0 : i32, i32
  }
  func.func @transform_4(%arg0: i32) -> (i32, i32) {
    %c0_i32 = arith.constant 0 : i32
    %c0_i32_0 = arith.constant 0 : i32
    %c0_i32_1 = arith.constant 0 : i32
    return %c0_i32, %c0_i32_0 : i32, i32
  }
  func.func @transform_5(%arg0: i32) -> (i32, i32) {
    %c0_i32 = arith.constant 0 : i32
    %c0_i32_0 = arith.constant 0 : i32
    %c0_i32_1 = arith.constant 0 : i32
    return %c0_i32, %c0_i32_0 : i32, i32
  }
  func.func @transform_6(%arg0: i32) -> (i32, i32) {
    %c0_i32 = arith.constant 0 : i32
    %c0_i32_0 = arith.constant 0 : i32
    %c0_i32_1 = arith.constant 0 : i32
    return %c0_i32, %c0_i32_0 : i32, i32
  }
  func.func @transform_7(%arg0: i32) -> i32 {
    %c0_i32 = arith.constant 0 : i32
    %c0_i32_0 = arith.constant 0 : i32
    return %c0_i32 : i32
  }
  func.func @transform_8(%arg0: i32) -> i32 {
    %c0_i32 = arith.constant 0 : i32
    %c0_i32_0 = arith.constant 0 : i32
    return %c0_i32 : i32
  }
  func.func @transform_9(%arg0: i32) -> (i32, i32, i32) {
    %c0_i32 = arith.constant 0 : i32
    %c0_i32_0 = arith.constant 0 : i32
    %c0_i32_1 = arith.constant 0 : i32
    return %arg0, %c0_i32, %c0_i32_0 : i32, i32, i32
  }
}

</mosaic_0001>

<bundles_post_ra>
// kernel: tpu_custom_call.1
= control target key start
LH: loop header
LB: loop body
LE: loop exit
PB: predicated region body
PF: predicated region fallthrough
CT: control target
= control target key end

     0   :  { %s7151_s0 = inlined_call_operand.hbm [shape: f32[16,32,256], index: 0, kind: input, shape index: {}]   ;;  %s7152_s1 = inlined_call_operand.vmem [shape: f32[2,32], index: 1, kind: input, shape index: {}]   ;;  %s7153_s2 = inlined_call_operand.hbm [shape: f32[2], index: 2, kind: input, shape index: {}]   ;;  %s7154_s3 = inlined_call_operand.vmem [shape: f32[2,32], index: 3, kind: input, shape index: {}]   ;;  %s7155_s4 = inlined_call_operand.vmem [shape: f32[1,32], index: 4, kind: input, shape index: {}]   ;;  %s7156_s5 = inlined_call_operand.hbm [shape: f32[7,256], index: 5, kind: input, shape index: {}]   ;;  %s7157_s6 = inlined_call_operand.hbm [shape: f32[7,256], index: 6, kind: input, shape index: {}]   ;;  %s7158_s7 = inlined_call_operand.vmem [shape: f32[98], index: 7, kind: input, shape index: {}]   ;;  %s7159_s8 = inlined_call_operand.<no memory space> [shape: f32[1], index: 8, kind: input, shape index: {}]   ;;  %s7160_s9 = inlined_call_operand.hbm [shape: f32[16,32,256], index: 9, kind: output, shape index: {}]  }
   0x1   :  { %7305 = sst [smem:[#allocation95_spill]] %s7151_s0 }
   0x2   :  { %7306 = sst [smem:[#allocation96_spill]] %s7152_s1 }
   0x3   :  { %7307 = sst [smem:[#allocation97_spill]] %s7153_s2 }
   0x4   :  { %7308 = sst [smem:[#allocation98_spill]] %s7154_s3 }
   0x5   :  { %7309 = sst [smem:[#allocation99_spill]] %s7155_s4 }
   0x6   :  { %7310 = sst [smem:[#allocation100_spill]] %s7156_s5 }
   0x7   :  { %7311 = sst [smem:[#allocation101_spill]] %s7157_s6 }
   0x8   :  { %7312 = sst [smem:[#allocation102_spill]] %s7158_s7 }
   0x9   :  { %7313 = sst [smem:[#allocation103_spill]] %s7160_s9 }
   0xa   :  { %14 = sst [smem:[#allocation2]] %s7159_s8 }
   0xb   :  { %15 = vsyncpa [#allocation4], 0 }
   0xc   :  { %17 = vsyncpa [#allocation4 + $0x1], 0 }
   0xd   :  { %18 = vsyncpa [#allocation6], 0 }
   0xe   :  { %19 = vsyncpa [#allocation10], 0 }
   0xf   :  { %20 = vsyncpa [#allocation7], 0 }
  0x10   :  { %21 = vsyncpa [#allocation5], 0 }
  0x11   :  { %23 = vsyncpa [#allocation5 + $0x1], 0  ;;  %s4310_s11 = smov 0   ;;  %s4312_s12 = smov 0  }
  0x12   :  { %s4314_s13 = smov 0   ;;  %s4316_s14 = smov 0  }
  0x13 LB: > { %7314 = sst [smem:[#allocation19_spill]] %s4222_s11  ;;  %s4331_s8 = sadd.s32 4294967295, %s4234_s14   ;;  %s4234_s14 = sphi %s4316_s14, %s7598_s14   ;;  %s4230_s13 = sphi %s4314_s13, %s7601_s13   ;;  %s4226_s12 = sphi %s4312_s12, %s7600_s12   ;;  %s4222_s11 = sphi %s4310_s11, %s7599_s11  }
  0x14   : > { %7315 = sst [smem:[#allocation20_spill]] %s4226_s12  ;;  %s3686_s15 = sadd.s32 4294967294, %s4234_s14  }
  0x15   : > { %7316 = sst [smem:[#allocation21_spill]] %s4230_s13  ;;  %p49_p0 = scmp.ne.s32.totalorder %s4226_s12, %s4222_s11 }
  0x16   : > { %7317 = sst [smem:[#allocation22_spill]] %s4234_s14  ;;  %p50_p1 = scmp.eq.s32.totalorder %s4331_s8, 0 }
  0x17   : > { %7318 = sst [smem:[#allocation23_spill]] %s4331_s8  ;;  %p241_p2 = scmp.eq.s32.totalorder %s4331_s8, 1 }
  0x18   : > { %p247_p3 = scmp.eq.s32.totalorder %s3686_s15, 1  ;;  %p4340_p4 = por %p50_p1, %p49_p0 }
  0x19   : > { %p3687_p5 = scmp.ge.s32.totalorder %s4234_s14, 1  ;;  %p254_p7 = scmp.lt.s32.totalorder %s4234_s14, 3 }
  0x1a   : > { %p4345_p6 = por %p247_p3, %p49_p0  ;;  %s7322_s5 = sld [smem:[#allocation100_spill]] }
  0x1b   : > { %p4353_p8 = pnand %p3687_p5, %p254_p7  ;;  %s4236_s22 = smov [#allocation9]  }
  0x1c   : > { %s7320_s17 = scalar_select %p4345_p6, 1, 0 }
  0x1d   : > { %p3832_p10 = pneg %p4353_p8  ;;  %s287_s23 = sshll.u32 %s4236_s22, 4  ;;  %s288_s23 = int_to_ptr.vmem [resolvable:$true] %s287_s23 }
  0x1e   : > { %7321 = sst [smem:[#allocation24_spill]] %s7320_s17  ;;  %s4237_s10 = smov [#allocation8]  }
  0x1f   : > { %s7324_s2 = sld [smem:[#allocation97_spill]]  ;;  %p4365_p11 = pnand %p3832_p10, %p50_p1 }
  0x20   : > { %s285_s20 = sshll.u32 %s7322_s5, 4  ;;  %s7326_s6 = sld [smem:[#allocation101_spill]]  ;;  %s286_s20 = int_to_ptr.hbm [resolvable:$true] %s285_s20 }
  0x21   : > { %3838 = dma.hbm_to_vmem [thread:$0]  (!%p4365_p11), %s286_s20, 256, %s288_s23, [#allocation10]  }
  0x22   : > { %s7327_s7 = sld [smem:[#allocation102_spill]]  ;;  %s4238_s22 = smov [#allocation11]  }
  0x23   : > { %s299_s24 = sshll.u32 %s4238_s22, 4  ;;  %s4239_s20 = smov [#allocation12]   ;;  %s300_s24 = int_to_ptr.vmem [resolvable:$true] %s299_s24 }
  0x24   : > { %s4384_s23 = sadd.s32 1, %s4234_s14   ;;  %p43_p13 = scmp.ne.s32.totalorder %s4230_s13, %s4226_s12 }
  0x25   : > { %s269_s26 = sshll.u32 %s7324_s2, 4  ;;  %7328 = sst [smem:[#allocation25_spill]] %s4384_s23  ;;  %s270_s26 = int_to_ptr.hbm [resolvable:$true] %s269_s26 }
  0x26   : > { %s297_s30 = sshll.u32 %s7326_s6, 4  ;;  %s33_s25 = ssub.s32 %s4234_s14, %s4384_s23  ;;  %s298_s30 = int_to_ptr.hbm [resolvable:$true] %s297_s30 }
  0x27   : > { %3835 = dma.hbm_to_smem (!%p4365_p11), %s270_s26, 16, %s4237_s10, [#allocation6]  }
  0x28   : > { %s309_s19 = sshll.u32 %s7327_s7, 4  ;;  %p34_p12 = scmp.eq.s32.totalorder %s33_s25, 0  ;;  %s310_s19 = int_to_ptr.vmem [resolvable:$true] %s309_s19 }
  0x29   : > { %3841 = dma.hbm_to_vmem [thread:$0]  (!%p4365_p11), %s298_s30, 256, %s300_s24, [#allocation10]  }
  0x2a   : > { %3844 = dma.vmem_to_smem (!%p4365_p11), %s310_s19, 16, %s4239_s20, [#allocation7]  }
  0x2b   : > { %s36_s26 = sadd.s32 1, %s4230_s13  ;;  %p44_p0 = scmp.eq.s32.totalorder %s4234_s14, 0 }
  0x2c   : > { %s4393_s28 = scalar_select %p34_p12, %s4230_s13, %s36_s26  }
  0x2d   : > { %p45_p3 = por %p44_p0, %p43_p13  ;;  %p4397_p5 = por %p241_p2, %p43_p13 }
  0x2e   : > { %7329 = sst [smem:[#allocation26_spill]] %s4393_s28  ;;  %p3857_p7 = scmp.lt.s32.totalorder %s4234_s14, 2 }
  0x2f   : > { %s7330_s29 = scalar_select %p4397_p5, 1, 0 }
  0x30   : > { %s323_s30 = sand.u32 1, %s4230_s13   ;;  %s3809_s10 = sshll.u32 %s4234_s14, 9 }
  0x31   : > { %7331 = sst [smem:[#allocation27_spill]] %s7330_s29  ;;  %s3693_s27 = sshll.u32 %s323_s30, 9 }
  0x32   : > { %s7332_s0 = sld [smem:[#allocation95_spill]]  ;;  %s327_s22 = scalar_lea.vmem [#allocation3], %s3693_s27 }
  0x33   : > { %s336_s24 = sshll.u32 %s327_s22, 4  ;;  %p4407_p10 = pnand %p3857_p7, %p45_p3  ;;  %s337_s24 = int_to_ptr.vmem [resolvable:$true] %s336_s24 }
  0x34   : > { %s324_s26 = scalar_lea.sflag [#allocation4], %s323_s30 }
  0x35   : > { %p4130_p11 = pneg %p4407_p10 }
  0x38   : > { %s333_s19 = scalar_lea.hbm %s7332_s0, %s3809_s10  ;;  %s4133_s15 = scalar_lea.hbm %s7332_s0, 1024 }
  0x39   : > { %s334_s20 = sshll.u32 %s333_s19, 4  ;;  %s335_s20 = int_to_ptr.hbm [resolvable:$true] %s334_s20 }
  0x3a   : > { %s4126_s2 = sshra.s32 %s335_s20, 4  ;;  %s4127_s2 = int_to_ptr.hbm [resolvable:$true] %s4126_s2 }
  0x3b   : > { %s4128_s5 = scalar_lea.hbm %s4127_s2, 512  ;;  %p4134_p0 = scmp.lt.s32.totalorder %s4127_s2, %s7332_s0 }
  0x3c   : > { %p4129_p2 = scmp.ne.s32.totalorder %s4127_s2, %s4128_s5  ;;  %p4135_p3 = scmp.lt.s32.totalorder %s4133_s15, %s4128_s5 }
  0x3e   : > { %p4131_p12 = pnand %p4130_p11, %p4129_p2  ;;  %p4136_p7 = por %p4135_p3, %p4134_p0 }
  0x40   : > { %p4132_p13 = pneg %p4131_p12 }
  0x42   : > { %p4137_p9 = pnand %p4136_p7, %p4132_p13 }
  0x44   : > { %4140 = shalt.err (!%p4137_p9)
}
  0x45   : > { %s4240_s30 = smov 256   ;;  %s4241_s22 = smov 16  }
  0x46   : > { %3848 = dma.hbm_to_vmem [thread:$0]  (!%p4407_p10), %s335_s20, 8192, %s337_s24, %s324_s26, %s4240_s30, %s4240_s30, %s4241_s22  }
  0x47   : > { %348 = sbr.rel (%p4353_p8) target bundleno = 1704 (0x6a8), region = 56 }
  0x4c   : > { %s4424_s10 = sand.u32 1, %s4226_s12  }
  0x4d   : > { %7334 = sst [smem:[#allocation28_spill]] %s4424_s10  ;;  %s7248_s2 = sshll.u32 %s4424_s10, 9 }
  0x4e   : > { %s351_s5 = scalar_lea.sflag [#allocation4], %s4424_s10  ;;  %s4430_s27 = scalar_lea.vmem [#allocation3], %s7248_s2 }
  0x4f   : > { %7335 = sst [smem:[#allocation29_spill]] %s4430_s27 }
  0x50   : > { %4201 = dma.done.wait (%p4340_p4), %s351_s5, 8192  }
  0x51   : > { %4203 = vsyncadd (%p4340_p4), %s351_s5, 4294959104 }
  0x52   : > { %4205 = dma.done.wait (%p50_p1), [#allocation6], 16  }
  0x53   : > { %4207 = vsyncadd (%p50_p1), [#allocation6], 4294967280 }
  0x54   : > { %4209 = dma.done.wait (%p50_p1), [#allocation10], 512  }
  0x55   : > { %4211 = vsyncadd (%p50_p1), [#allocation10], 4294966784 }
  0x56   : > { %4213 = dma.done.wait (%p50_p1), [#allocation7], 16  }
  0x57   : > { %4215 = vsyncadd (%p50_p1), [#allocation7], 4294967280 }
  0x58   : > { %380 = sfence }
  0x59   : > { %v421_v0 = vld [vmem:[%s4430_s27 + $0x40] sm:$0xff]  ;;  %v422_v1 = vld [vmem:[%s4430_s27 + $0x48] sm:$0xff]  ;;  %v423_v9 = vld [vmem:[%s4430_s27 + $0x50] sm:$0xff]  ;;  %s7339_s1 = sld [smem:[#allocation96_spill]]  ;;  %vm809_vm1 = vcmask 130112   ;;  %vm813_vm2 = vcmask 195712  }
  0x5a   : > { %v417_v2 = vld [vmem:[%s4430_s27 + $0x20] sm:$0xff]  ;;  %v489_v3 = vadd.f32 %v422_v1, %v421_v0  ;;  %v418_v4 = vld [vmem:[%s4430_s27 + $0x28] sm:$0xff]  ;;  %v424_v10 = vld [vmem:[%s4430_s27 + $0x58] sm:$0xff]  ;;  %vm817_vm3 = vcmask 261312   ;;  %vm868_vm4 = vcmask 1041409   ;;  %vm870_vm5 = vcmask 1042434  }
  0x5b   : > { %v413_v5 = vld [vmem:[%s4430_s27] sm:$0xff]  ;;  %v414_v6 = vld [vmem:[%s4430_s27 + $0x8] sm:$0xff]  ;;  %v483_v7 = vadd.f32 %v418_v4, %v417_v2  ;;  %v419_v11 = vld [vmem:[%s4430_s27 + $0x30] sm:$0xff]  ;;  %v492_v15 = vadd.f32 %v424_v10, %v423_v9  ;;  %v616_v2 = vlaneseq  ;;  %vm872_vm6 = vcmask 1043459   ;;  %s887_s25 = sld [smem:[#allocation8]]  ;;  %s4244_s16 = smov 2  }
  0x5c   : > { %v477_v8 = vadd.f32 %v414_v6, %v413_v5  ;;  %490 = vadd.xlane.f32.xlu2 %v489_v3  ;;  %v420_v12 = vld [vmem:[%s4430_s27 + $0x38] sm:$0xff]  ;;  %v415_v13 = vld [vmem:[%s4430_s27 + $0x10] sm:$0xff]  ;;  %v429_v18 = vld [vmem:[%s4430_s27 + $0x80] sm:$0xff]  ;;  %vm874_vm7 = vcmask 1044484   ;;  %vm876_vm8 = vcmask 1045509   ;;  %vm878_vm9 = vcmask 1046534  }
  0x5d   : > { %484 = vadd.xlane.f32.xlu1 %v483_v7  ;;  %v416_v14 = vld [vmem:[%s4430_s27 + $0x18] sm:$0xff]  ;;  %v486_v16 = vadd.f32 %v420_v12, %v419_v11  ;;  %v430_v19 = vld [vmem:[%s4430_s27 + $0x88] sm:$0xff]  ;;  %v427_v20 = vld [vmem:[%s4430_s27 + $0x70] sm:$0xff]  ;;  %v4497_v6 = vshrl.u32 %v616_v2, 7  ;;  %vm880_vm10 = vcmask 1047559   ;;  %vm883_vm11 = vcmask 261120  }
  0x5e   : > { %478 = vadd.xlane.f32.xlu0 %v477_v8  ;;  %v480_v17 = vadd.f32 %v416_v14, %v415_v13  ;;  %v428_v21 = vld [vmem:[%s4430_s27 + $0x78] sm:$0xff]  ;;  %v425_v22 = vld [vmem:[%s4430_s27 + $0x60] sm:$0xff]  ;;  %v426_v23 = vld [vmem:[%s4430_s27 + $0x68] sm:$0xff]  ;;  %v501_v24 = vadd.f32 %v430_v19, %v429_v18  ;;  %s3704_s26 = sld [smem:[#allocation8 + $0x1]]  ;;  %s4245_s21 = smov 3  }
  0x5f   : > { %v498_v25 = vadd.f32 %v428_v21, %v427_v20  ;;  %v495_v26 = vadd.f32 %v426_v23, %v425_v22  ;;  %v435_v27 = vld [vmem:[%s4430_s27 + $0xb0] sm:$0xff]  ;;  %v436_v28 = vld [vmem:[%s4430_s27 + $0xb8] sm:$0xff]  ;;  %v433_v29 = vld [vmem:[%s4430_s27 + $0xa0] sm:$0xff]  ;;  %7336 = vst [vmem:[#allocation30_spill] sm:$0xff] %v4497_v6  ;;  %3916 = vset.pattern.permute.xlu2 %v4497_v6  ;;  %v4501_v10 = vadd.s32 8, %v4497_v6  ;;  %v4504_v11 = vadd.s32 16, %v4497_v6 }
  0x60   : > { %v434_v30 = vld [vmem:[%s4430_s27 + $0xa8] sm:$0xff]  ;;  %v431_v31 = vld [vmem:[%s4430_s27 + $0x90] sm:$0xff]  ;;  %v432_v32 = vld [vmem:[%s4430_s27 + $0x98] sm:$0xff]  ;;  %v510_v33 = vadd.f32 %v436_v28, %v435_v27  ;;  %s7358_s3 = sld [smem:[#allocation98_spill]]  ;;  %s4246_s24 = smov 127  }
  0x61   : > { %v507_v34 = vadd.f32 %v434_v30, %v433_v29  ;;  %v504_v35 = vadd.f32 %v432_v32, %v431_v31  ;;  %v441_v36 = vld [vmem:[%s4430_s27 + $0xe0] sm:$0xff]  ;;  %v442_v37 = vld [vmem:[%s4430_s27 + $0xe8] sm:$0xff]  ;;  %v439_v38 = vld [vmem:[%s4430_s27 + $0xd0] sm:$0xff]  ;;  %7337 = vst [vmem:[#allocation31_spill] sm:$0xff] %v4501_v10  ;;  %3917 = vset.pattern.permute.xlu0 %v4501_v10  ;;  %3918 = vset.pattern.permute.xlu1 %v4504_v11  ;;  %s7359_s4 = sld [smem:[#allocation99_spill]]  ;;  %s4247_s20 = smov 1  }
  0x62   : > { %v440_v39 = vld [vmem:[%s4430_s27 + $0xd8] sm:$0xff]  ;;  %v437_v40 = vld [vmem:[%s4430_s27 + $0xc0] sm:$0xff]  ;;  %v438_v41 = vld [vmem:[%s4430_s27 + $0xc8] sm:$0xff]  ;;  %v519_v42 = vadd.f32 %v442_v37, %v441_v36  ;;  %7338 = vst [vmem:[#allocation32_spill] sm:$0xff] %v4504_v11  ;;  %v4528_v37 = vadd.s32 24, %v4497_v6  ;;  %s3746_s15 = sld [smem:[#allocation12 + $0x3]] }
  0x63   : > { %v516_v43 = vadd.f32 %v440_v39, %v439_v38  ;;  %v513_v44 = vadd.f32 %v438_v41, %v437_v40  ;;  %v447_v45 = vld [vmem:[%s4430_s27 + $0x110] sm:$0xff]  ;;  %v448_v46 = vld [vmem:[%s4430_s27 + $0x118] sm:$0xff]  ;;  %v445_v47 = vld [vmem:[%s4430_s27 + $0x100] sm:$0xff]  ;;  %s5737_s18 = sld [smem:[#allocation12 + $0xa]] }
  0x64   : > { %493 = vadd.xlane.f32.xlu2 %v492_v15  ;;  %v446_v48 = vld [vmem:[%s4430_s27 + $0x108] sm:$0xff]  ;;  %v443_v49 = vld [vmem:[%s4430_s27 + $0xf0] sm:$0xff]  ;;  %v444_v50 = vld [vmem:[%s4430_s27 + $0xf8] sm:$0xff]  ;;  %v528_v51 = vadd.f32 %v448_v46, %v447_v45  ;;  %7340 = vst [vmem:[#allocation33_spill] sm:$0xff] %v4528_v37  ;;  %s3747_s19 = sld [smem:[#allocation12 + $0x34]] }
  0x65   : > { %487 = vadd.xlane.f32.xlu1 %v486_v16  ;;  %v525_v52 = vadd.f32 %v446_v48, %v445_v47  ;;  %v522_v53 = vadd.f32 %v444_v50, %v443_v49  ;;  %v453_v54 = vld [vmem:[%s4430_s27 + $0x140] sm:$0xff]  ;;  %v454_v55 = vld [vmem:[%s4430_s27 + $0x148] sm:$0xff]  ;;  %v451_v56 = vld [vmem:[%s4430_s27 + $0x130] sm:$0xff]  ;;  %s3750_s30 = sld [smem:[#allocation12 + $0x11]] }
  0x66   : > { %481 = vadd.xlane.f32.xlu0 %v480_v17  ;;  %v452_v57 = vld [vmem:[%s4430_s27 + $0x138] sm:$0xff]  ;;  %v449_v58 = vld [vmem:[%s4430_s27 + $0x120] sm:$0xff]  ;;  %v450_v59 = vld [vmem:[%s4430_s27 + $0x128] sm:$0xff]  ;;  %v537_v60 = vadd.f32 %v454_v55, %v453_v54  ;;  %s5739_s22 = sld [smem:[#allocation12 + $0x1f]] }
  0x67   : > { %v534_v61 = vadd.f32 %v452_v57, %v451_v56  ;;  %v531_v62 = vadd.f32 %v450_v59, %v449_v58  ;;  %v459_v63 = vld [vmem:[%s4430_s27 + $0x170] sm:$0xff]  ;;  %v460_v0 = vld [vmem:[%s4430_s27 + $0x178] sm:$0xff]  ;;  %v457_v1 = vld [vmem:[%s4430_s27 + $0x160] sm:$0xff]  ;;  %v4242_v58 = vmov 256.0   ;;  %v4243_v59 = vmov 0   ;;  %s3749_s5 = sld [smem:[#allocation12 + $0x3b]] }
  0x68   : > { %v458_v3 = vld [vmem:[%s4430_s27 + $0x168] sm:$0xff]  ;;  %v455_v4 = vld [vmem:[%s4430_s27 + $0x150] sm:$0xff]  ;;  %v456_v5 = vld [vmem:[%s4430_s27 + $0x158] sm:$0xff]  ;;  %v546_v7 = vadd.f32 %v460_v0, %v459_v63  ;;  %3958 = vrcp.f32 %v4242_v58  ;;  %s5880_s2 = sld [smem:[#allocation12 + $0x7]] }
  0x69   : > { %v543_v8 = vadd.f32 %v458_v3, %v457_v1  ;;  %v540_v9 = vadd.f32 %v456_v5, %v455_v4  ;;  %v465_v12 = vld [vmem:[%s4430_s27 + $0x1a0] sm:$0xff]  ;;  %v466_v13 = vld [vmem:[%s4430_s27 + $0x1a8] sm:$0xff]  ;;  %v463_v14 = vld [vmem:[%s4430_s27 + $0x190] sm:$0xff]  ;;  %s5892_s0 = sld [smem:[#allocation12 + $0x38]] }
  0x6a   : > { %v464_v15 = vld [vmem:[%s4430_s27 + $0x198] sm:$0xff]  ;;  %v461_v16 = vld [vmem:[%s4430_s27 + $0x180] sm:$0xff]  ;;  %v462_v17 = vld [vmem:[%s4430_s27 + $0x188] sm:$0xff]  ;;  %v555_v18 = vadd.f32 %v466_v13, %v465_v12  ;;  %s5939_s6 = sld [smem:[#allocation12 + $0x3a]] }
  0x6b   : > { %v552_v19 = vadd.f32 %v464_v15, %v463_v14  ;;  %v549_v20 = vadd.f32 %v462_v17, %v461_v16  ;;  %v471_v21 = vld [vmem:[%s4430_s27 + $0x1d0] sm:$0xff]  ;;  %v472_v22 = vld [vmem:[%s4430_s27 + $0x1d8] sm:$0xff]  ;;  %v469_v23 = vld [vmem:[%s4430_s27 + $0x1c0] sm:$0xff]  ;;  %s5951_s7 = sld [smem:[#allocation12 + $0xb]] }
  0x6c   : > { %502 = vadd.xlane.f32.xlu2 %v501_v24  ;;  %v470_v24 = vld [vmem:[%s4430_s27 + $0x1c8] sm:$0xff]  ;;  %v564_v27 = vadd.f32 %v472_v22, %v471_v21  ;;  %v475_v30 = vld [vmem:[%s4430_s27 + $0x1f0] sm:$0xff]  ;;  %v476_v31 = vld [vmem:[%s4430_s27 + $0x1f8] sm:$0xff]  ;;  %s5959_s28 = sld [smem:[#allocation12 + $0x3c]] }
  0x6d   : > { %499 = vadd.xlane.f32.xlu1 %v498_v25  ;;  %v467_v25 = vld [vmem:[%s4430_s27 + $0x1b0] sm:$0xff]  ;;  %v561_v28 = vadd.f32 %v470_v24, %v469_v23  ;;  %v473_v32 = vld [vmem:[%s4430_s27 + $0x1e0] sm:$0xff]  ;;  %s5969_s13 = sld [smem:[#allocation12 + $0xc]] }
  0x6e   : > { %496 = vadd.xlane.f32.xlu0 %v495_v26  ;;  %v468_v26 = vld [vmem:[%s4430_s27 + $0x1b8] sm:$0xff]  ;;  %v3953_v36 = vld [vmem:[%s7339_s1] ss:$0 sm:$0xff]  ;;  %v4535_v38 = vld [vmem:[%s7339_s1 + $0x1] ss:$0 sm:$0xff]  ;;  %s5910_s1 = sld [smem:[#allocation12 + $0x8]] }
  0x6f   : > { %v558_v29 = vadd.f32 %v468_v26, %v467_v25  ;;  %s5982_s12 = sld [smem:[#allocation12 + $0x3d]] }
  0x70   : > { %s5990_s23 = sld [smem:[#allocation12 + $0xd]] }
  0x71   : > { %s6014_s14 = sld [smem:[#allocation12 + $0x3e]] }
  0x72   : > { %s6053_s17 = sld [smem:[#allocation12 + $0xe]] }
  0x73   : > { %s6075_s11 = sld [smem:[#allocation12 + $0x3f]] }
  0x74   : > { %511 = vadd.xlane.f32.xlu2 %v510_v33  ;;  %v474_v33 = vld [vmem:[%s4430_s27 + $0x1e8] sm:$0xff]  ;;  %s6086_s29 = sld [smem:[#allocation12 + $0xf]] }
  0x75   : > { %508 = vadd.xlane.f32.xlu1 %v507_v34  ;;  %v570_v34 = vadd.f32 %v476_v31, %v475_v30  ;;  %s6441_s9 = sld [smem:[#allocation12 + $0x5c]] }
  0x76   : > { %505 = vadd.xlane.f32.xlu0 %v504_v35  ;;  %v567_v35 = vadd.f32 %v474_v33, %v473_v32  ;;  %s6446_s8 = sld [smem:[#allocation12 + $0x2c]] }
  0x77   : > { %s6454_s10 = sld [smem:[#allocation12 + $0x5d]] }
  0x7c   : > { %520 = vadd.xlane.f32.xlu2 %v519_v42 }
  0x7d   : > { %517 = vadd.xlane.f32.xlu1 %v516_v43 }
  0x7e   : > { %514 = vadd.xlane.f32.xlu0 %v513_v44 }
  0x84   : > { %529 = vadd.xlane.f32.xlu2 %v528_v51 }
  0x85   : > { %526 = vadd.xlane.f32.xlu1 %v525_v52 }
  0x86   : > { %523 = vadd.xlane.f32.xlu0 %v522_v53 }
  0x8c   : > { %538 = vadd.xlane.f32.xlu2 %v537_v60 }
  0x8d   : > { %535 = vadd.xlane.f32.xlu1 %v534_v61 }
  0x8e   : > { %532 = vadd.xlane.f32.xlu0 %v531_v62  ;;  %v3959_v62 = vpop.eup %3958 }
  0x8f   : > { %v574_v0 = vmul.f32 256.0, %v3959_v62  ;;  %vm578_vm0 = vweird.f32 %v3959_v62 }
  0x91   : > { %v575_v3 = vsub.f32 1.0, %v574_v0 }
  0x94   : > { %547 = vadd.xlane.f32.xlu2 %v546_v7  ;;  %v576_v7 = vmul.f32 %v3959_v62, %v575_v3 }
  0x95   : > { %544 = vadd.xlane.f32.xlu1 %v543_v8 }
  0x96   : > { %541 = vadd.xlane.f32.xlu0 %v540_v9  ;;  %v577_v8 = vadd.f32 %v3959_v62, %v576_v7 }
  0x98   : > { %v4575_v13 = vsel %vm578_vm0, %v3959_v62, %v577_v8 }
  0x9c   : > { %556 = vadd.xlane.f32.xlu2 %v555_v18 }
  0x9d   : > { %553 = vadd.xlane.f32.xlu1 %v552_v19 }
  0x9e   : > { %550 = vadd.xlane.f32.xlu0 %v549_v20 }
  0xa4   : > { %565 = vadd.xlane.f32.xlu2 %v564_v27 }
  0xa5   : > { %562 = vadd.xlane.f32.xlu1 %v561_v28 }
  0xa6   : > { %559 = vadd.xlane.f32.xlu0 %v558_v29 }
  0xad   : > { %571 = vadd.xlane.f32.xlu1 %v570_v34 }
  0xae   : > { %568 = vadd.xlane.f32.xlu0 %v567_v35 }
  0xbc   : > { %620 = vperm.xlu2 %3916, %v3953_v36  }
  0xc2   : > { %626 = vperm.xlu0 %3917, %v3953_v36  }
  0xc4   : > { %3919 = vset.pattern.permute.xlu2 %v4528_v37 }
  0xc6   : > { %632 = vperm.xlu1 %3918, %v3953_v36  }
  0xca   : > { %3922 = vset.pattern.permute.xlu0 %v4497_v6 }
  0xcc   : > { %638 = vperm.xlu2 %3919, %v3953_v36  }
  0xce   : > { %3921 = vset.pattern.permute.xlu1 %v4243_v59 }
  0xcf   : > { %v491_v39 = vpop.xlane.xlu2 %490 }
  0xd0   : > { %v485_v41 = vpop.xlane.xlu1 %484  ;;  %v584_v15 = vmul.f32 %v4575_v13, %v491_v39 }
  0xd1   : > { %v479_v40 = vpop.xlane.xlu0 %478  ;;  %v4603_v29 = vmul.f32 %v4575_v13, %v485_v41 }
  0xd2   : > { %905 = vperm.xlu0 %3922, %v4535_v38   ;;  %v4581_v16 = vmul.f32 %v4575_v13, %v479_v40 }
  0xd4   : > { %3920 = vset.pattern.permute.xlu2 %v4243_v59 }
  0xd7   : > { %v4538_v42 = vpop.xlane.xlu2 %493 }
  0xd8   : > { %v488_v44 = vpop.xlane.xlu1 %487  ;;  %v4617_v39 = vmul.f32 %v4575_v13, %v4538_v42 }
  0xd9   : > { %v482_v43 = vpop.xlane.xlu0 %481  ;;  %v583_v33 = vmul.f32 %v4575_v13, %v488_v44 }
  0xda   : > { %3925 = vset.pattern.permute.xlu0 %v4528_v37  ;;  %v4591_v24 = vmul.f32 %v4575_v13, %v482_v43 }
  0xdf   : > { %v4541_v45 = vpop.xlane.xlu2 %502 }
  0xe0   : > { %v4545_v47 = vpop.xlane.xlu1 %499  ;;  %v588_v43 = vmul.f32 %v4575_v13, %v4541_v45 }
  0xe1   : > { %v4543_v46 = vpop.xlane.xlu0 %496 }
  0xe2   : > { %923 = vperm.xlu0 %3925, %v4535_v38   ;;  %v4626_v44 = vmul.f32 %v4575_v13, %v4543_v46 }
  0xe7   : > { %v4548_v48 = vpop.xlane.xlu2 %511 }
  0xe8   : > { %v4550_v50 = vpop.xlane.xlu1 %508 }
  0xe9   : > { %v506_v49 = vpop.xlane.xlu0 %505 }
  0xea   : > { %3926 = vset.pattern.permute.xlu0 %v4243_v59  ;;  %v4594_v25 = vmul.f32 %v4575_v13, %v506_v49 }
  0xef   : > { %v4552_v51 = vpop.xlane.xlu2 %520 }
  0xf0   : > { %v4554_v53 = vpop.xlane.xlu1 %517 }
  0xf1   : > { %v515_v52 = vpop.xlane.xlu0 %514 }
  0xf2   : > { %v592_v34 = vmul.f32 %v4575_v13, %v515_v52 }
  0xf7   : > { %v4556_v54 = vpop.xlane.xlu2 %529 }
  0xf8   : > { %v527_v56 = vpop.xlane.xlu1 %526 }
  0xf9   : > { %v524_v55 = vpop.xlane.xlu0 %523  ;;  %v596_v49 = vmul.f32 %v4575_v13, %v527_v56 }
  0xfa   : > { %v595_v40 = vmul.f32 %v4575_v13, %v524_v55 }
  0xff   : > { %v539_v57 = vpop.xlane.xlu2 %538 }
 0x100   : > { %v4565_v63 = vpop.xlane.xlu1 %535  ;;  %v4630_v52 = vmul.f32 %v4575_v13, %v539_v57 }
 0x101   : > { %v4560_v60 = vpop.xlane.xlu0 %532 }
 0x107   : > { %v4563_v61 = vpop.xlane.xlu2 %547 }
 0x108   : > { %v4571_v5 = vpop.xlane.xlu1 %544 }
 0x109   : > { %v4567_v1 = vpop.xlane.xlu0 %541 }
 0x10f   : > { %v4569_v4 = vpop.xlane.xlu2 %556 }
 0x110   : > { %v4577_v14 = vpop.xlane.xlu1 %553 }
 0x111   : > { %v551_v9 = vpop.xlane.xlu0 %550 }
 0x112   : > { %v604_v42 = vmul.f32 %v4575_v13, %v551_v9  ;;  %v587_v9 = vmul.f32 %v4575_v13, %v4545_v47  ;;  %v591_v47 = vmul.f32 %v4575_v13, %v4548_v48 }
 0x117   : > { %v4573_v12 = vpop.xlane.xlu2 %565 }
 0x118   : > { %v563_v21 = vpop.xlane.xlu1 %562 }
 0x119   : > { %v560_v20 = vpop.xlane.xlu0 %559  ;;  %v4634_v58 = vmul.f32 %v4575_v13, %v563_v21 }
 0x11f   : > { %v4583_v17 = vpop.permute.xlu2 %620 }
 0x120   : > { %v648_v18 = vmul.f32 %v4583_v17, %v584_v15  ;;  %v644_v19 = vmul.f32 %v4583_v17, %v4581_v16  ;;  %v572_v23 = vpop.xlane.xlu1 %571  ;;  %v656_v35 = vmul.f32 %v4583_v17, %v592_v34  ;;  %v652_v21 = vmul.f32 %v4583_v17, %v588_v43 }
 0x121   : > { %v4588_v22 = vpop.xlane.xlu0 %568 }
 0x122   : > { %721 = vperm.xlu0 %3926, %v648_v18   ;;  %709 = vperm.xlu2 %3920, %v644_v19   ;;  %v4669_v18 = vmul.f32 %v4575_v13, %v4560_v60 }
 0x127   : > { %v4607_v31 = vpop.permute.xlu2 %638 }
 0x128   : > { %v647_v36 = vmul.f32 %v4607_v31, %v583_v33  ;;  %v659_v62 = vmul.f32 %v4607_v31, %v595_v40 }
 0x134   : > { %v4596_v26 = vpop.permute.xlu0 %626 }
 0x135   : > { %v653_v27 = vmul.f32 %v4596_v26, %v4594_v25  ;;  %v645_v28 = vmul.f32 %v4596_v26, %v4591_v24  ;;  %v649_v41 = vmul.f32 %v4596_v26, %v4617_v39 }
 0x137   : > { %736 = vperm.xlu0 %3926, %v653_v27   ;;  %712 = vperm.xlu1 %3921, %v645_v28   ;;  %v4676_v27 = vmul.f32 %v4575_v13, %v4550_v50  ;;  %v4682_v28 = vmul.f32 %v4575_v13, %v4567_v1  ;;  %v611_v50 = vmul.f32 %v4575_v13, %v572_v23 }
 0x138   : > { %v4605_v30 = vpop.permute.xlu1 %632  ;;  %v655_v1 = vmul.f32 %v4607_v31, %v591_v47 }
 0x139   : > { %v646_v32 = vmul.f32 %v4605_v30, %v4603_v29  ;;  %v650_v45 = vmul.f32 %v4605_v30, %v4626_v44  ;;  %v662_v19 = vmul.f32 %v4605_v30, %v4669_v18  ;;  %v654_v60 = vmul.f32 %v4605_v30, %v4676_v27 }
 0x13a   : > { %v665_v48 = vmul.f32 %v4596_v26, %v4682_v28 }
 0x13b   : > { %715 = vperm.xlu2 %3920, %v646_v32   ;;  %v599_v32 = vmul.f32 %v4575_v13, %v4565_v63 }
 0x13f   : > { %745 = vperm.xlu0 %3926, %v656_v35   ;;  %718 = vperm.xlu1 %3921, %v647_v36   ;;  %v607_v35 = vmul.f32 %v4575_v13, %v560_v20 }
 0x143   : > { %724 = vperm.xlu2 %3920, %v649_v41  }
 0x144   : > { %v4636_v55 = vpop.permute.xlu0 %905 }
 0x145   : > { %v4642_v46 = vmul.f32 %v4636_v55, %v588_v43  ;;  %v4645_v56 = vmul.f32 %v4636_v55, %v584_v15  ;;  %v4648_v57 = vmul.f32 %v4636_v55, %v592_v34  ;;  %v4651_v0 = vmul.f32 %v4636_v55, %v596_v49 }
 0x146   : > { %v4655_v3 = vmul.f32 %v4636_v55, %v4630_v52  ;;  %v4658_v7 = vmul.f32 %v4636_v55, %v604_v42  ;;  %v4662_v8 = vmul.f32 %v4636_v55, %v4634_v58  ;;  %v651_v15 = vmul.f32 %v4607_v31, %v587_v9 }
 0x147   : > { %754 = vperm.xlu0 %3926, %v659_v62   ;;  %727 = vperm.xlu1 %3921, %v650_v45   ;;  %v603_v34 = vmul.f32 %v4575_v13, %v4563_v61 }
 0x148   : > { %7341 = vst [vmem:[#allocation34_spill] sm:$0xff] %v4662_v8 }
 0x14b   : > { %730 = vperm.xlu2 %3920, %v651_v15   ;;  %v668_v15 = vmul.f32 %v4583_v17, %v604_v42  ;;  %v663_v42 = vmul.f32 %v4607_v31, %v599_v32 }
 0x14f   : > { %763 = vperm.xlu0 %3926, %v662_v19   ;;  %733 = vperm.xlu1 %3921, %v652_v21   ;;  %v660_v21 = vmul.f32 %v4583_v17, %v596_v49 }
 0x153   : > { %739 = vperm.xlu2 %3920, %v654_v60   ;;  %v4735_v60 = vmul.f32 %v4575_v13, %v4588_v22  ;;  %v667_v22 = vmul.f32 %v4607_v31, %v603_v34 }
 0x154   : > { %v924_v36 = vpop.permute.xlu0 %923 }
 0x155   : > { %v4695_v41 = vmul.f32 %v924_v36, %v583_v33  ;;  %v4697_v43 = vmul.f32 %v924_v36, %v587_v9  ;;  %v4699_v62 = vmul.f32 %v924_v36, %v591_v47  ;;  %v4701_v63 = vmul.f32 %v924_v36, %v595_v40  ;;  %7344 = vst [vmem:[#allocation37_spill] sm:$0xff] %v4735_v60 }
 0x156   : > { %v4703_v61 = vmul.f32 %v924_v36, %v599_v32  ;;  %v4705_v20 = vmul.f32 %v924_v36, %v603_v34  ;;  %v4707_v23 = vmul.f32 %v924_v36, %v607_v35  ;;  %v4709_v45 = vmul.f32 %v924_v36, %v611_v50 }
 0x157   : > { %772 = vperm.xlu0 %3926, %v665_v48   ;;  %742 = vperm.xlu1 %3921, %v655_v1   ;;  %v4713_v33 = vmul.f32 %v4575_v13, %v4554_v53  ;;  %v4719_v40 = vmul.f32 %v4575_v13, %v4552_v51  ;;  %v4727_v53 = vmul.f32 %v4575_v13, %v4556_v54 }
 0x158   : > { %7342 = vst [vmem:[#allocation35_spill] sm:$0xff] %v4707_v23  ;;  %v671_v47 = vmul.f32 %v4607_v31, %v607_v35  ;;  %v674_v49 = vmul.f32 %v4605_v30, %v4735_v60  ;;  %v664_v54 = vmul.f32 %v4583_v17, %v4630_v52  ;;  %v4743_v35 = vmul.f32 %v4575_v13, %v4571_v5 }
 0x159   : > { %7343 = vst [vmem:[#allocation36_spill] sm:$0xff] %v4709_v45  ;;  %v657_v9 = vmul.f32 %v4596_v26, %v4713_v33  ;;  %v658_v19 = vmul.f32 %v4605_v30, %v4719_v40  ;;  %v661_v51 = vmul.f32 %v4596_v26, %v4727_v53  ;;  %v4750_v36 = vmul.f32 %v4575_v13, %v4577_v14 }
 0x15a   : > { %v666_v32 = vmul.f32 %v4605_v30, %v4743_v35  ;;  %v4756_v48 = vmul.f32 %v4575_v13, %v4569_v4  ;;  %v672_v34 = vmul.f32 %v4583_v17, %v4634_v58  ;;  %v4764_v1 = vmul.f32 %v4575_v13, %v4573_v12 }
 0x15b   : > { %748 = vperm.xlu2 %3920, %v657_v9   ;;  %7345 = vst [vmem:[#allocation38_spill] sm:$0xff] %v4750_v36  ;;  %v669_v52 = vmul.f32 %v4596_v26, %v4750_v36  ;;  %v675_v4 = vmul.f32 %v4607_v31, %v611_v50  ;;  %v4775_v12 = vand.u32 127, %v616_v2 }
 0x15c   : > { %7346 = vst [vmem:[#allocation39_spill] sm:$0xff] %v4756_v48  ;;  %v670_v5 = vmul.f32 %v4605_v30, %v4756_v48  ;;  %v673_v14 = vmul.f32 %v4596_v26, %v4764_v1 }
 0x15d   : > { %7347 = vst [vmem:[#allocation40_spill] sm:$0xff] %v4764_v1  ;;  %v4778_v58 = vadd.s32 4294967288, %v4775_v12  ;;  %v4783_v50 = vadd.s32 4294967280, %v4775_v12  ;;  %v4789_v2 = vadd.s32 4294967272, %v4775_v12 }
 0x15e   : > { %7348 = vst [vmem:[#allocation41_spill] sm:$0xff] %v4775_v12 }
 0x15f   : > { %781 = vperm.xlu0 %3926, %v668_v15   ;;  %751 = vperm.xlu1 %3921, %v658_v19  }
 0x163   : > { %757 = vperm.xlu2 %3920, %v660_v21  }
 0x167   : > { %790 = vperm.xlu0 %3926, %v671_v47   ;;  %760 = vperm.xlu1 %3921, %v661_v51  }
 0x16b   : > { %766 = vperm.xlu2 %3920, %v663_v42  }
 0x16f   : > { %799 = vperm.xlu0 %3926, %v674_v49   ;;  %769 = vperm.xlu1 %3921, %v664_v54  }
 0x173   : > { %775 = vperm.xlu2 %3920, %v666_v32   ;;  %v929_v32 = vmul.f32 %v4636_v55, %v4581_v16 }
 0x177   : > { %778 = vperm.xlu1 %3921, %v667_v22  }
 0x17b   : > { %784 = vperm.xlu2 %3920, %v669_v52  }
 0x17c   : > { %v710_v9 = vpop.permute.xlu2 %709 }
 0x17d   : > { %v806_v19 = vperm.slane %v710_v9, %v4775_v12 }
 0x17f   : > { %787 = vperm.xlu1 %3921, %v670_v5  }
 0x183   : > { %793 = vperm.xlu2 %3920, %v672_v34  }
 0x187   : > { %796 = vperm.xlu1 %3921, %v673_v14  }
 0x18b   : > { %802 = vperm.xlu2 %3920, %v675_v4  }
 0x193   : > { %3923 = vset.pattern.permute.xlu2 %v4501_v10 }
 0x194   : > { %v722_v26 = vpop.permute.xlu0 %721 }
 0x195   : > { %v716_v30 = vpop.permute.xlu2 %715 }
 0x196   : > { %v812_v51 = vperm.slane %v716_v30, %v4783_v50 }
 0x19b   : > { %911 = vperm.xlu2 %3923, %v4535_v38  }
 0x19d   : > { %v725_v15 = vpop.permute.xlu2 %724 }
 0x1a3   : > { %3924 = vset.pattern.permute.xlu2 %v4504_v11  ;;  %v819_v11 = vperm.slane %v722_v26, %v4775_v12 }
 0x1a5   : > { %v4772_v17 = vpop.permute.xlu2 %730 }
 0x1a6   : > { %v824_v23 = vperm.slane %v4772_v17, %v4789_v2 }
 0x1a9   : > { %v713_v13 = vpop.permute.xlu1 %712  ;;  %v737_v49 = vpop.permute.xlu0 %736 }
 0x1aa   : > { %v808_v31 = vperm.slane %v713_v13, %v4778_v58 }
 0x1ab   : > { %917 = vperm.xlu2 %3924, %v4535_v38  }
 0x1ac   : > { %v810_v47 = vsel %vm809_vm1, %v808_v31, %v806_v19 }
 0x1ad   : > { %v4786_v21 = vpop.permute.xlu2 %739  ;;  %v814_v54 = vsel %vm813_vm2, %v812_v51, %v810_v47 }
 0x1ae   : > { %v829_v26 = vperm.slane %v4786_v21, %v4783_v50 }
 0x1b1   : > { %v719_v42 = vpop.permute.xlu1 %718  ;;  %v746_v34 = vpop.permute.xlu0 %745 }
 0x1b2   : > { %v816_v38 = vperm.slane %v719_v42, %v4789_v2 }
 0x1b3   : > { %3927 = vset.pattern.permute.xlu2 %v4243_v59 }
 0x1b4   : > { %v4798_v22 = vsel %vm817_vm3, %v816_v38, %v814_v54  ;;  %994 = vperm.xlu2 %3927, %v929_v32   ;;  %v820_v32 = vperm.slane %v725_v15, %v4778_v58  ;;  %v827_v15 = vperm.slane %v737_v49, %v4778_v58 }
 0x1b5   : > { %v749_v52 = vpop.permute.xlu2 %748 }
 0x1b6   : > { %v834_v8 = vperm.slane %v749_v52, %v4778_v58  ;;  %v821_v1 = vsel %vm809_vm1, %v820_v32, %v819_v11 }
 0x1b9   : > { %v728_v5 = vpop.permute.xlu1 %727  ;;  %v755_v9 = vpop.permute.xlu0 %754 }
 0x1ba   : > { %v822_v37 = vperm.slane %v728_v5, %v4783_v50  ;;  %v833_v5 = vperm.slane %v746_v34, %v4775_v12 }
 0x1bc   : > { %v835_v49 = vsel %vm809_vm1, %v834_v8, %v833_v5 }
 0x1bd   : > { %v758_v14 = vpop.permute.xlu2 %757 }
 0x1c1   : > { %v734_v4 = vpop.permute.xlu1 %733  ;;  %v764_v31 = vpop.permute.xlu0 %763 }
 0x1c2   : > { %v826_v45 = vperm.slane %v734_v4, %v4775_v12  ;;  %v840_v4 = vperm.slane %v758_v14, %v4775_v12  ;;  %v838_v14 = vperm.slane %v755_v9, %v4789_v2 }
 0x1c4   : > { %v828_v11 = vsel %vm809_vm1, %v827_v15, %v826_v45 }
 0x1c5   : > { %v4801_v30 = vpop.permute.xlu2 %766 }
 0x1c9   : > { %v743_v13 = vpop.permute.xlu1 %742  ;;  %v773_v16 = vpop.permute.xlu0 %772 }
 0x1ca   : > { %v831_v32 = vperm.slane %v743_v13, %v4789_v2  ;;  %v848_v48 = vperm.slane %v773_v16, %v4778_v58 }
 0x1cd   : > { %v776_v19 = vpop.permute.xlu2 %775 }
 0x1d1   : > { %v752_v47 = vpop.permute.xlu1 %751  ;;  %v782_v38 = vpop.permute.xlu0 %781 }
 0x1d2   : > { %v836_v52 = vperm.slane %v752_v47, %v4783_v50  ;;  %v843_v47 = vperm.slane %v764_v31, %v4783_v50  ;;  %v854_v8 = vperm.slane %v782_v38, %v4775_v12 }
 0x1d4   : > { %v837_v13 = vsel %vm813_vm2, %v836_v52, %v835_v49 }
 0x1d5   : > { %v785_v55 = vpop.permute.xlu2 %784 }
 0x1d6   : > { %v855_v21 = vperm.slane %v785_v55, %v4778_v58 }
 0x1d8   : > { %v856_v16 = vsel %vm809_vm1, %v855_v21, %v854_v8 }
 0x1d9   : > { %v761_v51 = vpop.permute.xlu1 %760  ;;  %v791_v6 = vpop.permute.xlu0 %790 }
 0x1da   : > { %v841_v60 = vperm.slane %v761_v51, %v4778_v58  ;;  %v823_v51 = vsel %vm813_vm2, %v822_v37, %v821_v1  ;;  %v830_v1 = vsel %vm813_vm2, %v829_v26, %v828_v11  ;;  %v839_v26 = vsel %vm817_vm3, %v838_v14, %v837_v13 }
 0x1db   : > { %v825_v45 = vsel %vm817_vm3, %v824_v23, %v823_v51  ;;  %v832_v55 = vsel %vm817_vm3, %v831_v32, %v830_v1  ;;  %v850_v23 = vperm.slane %v776_v19, %v4783_v50  ;;  %v859_v19 = vperm.slane %v791_v6, %v4789_v2 }
 0x1dc   : > { %v842_v34 = vsel %vm809_vm1, %v841_v60, %v840_v4  ;;  %v869_v15 = vsel %vm868_vm4, %v825_v45, %v4798_v22 }
 0x1dd   : > { %v4803_v54 = vpop.permute.xlu2 %793  ;;  %v844_v60 = vsel %vm813_vm2, %v843_v47, %v842_v34  ;;  %v871_v5 = vsel %vm870_vm5, %v832_v55, %v869_v15 }
 0x1de   : > { %v873_v11 = vsel %vm872_vm6, %v839_v26, %v871_v5 }
 0x1e1   : > { %v770_v42 = vpop.permute.xlu1 %769 }
 0x1e2   : > { %v847_v17 = vperm.slane %v770_v42, %v4775_v12 }
 0x1e4   : > { %v849_v9 = vsel %vm809_vm1, %v848_v48, %v847_v17  ;;  %v800_v48 = vpop.permute.xlu0 %799 }
 0x1e5   : > { %v4809_v10 = vpop.permute.xlu2 %802  ;;  %v851_v4 = vsel %vm813_vm2, %v850_v23, %v849_v9  ;;  %v864_v32 = vperm.slane %v800_v48, %v4783_v50 }
 0x1e6   : > { %v866_v6 = vperm.slane %v4809_v10, %v4789_v2 }
 0x1e9   : > { %v779_v59 = vpop.permute.xlu1 %778 }
 0x1ea   : > { %v852_v31 = vperm.slane %v779_v59, %v4789_v2 }
 0x1ec   : > { %v853_v22 = vsel %vm817_vm3, %v852_v31, %v851_v4 }
 0x1f1   : > { %v788_v36 = vpop.permute.xlu1 %787 }
 0x1f2   : > { %v857_v37 = vperm.slane %v788_v36, %v4783_v50  ;;  %v845_v36 = vperm.slane %v4801_v30, %v4789_v2 }
 0x1f4   : > { %v858_v59 = vsel %vm813_vm2, %v857_v37, %v856_v16  ;;  %v846_v30 = vsel %vm817_vm3, %v845_v36, %v844_v60 }
 0x1f5   : > { %v4841_v42 = vpop.permute.xlu2 %911  ;;  %v860_v17 = vsel %vm817_vm3, %v859_v19, %v858_v59  ;;  %v875_v21 = vsel %vm874_vm7, %v846_v30, %v873_v11 }
 0x1f6   : > { %v930_v38 = vmul.f32 %v4841_v42, %v4591_v24  ;;  %v861_v24 = vperm.slane %v4803_v54, %v4775_v12  ;;  %v877_v34 = vsel %vm876_vm8, %v853_v22, %v875_v21  ;;  %v934_v13 = vmul.f32 %v4841_v42, %v4617_v39 }
 0x1f7   : > { %v879_v47 = vsel %vm878_vm9, %v860_v17, %v877_v34  ;;  %v938_v55 = vmul.f32 %v4841_v42, %v4594_v25  ;;  %v946_v25 = vmul.f32 %v4841_v42, %v4727_v53 }
 0x1f8   : > { %997 = vperm.xlu2 %3927, %v930_v38  }
 0x1f9   : > { %v797_v52 = vpop.permute.xlu1 %796 }
 0x1fa   : > { %v862_v51 = vperm.slane %v797_v52, %v4778_v58 }
 0x1fc   : > { %v863_v49 = vsel %vm809_vm1, %v862_v51, %v861_v24 }
 0x1fd   : > { %v865_v54 = vsel %vm813_vm2, %v864_v32, %v863_v49 }
 0x1fe   : > { %v867_v14 = vsel %vm817_vm3, %v866_v6, %v865_v54 }
 0x1ff   : > { %v881_v37 = vsel %vm880_vm10, %v867_v14, %v879_v47 }
 0x200   : > { %v884_v45 = vsel %vm883_vm11, %v881_v37, 0.0  ;;  %1003 = vperm.xlu2 %3927, %v4695_v41   ;;  %v7350_v41 = vld [vmem:[#allocation38_spill] sm:$0xff] }
 0x201   : > { %885 = vadd.xlane.f32.xlu1 %v884_v45 }
 0x205   : > { %v918_v10 = vpop.permute.xlu2 %917 }
 0x206   : > { %v931_v1 = vmul.f32 %v918_v10, %v4603_v29  ;;  %v935_v8 = vmul.f32 %v918_v10, %v4626_v44  ;;  %v939_v29 = vmul.f32 %v918_v10, %v4676_v27  ;;  %v943_v39 = vmul.f32 %v918_v10, %v4719_v40  ;;  %v7357_v40 = vld [vmem:[#allocation36_spill] sm:$0xff] }
 0x207   : > { %v942_v44 = vmul.f32 %v4841_v42, %v4713_v33  ;;  %v7356_v33 = vld [vmem:[#allocation30_spill] sm:$0xff] }
 0x208   : > { %1000 = vperm.xlu0 %3926, %v931_v1   ;;  %1009 = vperm.xlu2 %3927, %v934_v13  }
 0x210   : > { %1012 = vperm.xlu0 %3926, %v935_v8   ;;  %1015 = vperm.xlu2 %3927, %v4697_v43   ;;  %v7351_v43 = vld [vmem:[#allocation35_spill] sm:$0xff] }
 0x218   : > { %1018 = vperm.xlu0 %3926, %v4642_v46   ;;  %1021 = vperm.xlu2 %3927, %v938_v55   ;;  %v947_v46 = vmul.f32 %v918_v10, %v4669_v18  ;;  %v7349_v18 = vld [vmem:[#allocation39_spill] sm:$0xff] }
 0x219   : > { %v955_v27 = vmul.f32 %v918_v10, %v7349_v18 }
 0x21a   : > { %1006 = vperm.xlu1 %3921, %v4645_v56   ;;  %v950_v56 = vmul.f32 %v4841_v42, %v4682_v28 }
 0x220   : > { %1027 = vperm.xlu0 %3926, %v4699_v62   ;;  %1030 = vperm.xlu2 %3927, %v4648_v57   ;;  %v951_v57 = vmul.f32 %v918_v10, %v4743_v35  ;;  %v7353_v62 = vld [vmem:[#allocation37_spill] sm:$0xff] }
 0x222   : > { %1024 = vperm.xlu1 %3921, %v939_v29  }
 0x228   : > { %1036 = vperm.xlu0 %3926, %v943_v39   ;;  %1039 = vperm.xlu2 %3927, %v4701_v63   ;;  %v959_v63 = vmul.f32 %v918_v10, %v7353_v62 }
 0x22a   : > { %1033 = vperm.xlu1 %3921, %v942_v44  }
 0x230   : > { %1045 = vperm.xlu0 %3926, %v946_v25   ;;  %1048 = vperm.xlu2 %3927, %v947_v46  }
 0x232   : > { %1042 = vperm.xlu1 %3921, %v4651_v0   ;;  %v954_v0 = vmul.f32 %v4841_v42, %v7350_v41 }
 0x238   : > { %1054 = vperm.xlu0 %3926, %v4655_v3   ;;  %1057 = vperm.xlu2 %3927, %v950_v56   ;;  %v7352_v3 = vld [vmem:[#allocation40_spill] sm:$0xff] }
 0x239   : > { %v958_v28 = vmul.f32 %v4841_v42, %v7352_v3 }
 0x23a   : > { %1051 = vperm.xlu1 %3921, %v4703_v61   ;;  %v7354_v61 = vld [vmem:[#allocation34_spill] sm:$0xff] }
 0x240   : > { %1063 = vperm.xlu0 %3926, %v4705_v20   ;;  %1066 = vperm.xlu2 %3927, %v4658_v7   ;;  %v995_v7 = vpop.permute.xlu2 %994  ;;  %v7355_v20 = vld [vmem:[#allocation31_spill] sm:$0xff] }
 0x241   : > { %v1089_v42 = vperm.slane %v995_v7, %v4775_v12 }
 0x242   : > { %1060 = vperm.xlu1 %3921, %v951_v57  }
 0x248   : > { %1072 = vperm.xlu0 %3926, %v955_v27   ;;  %1075 = vperm.xlu2 %3927, %v7351_v43  }
 0x24a   : > { %1069 = vperm.xlu1 %3921, %v954_v0  }
 0x250   : > { %1081 = vperm.xlu0 %3926, %v958_v28   ;;  %1084 = vperm.xlu2 %3927, %v959_v63  }
 0x252   : > { %1078 = vperm.xlu1 %3921, %v7354_v61   ;;  %v998_v53 = vpop.permute.xlu2 %997 }
 0x253   : > { %v1090_v9 = vperm.slane %v998_v53, %v4778_v58 }
 0x255   : > { %v1091_v16 = vsel %vm809_vm1, %v1090_v9, %v1089_v42 }
 0x258   : > { %3949 = vset.pattern.permute.xlu0 %v7355_v20  ;;  %3928 = vset.pattern.permute.xlu2 %v7356_v33 }
 0x25a   : > { %1087 = vperm.xlu1 %3921, %v7357_v40   ;;  %v1004_v35 = vpop.permute.xlu2 %1003 }
 0x25b   : > { %v1094_v38 = vperm.slane %v1004_v35, %v4789_v2 }
 0x262   : > { %3929 = vset.pattern.permute.xlu1 %v7355_v20  ;;  %v1010_v60 = vpop.permute.xlu2 %1009 }
 0x263   : > { %v1097_v4 = vperm.slane %v1010_v60, %v4778_v58 }
 0x26a   : > { %v1016_v31 = vpop.permute.xlu2 %1015 }
 0x26b   : > { %v1101_v51 = vperm.slane %v1016_v31, %v4789_v2 }
 0x272   : > { %v1022_v48 = vpop.permute.xlu2 %1021 }
 0x273   : > { %v1104_v27 = vperm.slane %v1022_v48, %v4778_v58 }
 0x274   : > { %v4921_v5 = vpop.xlane.xlu1 %885 }
 0x27a   : > { %v1001_v36 = vpop.permute.xlu0 %1000  ;;  %v1031_v52 = vpop.permute.xlu2 %1030 }
 0x27b   : > { %v1092_v23 = vperm.slane %v1001_v36, %v4783_v50  ;;  %v1110_v57 = vperm.slane %v1031_v52, %v4775_v12 }
 0x27d   : > { %v1093_v15 = vsel %vm813_vm2, %v1092_v23, %v1091_v16 }
 0x27e   : > { %v1095_v26 = vsel %vm817_vm3, %v1094_v38, %v1093_v15 }
 0x282   : > { %v1013_v59 = vpop.permute.xlu0 %1012  ;;  %v1040_v54 = vpop.permute.xlu2 %1039 }
 0x283   : > { %v1099_v22 = vperm.slane %v1013_v59, %v4783_v50  ;;  %v1115_v3 = vperm.slane %v1040_v54, %v4789_v2 }
 0x28a   : > { %v1019_v30 = vpop.permute.xlu0 %1018  ;;  %v1049_v47 = vpop.permute.xlu2 %1048 }
 0x28b   : > { %v1103_v56 = vperm.slane %v1019_v30, %v4775_v12  ;;  %v1120_v60 = vperm.slane %v1049_v47, %v4783_v50 }
 0x28c   : > { %v1007_v19 = vpop.permute.xlu1 %1006 }
 0x28d   : > { %v1096_v24 = vperm.slane %v1007_v19, %v4775_v12  ;;  %v1105_v63 = vsel %vm809_vm1, %v1104_v27, %v1103_v56  ;;  %v3957_v56 = vld [vmem:[%s7358_s3 + $0x1] ss:$0 sm:$0xff] }
 0x28f   : > { %v1098_v11 = vsel %vm809_vm1, %v1097_v4, %v1096_v24 }
 0x290   : > { %v1100_v32 = vsel %vm813_vm2, %v1099_v22, %v1098_v11 }
 0x291   : > { %v1102_v17 = vsel %vm817_vm3, %v1101_v51, %v1100_v32 }
 0x292   : > { %v1145_v6 = vsel %vm868_vm4, %v1102_v17, %v1095_v26  ;;  %v1028_v49 = vpop.permute.xlu0 %1027  ;;  %v1058_v10 = vpop.permute.xlu2 %1057 }
 0x293   : > { %v1125_v9 = vperm.slane %v1058_v10, %v4778_v58  ;;  %v1108_v31 = vperm.slane %v1028_v49, %v4789_v2 }
 0x294   : > { %v1025_v21 = vpop.permute.xlu1 %1024 }
 0x295   : > { %v1106_v18 = vperm.slane %v1025_v21, %v4783_v50 }
 0x297   : > { %v1107_v42 = vsel %vm813_vm2, %v1106_v18, %v1105_v63 }
 0x298   : > { %v1109_v30 = vsel %vm817_vm3, %v1108_v31, %v1107_v42 }
 0x29a   : > { %v1037_v34 = vpop.permute.xlu0 %1036  ;;  %v1067_v29 = vpop.permute.xlu2 %1066 }
 0x29b   : > { %v1131_v61 = vperm.slane %v1067_v29, %v4775_v12  ;;  %v1113_v7 = vperm.slane %v1037_v34, %v4783_v50 }
 0x29c   : > { %v1034_v14 = vpop.permute.xlu1 %1033 }
 0x29d   : > { %v1111_v25 = vperm.slane %v1034_v14, %v4778_v58 }
 0x29f   : > { %v1112_v28 = vsel %vm809_vm1, %v1111_v25, %v1110_v57  ;;  %v3956_v25 = vld [vmem:[%s7359_s4] ss:$0 sm:$0xff]  ;;  %s5930_s4 = sld [smem:[#allocation12 + $0x9]] }
 0x2a0   : > { %v1114_v36 = vsel %vm813_vm2, %v1113_v7, %v1112_v28 }
 0x2a1   : > { %v1116_v4 = vsel %vm817_vm3, %v1115_v3, %v1114_v36 }
 0x2a2   : > { %v1046_v37 = vpop.permute.xlu0 %1045  ;;  %v1076_v46 = vpop.permute.xlu2 %1075 }
 0x2a3   : > { %v1118_v41 = vperm.slane %v1046_v37, %v4778_v58  ;;  %v1136_v11 = vperm.slane %v1076_v46, %v4789_v2 }
 0x2a4   : > { %v1043_v45 = vpop.permute.xlu1 %1042 }
 0x2a5   : > { %v1117_v0 = vperm.slane %v1043_v45, %v4775_v12 }
 0x2a7   : > { %v1119_v23 = vsel %vm809_vm1, %v1118_v41, %v1117_v0 }
 0x2a8   : > { %v1121_v24 = vsel %vm813_vm2, %v1120_v60, %v1119_v23  ;;  %v7360_v23 = vld [vmem:[#allocation33_spill] sm:$0xff] }
 0x2aa   : > { %v1055_v1 = vpop.permute.xlu0 %1054  ;;  %v1085_v52 = vpop.permute.xlu2 %1084 }
 0x2ab   : > { %v1124_v62 = vperm.slane %v1055_v1, %v4775_v12  ;;  %v1141_v21 = vperm.slane %v1085_v52, %v4783_v50  ;;  %v1864_v52 = vld [vmem:[%s4430_s27 + $0x28] sm:$0xff] }
 0x2ac   : > { %v1052_v13 = vpop.permute.xlu1 %1051 }
 0x2ad   : > { %v1122_v16 = vperm.slane %v1052_v13, %v4789_v2  ;;  %v1126_v15 = vsel %vm809_vm1, %v1125_v9, %v1124_v62 }
 0x2af   : > { %v1123_v32 = vsel %vm817_vm3, %v1122_v16, %v1121_v24  ;;  %v7361_v16 = vld [vmem:[#allocation32_spill] sm:$0xff] }
 0x2b2   : > { %v1064_v8 = vpop.permute.xlu0 %1063 }
 0x2b3   : > { %v1129_v22 = vperm.slane %v1064_v8, %v4789_v2  ;;  %v888_v8 = vstv %s887_s25  ;;  %s4248_s25 = smov 126  }
 0x2b4   : > { %v1061_v55 = vpop.permute.xlu1 %1060 }
 0x2b5   : > { %v1127_v40 = vperm.slane %v1061_v55, %v4783_v50  ;;  %v889_v55 = vadd.f32 %v888_v8, %v4921_v5 }
 0x2b7   : > { %v1128_v19 = vsel %vm813_vm2, %v1127_v40, %v1126_v15  ;;  %v890_v29 = vmax.f32 %v889_v55, 0.0 }
 0x2b8   : > { %v1130_v17 = vsel %vm817_vm3, %v1129_v22, %v1128_v19  ;;  %v1384_v19 = vld [vmem:[%s4430_s27 + $0x8] sm:$0xff] }
 0x2ba   : > { %v1073_v39 = vpop.permute.xlu0 %1072 }
 0x2bb   : > { %v1134_v26 = vperm.slane %v1073_v39, %v4783_v50  ;;  %v1157_v39 = vstv %s3704_s26  ;;  %s4249_s26 = smov 125  }
 0x2bc   : > { %v1070_v44 = vpop.permute.xlu1 %1069 }
 0x2bd   : > { %v1132_v43 = vperm.slane %v1070_v44, %v4778_v58 }
 0x2bf   : > { %v1133_v38 = vsel %vm809_vm1, %v1132_v43, %v1131_v61 }
 0x2c0   : > { %v1135_v51 = vsel %vm813_vm2, %v1134_v26, %v1133_v38 }
 0x2c1   : > { %v1137_v14 = vsel %vm817_vm3, %v1136_v11, %v1135_v51 }
 0x2c2   : > { %v1082_v53 = vpop.permute.xlu0 %1081 }
 0x2c3   : > { %v1139_v48 = vperm.slane %v1082_v53, %v4778_v58  ;;  %v1146_v58 = vsel %vm870_vm5, %v1109_v30, %v1145_v6  ;;  %v1383_v30 = vld [vmem:[%s4430_s27] sm:$0xff] }
 0x2c4   : > { %v1079_v35 = vpop.permute.xlu1 %1078  ;;  %v1147_v54 = vsel %vm872_vm6, %v1116_v4, %v1146_v58  ;;  %v1863_v4 = vld [vmem:[%s4430_s27 + $0x20] sm:$0xff] }
 0x2c5   : > { %v1138_v59 = vperm.slane %v1079_v35, %v4775_v12  ;;  %v1148_v47 = vsel %vm874_vm7, %v1123_v32, %v1147_v54 }
 0x2c6   : > { %v1149_v10 = vsel %vm876_vm8, %v1130_v17, %v1148_v47 }
 0x2c7   : > { %v1140_v49 = vsel %vm809_vm1, %v1139_v48, %v1138_v59  ;;  %v1150_v1 = vsel %vm878_vm9, %v1137_v14, %v1149_v10  ;;  %v1608_v10 = vld [vmem:[%s4430_s27 + $0x18] sm:$0xff] }
 0x2c8   : > { %v1142_v45 = vsel %vm813_vm2, %v1141_v21, %v1140_v49 }
 0x2cc   : > { %v1088_v34 = vpop.permute.xlu1 %1087 }
 0x2cd   : > { %v1143_v37 = vperm.slane %v1088_v34, %v4789_v2  ;;  %v3955_v2 = vld [vmem:[%s7358_s3] ss:$0 sm:$0xff]  ;;  %s5922_s3 = sld [smem:[#allocation12 + $0x39]] }
 0x2ce   : > { %v893_v46 = vmul.f32 %v3955_v2, %v890_v29 }
 0x2cf   : > { %v1144_v6 = vsel %vm817_vm3, %v1143_v37, %v1142_v45  ;;  %v1607_v45 = vld [vmem:[%s4430_s27 + $0x10] sm:$0xff] }
 0x2d0   : > { %v1151_v13 = vsel %vm880_vm10, %v1144_v6, %v1150_v1  ;;  %v897_v27 = vadd.f32 %v3956_v25, %v893_v46 }
 0x2d1   : > { %v1153_v50 = vsel %vm883_vm11, %v1151_v13, 0.0 }
 0x2d2   : > { %1154 = vadd.xlane.f32.xlu0 %v1153_v50 }
 0x345   : > { %v1155_v44 = vpop.xlane.xlu0 %1154 }
 0x346   : > { %v1158_v57 = vadd.f32 %v1157_v39, %v1155_v44 }
 0x348   : > { %v1159_v18 = vmax.f32 %v1158_v57, 0.0 }
 0x34a   : > { %v1162_v5 = vmul.f32 %v3957_v56, %v1159_v18 }
 0x34c   : > { %v1163_v41 = vadd.f32 %v1162_v5, %v897_v27 }
 0x34e   : > { %v1164_v0 = vsub.f32 0.0, %v1163_v41 }
 0x350   : > { %v1165_v43 = vmul.f32 1.442695, %v1164_v0 }
 0x352   : > { %3960 = vpow2.f32 %v1165_v43 }
 0x358   : > { %v3961_v3 = vpop.eup %3960 }
 0x359   : > { %v1167_v28 = vadd.f32 1.0, %v3961_v3 }
 0x35b   : > { %3962 = vrcp.f32 %v1167_v28  ;;  %v1179_v7 = vand.u32 2147483648, %v1167_v28  ;;  %v1177_v53 = vand.u32 2147483647, %v1167_v28  ;;  %vm1173_vm13 = vweird.f32 %v1167_v28 }
 0x35d   : > { %v1180_v60 = vor.u32 1.1754944e-38, %v1179_v7  ;;  %vm1178_vm15 = vcmp.eq.f32.partialorder %v1177_v53, 8.507059e+37 }
 0x361   : > { %v3963_v62 = vpop.eup %3962 }
 0x362   : > { %v1169_v63 = vmul.f32 %v3963_v62, %v1167_v28  ;;  %vm1174_vm12 = vweird.f32 %v3963_v62 }
 0x363   : > { %vm1175_vm14 = vmor %vm1173_vm13, %vm1174_vm12 }
 0x364   : > { %v1170_v61 = vsub.f32 1.0, %v1169_v63 }
 0x366   : > { %v1171_v40 = vmul.f32 %v3963_v62, %v1170_v61 }
 0x368   : > { %v1172_v35 = vadd.f32 %v3963_v62, %v1171_v40 }
 0x36a   : > { %v1176_v9 = vsel %vm1175_vm14, %v3963_v62, %v1172_v35 }
 0x36b   : > { %v4990_v31 = vsel %vm1178_vm15, %v1180_v60, %v1176_v9 }
 0x36c   : > { %v4993_v42 = vperm.slane %v4990_v31, 7  ;;  %v1183_v36 = vperm.slane %v4990_v31, 0  ;;  %v1233_v38 = vperm.slane %v4990_v31, 2  ;;  %v1258_v15 = vperm.slane %v4990_v31, 3 }
 0x36d   : > { %v5005_v26 = vperm.slane %v4990_v31, 6  ;;  %v1208_v48 = vperm.slane %v4990_v31, 1  ;;  %v5032_v58 = vperm.slane %v4990_v31, 4  ;;  %v5043_v55 = vperm.slane %v4990_v31, 5 }
 0x36e   : > { %1369 = vperm.xlu0 %3949, %v4993_v42   ;;  %1194 = vperm.xlu1 %3929, %v1183_v36  }
 0x36f   : > { %1188 = vperm.xlu2 %3928, %v1183_v36  }
 0x376   : > { %3950 = vset.pattern.permute.xlu0 %v7360_v23  ;;  %3931 = vset.pattern.permute.xlu1 %v7360_v23 }
 0x377   : > { %3930 = vset.pattern.permute.xlu2 %v7361_v16 }
 0x37e   : > { %1256 = vperm.xlu0 %3950, %v1233_v38   ;;  %1206 = vperm.xlu1 %3931, %v1183_v36  }
 0x37f   : > { %1200 = vperm.xlu2 %3930, %v1183_v36  }
 0x386   : > { %1281 = vperm.xlu0 %3950, %v1258_v15   ;;  %3933 = vset.pattern.permute.xlu1 %v7355_v20 }
 0x387   : > { %3932 = vset.pattern.permute.xlu2 %v7356_v33 }
 0x38e   : > { %1356 = vperm.xlu0 %3950, %v5005_v26   ;;  %1219 = vperm.xlu1 %3933, %v1208_v48  }
 0x38f   : > { %1213 = vperm.xlu2 %3932, %v1208_v48  }
 0x396   : > { %3935 = vset.pattern.permute.xlu1 %v7360_v23 }
 0x397   : > { %3934 = vset.pattern.permute.xlu2 %v7361_v16 }
 0x39e   : > { %1231 = vperm.xlu1 %3935, %v1208_v48  }
 0x39f   : > { %1225 = vperm.xlu2 %3934, %v1208_v48  }
 0x3a6   : > { %3937 = vset.pattern.permute.xlu1 %v7355_v20 }
 0x3a7   : > { %3936 = vset.pattern.permute.xlu2 %v7356_v33 }
 0x3ae   : > { %1244 = vperm.xlu1 %3937, %v1233_v38  }
 0x3af   : > { %1238 = vperm.xlu2 %3936, %v1233_v38  }
 0x3b6   : > { %3939 = vset.pattern.permute.xlu1 %v7356_v33 }
 0x3b7   : > { %3938 = vset.pattern.permute.xlu2 %v7361_v16 }
 0x3be   : > { %1263 = vperm.xlu1 %3939, %v1258_v15  }
 0x3bf   : > { %1250 = vperm.xlu2 %3938, %v1233_v38  }
 0x3c6   : > { %3941 = vset.pattern.permute.xlu1 %v7361_v16 }
 0x3c7   : > { %3940 = vset.pattern.permute.xlu2 %v7355_v20 }
 0x3c9   : > { %v5017_v59 = vpop.permute.xlu2 %1188 }
 0x3ca   : > { %7362 = vst [vmem:[#allocation39_spill] sm:$0xff] %v5017_v59  ;;  %v1399_v24 = vmul.f32 %v1383_v30, %v5017_v59  ;;  %v1400_v22 = vmul.f32 %v1384_v19, %v5017_v59 }
 0x3cc   : > { %v1415_v17 = vrot.slane %v1399_v24, 4  ;;  %v1421_v49 = vrot.slane %v1400_v22, 4 }
 0x3ce   : > { %1275 = vperm.xlu1 %3941, %v1258_v15   ;;  %v1416_v34 = vmax.f32 %v1399_v24, %v1415_v17  ;;  %v1422_v14 = vmax.f32 %v1400_v22, %v1421_v49  ;;  %v1512_v47 = vadd.f32 %v1415_v17, %v1399_v24  ;;  %v1518_v37 = vadd.f32 %v1421_v49, %v1400_v22 }
 0x3cf   : > { %1269 = vperm.xlu2 %3940, %v1258_v15  }
 0x3d0   : > { %v1417_v2 = vrot.slane %v1416_v34, 2  ;;  %v1423_v29 = vrot.slane %v1422_v14, 2  ;;  %v1513_v39 = vrot.slane %v1512_v47, 2  ;;  %v1519_v44 = vrot.slane %v1518_v37, 2 }
 0x3d2   : > { %v1418_v18 = vmax.f32 %v1416_v34, %v1417_v2  ;;  %v1424_v27 = vmax.f32 %v1422_v14, %v1423_v29  ;;  %v1514_v5 = vadd.f32 %v1513_v39, %v1512_v47  ;;  %v1520_v41 = vadd.f32 %v1519_v44, %v1518_v37 }
 0x3d4   : > { %v1419_v9 = vrot.slane %v1418_v18, 1  ;;  %v1425_v31 = vrot.slane %v1424_v27, 1  ;;  %v1515_v36 = vrot.slane %v1514_v5, 1  ;;  %v1521_v38 = vrot.slane %v1520_v41, 1 }
 0x3d6   : > { %3943 = vset.pattern.permute.xlu1 %v7355_v20  ;;  %v1516_v34 = vadd.f32 %v1515_v36, %v1514_v5  ;;  %v1522_v14 = vadd.f32 %v1521_v38, %v1520_v41  ;;  %v1621_v5 = vld [vmem:[%s4430_s27 + $0x1d0] sm:$0xff]  ;;  %v1622_v41 = vld [vmem:[%s4430_s27 + $0x1d8] sm:$0xff] }
 0x3d7   : > { %3942 = vset.pattern.permute.xlu2 %v7356_v33 }
 0x3d9   : > { %v5027_v51 = vpop.permute.xlu2 %1200 }
 0x3da   : > { %7363 = vst [vmem:[#allocation38_spill] sm:$0xff] %v5027_v51  ;;  %v1879_v11 = vmul.f32 %v1863_v4, %v5027_v51  ;;  %v1880_v32 = vmul.f32 %v1864_v52, %v5027_v51 }
 0x3dc   : > { %v1895_v21 = vrot.slane %v1879_v11, 4  ;;  %v1901_v54 = vrot.slane %v1880_v32, 4 }
 0x3de   : > { %1294 = vperm.xlu1 %3943, %v5032_v58   ;;  %v1896_v1 = vmax.f32 %v1879_v11, %v1895_v21  ;;  %v1902_v13 = vmax.f32 %v1880_v32, %v1901_v54  ;;  %v1992_v61 = vadd.f32 %v1895_v21, %v1879_v11  ;;  %v1998_v7 = vadd.f32 %v1901_v54, %v1880_v32 }
 0x3df   : > { %1288 = vperm.xlu2 %3942, %v5032_v58   ;;  %v1420_v21 = vmax.f32 %v1418_v18, %v1419_v9  ;;  %v1426_v54 = vmax.f32 %v1424_v27, %v1425_v31 }
 0x3e0   : > { %v5038_v6 = vpop.permute.xlu1 %1194  ;;  %v1897_v25 = vrot.slane %v1896_v1, 2  ;;  %v1903_v46 = vrot.slane %v1902_v13, 2  ;;  %v1993_v24 = vrot.slane %v1992_v61, 2  ;;  %v1999_v22 = vrot.slane %v1998_v7, 2 }
 0x3e1   : > { %7364 = vst [vmem:[#allocation35_spill] sm:$0xff] %v5038_v6  ;;  %v1623_v50 = vmul.f32 %v1607_v45, %v5038_v6  ;;  %v1624_v8 = vmul.f32 %v1608_v10, %v5038_v6 }
 0x3e2   : > { %v1898_v62 = vmax.f32 %v1896_v1, %v1897_v25  ;;  %v1904_v63 = vmax.f32 %v1902_v13, %v1903_v46 }
 0x3e3   : > { %v1639_v56 = vrot.slane %v1623_v50, 4  ;;  %v1645_v57 = vrot.slane %v1624_v8, 4 }
 0x3e4   : > { %v1899_v4 = vrot.slane %v1898_v62, 1  ;;  %v1905_v52 = vrot.slane %v1904_v63, 1 }
 0x3e5   : > { %v1640_v0 = vmax.f32 %v1623_v50, %v1639_v56  ;;  %v1646_v43 = vmax.f32 %v1624_v8, %v1645_v57  ;;  %v1736_v3 = vadd.f32 %v1639_v56, %v1623_v50  ;;  %v1742_v28 = vadd.f32 %v1645_v57, %v1624_v8 }
 0x3e6   : > { %1319 = vperm.xlu1 %3943, %v5043_v55   ;;  %v1900_v1 = vmax.f32 %v1898_v62, %v1899_v4  ;;  %v1906_v13 = vmax.f32 %v1904_v63, %v1905_v52  ;;  %v1994_v50 = vadd.f32 %v1993_v24, %v1992_v61  ;;  %v2000_v8 = vadd.f32 %v1999_v22, %v1998_v7  ;;  %v1386_v62 = vld [vmem:[%s4430_s27 + $0x48] sm:$0xff] }
 0x3e7   : > { %1313 = vperm.xlu2 %3942, %v5043_v55   ;;  %v1641_v40 = vrot.slane %v1640_v0, 2  ;;  %v1647_v53 = vrot.slane %v1646_v43, 2  ;;  %v1737_v35 = vrot.slane %v1736_v3, 2  ;;  %v1743_v60 = vrot.slane %v1742_v28, 2 }
 0x3e8   : > { %v1995_v56 = vrot.slane %v1994_v50, 1  ;;  %v2001_v57 = vrot.slane %v2000_v8, 1 }
 0x3e9   : > { %v1642_v15 = vmax.f32 %v1640_v0, %v1641_v40  ;;  %v1648_v48 = vmax.f32 %v1646_v43, %v1647_v53  ;;  %v1738_v30 = vadd.f32 %v1737_v35, %v1736_v3  ;;  %v1744_v19 = vadd.f32 %v1743_v60, %v1742_v28  ;;  %v5057_v0 = vpop.permute.xlu0 %1369  ;;  %v1385_v28 = vld [vmem:[%s4430_s27 + $0x40] sm:$0xff]  ;;  %v5065_v63 = vpop.permute.xlu2 %1213 }
 0x3ea   : > { %v1996_v18 = vadd.f32 %v1995_v56, %v1994_v50  ;;  %v2002_v27 = vadd.f32 %v2001_v57, %v2000_v8  ;;  %7365 = vst [vmem:[#allocation40_spill] sm:$0xff] %v5057_v0  ;;  %v1637_v61 = vmul.f32 %v1621_v5, %v5057_v0  ;;  %v1638_v7 = vmul.f32 %v1622_v41, %v5057_v0  ;;  %v1609_v41 = vld [vmem:[%s4430_s27 + $0x50] sm:$0xff] }
 0x3eb   : > { %v1643_v11 = vrot.slane %v1642_v15, 1  ;;  %v1649_v32 = vrot.slane %v1648_v48, 1  ;;  %v1739_v17 = vrot.slane %v1738_v30, 1  ;;  %v1745_v49 = vrot.slane %v1744_v19, 1  ;;  %7366 = vst [vmem:[#allocation37_spill] sm:$0xff] %v5065_v63 }
 0x3ec   : > { %v1401_v40 = vmul.f32 %v1385_v28, %v5065_v63  ;;  %v1402_v53 = vmul.f32 %v1386_v62, %v5065_v63  ;;  %v1723_v35 = vrot.slane %v1637_v61, 4  ;;  %v1729_v60 = vrot.slane %v1638_v7, 4  ;;  %v1610_v28 = vld [vmem:[%s4430_s27 + $0x58] sm:$0xff]  ;;  %v1389_v63 = vld [vmem:[%s4430_s27 + $0xc0] sm:$0xff] }
 0x3ed   : > { %v1644_v47 = vmax.f32 %v1642_v15, %v1643_v11  ;;  %v1650_v37 = vmax.f32 %v1648_v48, %v1649_v32  ;;  %v1740_v45 = vadd.f32 %v1739_v17, %v1738_v30  ;;  %v1746_v10 = vadd.f32 %v1745_v49, %v1744_v19  ;;  %v1865_v15 = vld [vmem:[%s4430_s27 + $0x60] sm:$0xff]  ;;  %v1866_v48 = vld [vmem:[%s4430_s27 + $0x68] sm:$0xff] }
 0x3ee   : > { %3945 = vset.pattern.permute.xlu1 %v7356_v33  ;;  %v1427_v9 = vrot.slane %v1401_v40, 4  ;;  %v1433_v31 = vrot.slane %v1402_v53, 4  ;;  %v1724_v36 = vmax.f32 %v1637_v61, %v1723_v35  ;;  %v1730_v38 = vmax.f32 %v1638_v7, %v1729_v60 }
 0x3ef   : > { %3944 = vset.pattern.permute.xlu2 %v7361_v16  ;;  %v1831_v2 = vmax.f32 %v1420_v21, %v1644_v47  ;;  %v1832_v29 = vmax.f32 %v1426_v54, %v1650_v37  ;;  %v1847_v39 = vadd.f32 %v1740_v45, %v1516_v34  ;;  %v1848_v44 = vadd.f32 %v1746_v10, %v1522_v14 }
 0x3f0   : > { %v1820_v19 = vadd.f32 %v1723_v35, %v1637_v61  ;;  %v1428_v4 = vmax.f32 %v1401_v40, %v1427_v9  ;;  %v1434_v52 = vmax.f32 %v1402_v53, %v1433_v31  ;;  %v1524_v24 = vadd.f32 %v1427_v9, %v1401_v40  ;;  %v1207_v11 = vpop.permute.xlu1 %1206  ;;  %v3974_v35 = vld [vmem:[%s4430_s27 + $0x30] sm:$0xff]  ;;  %v3975_v9 = vld [vmem:[%s4430_s27 + $0x38] sm:$0xff] }
 0x3f1   : > { %v5049_v25 = vmax.f32 %v1831_v2, %v1900_v1  ;;  %v5051_v46 = vmax.f32 %v1832_v29, %v1906_v13  ;;  %v5059_v43 = vadd.f32 %v1996_v18, %v1847_v39  ;;  %v5061_v3 = vadd.f32 %v2002_v27, %v1848_v44  ;;  %v1257_v54 = vpop.permute.xlu0 %1256  ;;  %v3972_v2 = vld [vmem:[%s4430_s27 + $0xb0] sm:$0xff]  ;;  %v3977_v61 = vld [vmem:[%s4430_s27 + $0x78] sm:$0xff] }
 0x3f2   : > { %v1530_v22 = vadd.f32 %v1433_v31, %v1402_v53  ;;  %v1725_v49 = vrot.slane %v1724_v36, 2  ;;  %v1731_v21 = vrot.slane %v1730_v38, 2  ;;  %v1821_v34 = vrot.slane %v1820_v19, 2 }
 0x3f3   : > { %v1429_v47 = vrot.slane %v1428_v4, 2  ;;  %v1435_v37 = vrot.slane %v1434_v52, 2  ;;  %v1525_v45 = vrot.slane %v1524_v24, 2  ;;  %v5087_v29 = vmul.f32 %v3972_v2, %v1257_v54 }
 0x3f4   : > { %v1531_v10 = vrot.slane %v1530_v22, 2  ;;  %v5082_v50 = vmax.f32 %v1724_v36, %v1725_v49  ;;  %v5084_v8 = vmax.f32 %v1730_v38, %v1731_v21  ;;  %v5090_v39 = vadd.f32 %v1821_v34, %v1820_v19 }
 0x3f5   : > { %7368 = vst [vmem:[#allocation31_spill] sm:$0xff] %v5087_v29  ;;  %v1430_v56 = vmax.f32 %v1428_v4, %v1429_v47  ;;  %v1436_v57 = vmax.f32 %v1434_v52, %v1435_v37  ;;  %v1526_v18 = vadd.f32 %v1525_v45, %v1524_v24  ;;  %v7173_v53 = vrot.slane %v5087_v29, 4 }
 0x3f6   : > { %1338 = vperm.xlu1 %3945, %v5005_v26   ;;  %v5108_v31 = vmul.f32 %v3975_v9, %v1207_v11 }
 0x3f7   : > { %1300 = vperm.xlu2 %3944, %v5032_v58   ;;  %v1527_v4 = vrot.slane %v1526_v18, 1 }
 0x3f8   : > { %7372 = vst [vmem:[#allocation32_spill] sm:$0xff] %v5108_v31 }
 0x3f9   : > { %v5076_v30 = vpop.permute.xlu2 %1225 }
 0x3fa   : > { %7367 = vst [vmem:[#allocation34_spill] sm:$0xff] %v5076_v30  ;;  %v1881_v32 = vmul.f32 %v1865_v15, %v5076_v30  ;;  %v1882_v17 = vmul.f32 %v1866_v48, %v5076_v30  ;;  %v1431_v15 = vrot.slane %v1430_v56, 1  ;;  %v1437_v48 = vrot.slane %v1436_v57, 1 }
 0x3fc   : > { %v1907_v1 = vrot.slane %v1881_v32, 4  ;;  %v1913_v13 = vrot.slane %v1882_v17, 4  ;;  %v5126_v47 = vmax.f32 %v1436_v57, %v1437_v48 }
 0x3fe   : > { %3947 = vset.pattern.permute.xlu1 %v7361_v16  ;;  %v1908_v27 = vmax.f32 %v1881_v32, %v1907_v1  ;;  %v1914_v5 = vmax.f32 %v1882_v17, %v1913_v13  ;;  %v2004_v36 = vadd.f32 %v1907_v1, %v1881_v32  ;;  %v2010_v38 = vadd.f32 %v1913_v13, %v1882_v17 }
 0x3ff   : > { %3946 = vset.pattern.permute.xlu2 %v7355_v20  ;;  %v1826_v20 = vadd.f32 %v1729_v60, %v1638_v7  ;;  %v3973_v7 = vld [vmem:[%s4430_s27 + $0xb8] sm:$0xff]  ;;  %v5105_v60 = vmul.f32 %v3974_v35, %v1207_v11  ;;  %v5118_v11 = vmax.f32 %v5087_v29, %v7173_v53 }
 0x400   : > { %v5096_v62 = vpop.permute.xlu1 %1219  ;;  %v5101_v40 = vmul.f32 %v3973_v7, %v1257_v54  ;;  %v1909_v24 = vrot.slane %v1908_v27, 2  ;;  %v2141_v54 = vrot.slane %v5108_v31, 4  ;;  %v2005_v34 = vrot.slane %v2004_v36, 2 }
 0x401   : > { %v1827_v14 = vrot.slane %v1826_v20, 2  ;;  %7369 = vst [vmem:[#allocation30_spill] sm:$0xff] %v5096_v62  ;;  %v1625_v19 = vmul.f32 %v1609_v41, %v5096_v62  ;;  %v2135_v17 = vrot.slane %v5105_v60, 4 }
 0x402   : > { %7370 = vst [vmem:[#allocation36_spill] sm:$0xff] %v5101_v40  ;;  %v1910_v13 = vmax.f32 %v1908_v27, %v1909_v24  ;;  %v2142_v21 = vmax.f32 %v5108_v31, %v2141_v54  ;;  %v2006_v49 = vadd.f32 %v2005_v34, %v2004_v36 }
 0x403   : > { %v5092_v44 = vadd.f32 %v1827_v14, %v1826_v20  ;;  %7371 = vst [vmem:[#allocation33_spill] sm:$0xff] %v5105_v60  ;;  %v1626_v20 = vmul.f32 %v1610_v28, %v5096_v62  ;;  %v2011_v14 = vrot.slane %v2010_v38, 2  ;;  %v1651_v37 = vrot.slane %v1625_v19, 4 }
 0x404   : > { %v2136_v9 = vmax.f32 %v5105_v60, %v2135_v17  ;;  %v2232_v53 = vadd.f32 %v2135_v17, %v5105_v60 }
 0x405   : > { %v1657_v45 = vrot.slane %v1626_v20, 4  ;;  %v1652_v41 = vmax.f32 %v1625_v19, %v1651_v37  ;;  %v1748_v7 = vadd.f32 %v1651_v37, %v1625_v19 }
 0x406   : > { %1325 = vperm.xlu1 %3947, %v5043_v55   ;;  %v2137_v36 = vrot.slane %v2136_v9, 2  ;;  %v2233_v37 = vrot.slane %v2232_v53, 2 }
 0x407   : > { %1344 = vperm.xlu2 %3946, %v5005_v26   ;;  %v1658_v28 = vmax.f32 %v1626_v20, %v1657_v45  ;;  %v1754_v35 = vadd.f32 %v1657_v45, %v1626_v20  ;;  %v1749_v57 = vrot.slane %v1748_v7, 2 }
 0x409   : > { %v1755_v48 = vrot.slane %v1754_v35, 2  ;;  %v1750_v20 = vadd.f32 %v1749_v57, %v1748_v7  ;;  %v3976_v57 = vld [vmem:[%s4430_s27 + $0x70] sm:$0xff] }
 0x40b   : > { %v1751_v17 = vrot.slane %v1750_v20, 1 }
 0x40e   : > { %3951 = vset.pattern.permute.xlu1 %v7360_v23  ;;  %v1532_v23 = vadd.f32 %v1531_v10, %v1530_v22  ;;  %v1915_v22 = vrot.slane %v1914_v5, 2  ;;  %v1528_v10 = vadd.f32 %v1527_v4, %v1526_v18  ;;  %v2238_v18 = vadd.f32 %v2141_v54, %v5108_v31 }
 0x40f   : > { %3948 = vset.pattern.permute.xlu2 %v7356_v33  ;;  %v2012_v33 = vadd.f32 %v2011_v14, %v2010_v38  ;;  %v1756_v4 = vadd.f32 %v1755_v48, %v1754_v35  ;;  %v2143_v38 = vrot.slane %v2142_v21, 2  ;;  %v1752_v35 = vadd.f32 %v1751_v17, %v1750_v20 }
 0x410   : > { %v1533_v52 = vrot.slane %v1532_v23, 1  ;;  %v1916_v2 = vmax.f32 %v1914_v5, %v1915_v22  ;;  %v1232_v14 = vpop.permute.xlu1 %1231  ;;  %v2239_v45 = vrot.slane %v2238_v18, 2 }
 0x411   : > { %v2013_v24 = vrot.slane %v2012_v33, 1  ;;  %v1757_v54 = vrot.slane %v1756_v4, 1  ;;  %v5135_v48 = vmul.f32 %v3976_v57, %v1232_v14  ;;  %v5138_v32 = vmul.f32 %v3977_v61, %v1232_v14 }
 0x412   : > { %v1534_v1 = vadd.f32 %v1533_v52, %v1532_v23  ;;  %v1911_v23 = vrot.slane %v1910_v13, 1  ;;  %v1917_v27 = vrot.slane %v1916_v2, 1  ;;  %v2007_v52 = vrot.slane %v2006_v49, 1 }
 0x413   : > { %7373 = vst [vmem:[#allocation42_spill] sm:$0xff] %v5135_v48  ;;  %v1849_v62 = vadd.f32 %v1752_v35, %v1528_v10 }
 0x414   : > { %7374 = vst [vmem:[#allocation43_spill] sm:$0xff] %v5138_v32 }
 0x416   : > { %1306 = vperm.xlu1 %3951, %v5032_v58   ;;  %v5124_v58 = vmax.f32 %v1430_v56, %v1431_v15  ;;  %v1653_v56 = vrot.slane %v1652_v41, 2  ;;  %v1659_v15 = vrot.slane %v1658_v28, 2 }
 0x417   : > { %1363 = vperm.xlu2 %3948, %v4993_v42  }
 0x418   : > { %v1654_v5 = vmax.f32 %v1652_v41, %v1653_v56  ;;  %v1660_v19 = vmax.f32 %v1658_v28, %v1659_v15  ;;  %v1918_v41 = vmax.f32 %v1916_v2, %v1917_v27  ;;  %v2008_v56 = vadd.f32 %v2007_v52, %v2006_v49  ;;  %v5143_v2 = vpop.permute.xlu2 %1238 }
 0x419   : > { %v2014_v15 = vadd.f32 %v2013_v24, %v2012_v33  ;;  %7375 = vst [vmem:[#allocation44_spill] sm:$0xff] %v5143_v2  ;;  %v7376_v27 = vrot.slane %v5101_v40, 4  ;;  %v2138_v33 = vmax.f32 %v2136_v9, %v2137_v36  ;;  %v2153_v36 = vrot.slane %v5138_v32, 4 }
 0x41a   : > { %v1655_v22 = vrot.slane %v1654_v5, 1  ;;  %v1661_v34 = vrot.slane %v1660_v19, 1 }
 0x41b   : > { %v5148_v49 = vmax.f32 %v5101_v40, %v7376_v27  ;;  %v2139_v24 = vrot.slane %v2138_v33, 1 }
 0x41c   : > { %v1656_v28 = vmax.f32 %v1654_v5, %v1655_v22  ;;  %v1662_v7 = vmax.f32 %v1660_v19, %v1661_v34  ;;  %v2234_v5 = vadd.f32 %v2233_v37, %v2232_v53  ;;  %v2240_v19 = vadd.f32 %v2239_v45, %v2238_v18  ;;  %v3978_v45 = vld [vmem:[%s4430_s27 + $0xf0] sm:$0xff] }
 0x41d   : > { %v7378_v53 = vrot.slane %v5087_v29, 4  ;;  %v7379_v18 = vmov %v7376_v27  ;;  %v2154_v34 = vmax.f32 %v5138_v32, %v2153_v36  ;;  %v2140_v57 = vmax.f32 %v2138_v33, %v2139_v24  ;;  %v3979_v27 = vld [vmem:[%s4430_s27 + $0xf8] sm:$0xff] }
 0x41e   : > { %1331 = vperm.xlu1 %3951, %v5043_v55   ;;  %v1912_v55 = vmax.f32 %v1910_v13, %v1911_v23  ;;  %v1833_v31 = vmax.f32 %v5124_v58, %v1656_v28  ;;  %v1834_v60 = vmax.f32 %v5126_v47, %v1662_v7  ;;  %v1387_v23 = vld [vmem:[%s4430_s27 + $0x80] sm:$0xff]  ;;  %v5155_v47 = vadd.f32 %v2008_v56, %v1849_v62  ;;  %v1611_v56 = vld [vmem:[%s4430_s27 + $0x90] sm:$0xff] }
 0x41f   : > { %3952 = vset.pattern.permute.xlu2 %v7361_v16  ;;  %v1758_v16 = vadd.f32 %v1757_v54, %v1756_v4  ;;  %v5168_v9 = vadd.f32 %v7378_v53, %v5087_v29  ;;  %v1282_v4 = vpop.permute.xlu0 %1281  ;;  %v2250_v54 = vadd.f32 %v2153_v36, %v5138_v32  ;;  %v2155_v7 = vrot.slane %v2154_v34, 2 }
 0x420   : > { %v5151_v61 = vmax.f32 %v1833_v31, %v1912_v55  ;;  %v5153_v58 = vmax.f32 %v1834_v60, %v1918_v41  ;;  %v2144_v31 = vmax.f32 %v2142_v21, %v2143_v38  ;;  %v1403_v60 = vmul.f32 %v1387_v23, %v5143_v2 }
 0x421   : > { %v1850_v13 = vadd.f32 %v1758_v16, %v1534_v1  ;;  %v7377_v1 = vrot.slane %v5082_v50, 1  ;;  %v2235_v21 = vrot.slane %v2234_v5, 1  ;;  %v2241_v38 = vrot.slane %v2240_v19, 1 }
 0x422   : > { %v2145_v37 = vrot.slane %v2144_v31, 1  ;;  %v5186_v55 = vmul.f32 %v3978_v45, %v1282_v4  ;;  %v1439_v41 = vrot.slane %v1403_v60, 4  ;;  %v2251_v16 = vrot.slane %v2250_v54, 2 }
 0x423   : > { %v5157_v10 = vadd.f32 %v2014_v15, %v1850_v13  ;;  %v5163_v20 = vmax.f32 %v5082_v50, %v7377_v1  ;;  %v2147_v50 = vrot.slane %v5135_v48, 4  ;;  %v5189_v15 = vpop.permute.xlu1 %1244  ;;  %v2236_v13 = vadd.f32 %v2235_v21, %v2234_v5 }
 0x424   : > { %7380 = vst [vmem:[#allocation45_spill] sm:$0xff] %v5186_v55  ;;  %v2242_v23 = vadd.f32 %v2241_v38, %v2240_v19  ;;  %v5192_v1 = vmul.f32 %v3979_v27, %v1282_v4  ;;  %v2252_v36 = vadd.f32 %v2251_v16, %v2250_v54  ;;  %v2146_v45 = vmax.f32 %v2144_v31, %v2145_v37 }
 0x425   : > { %v2148_v22 = vmax.f32 %v5135_v48, %v2147_v50  ;;  %v2244_v17 = vadd.f32 %v2147_v50, %v5135_v48  ;;  %7381 = vst [vmem:[#allocation46_spill] sm:$0xff] %v5189_v15  ;;  %v1440_v14 = vmax.f32 %v1403_v60, %v1439_v41  ;;  %v1536_v52 = vadd.f32 %v1439_v41, %v1403_v60 }
 0x426   : > { %1381 = vperm.xlu1 %3951, %v4993_v42   ;;  %7382 = vst [vmem:[#allocation47_spill] sm:$0xff] %v5192_v1  ;;  %v1627_v62 = vmul.f32 %v1611_v56, %v5189_v15  ;;  %v2253_v33 = vrot.slane %v2252_v36, 1  ;;  %v2327_v5 = vmax.f32 %v5049_v25, %v2140_v57  ;;  %v2343_v19 = vadd.f32 %v2236_v13, %v5059_v43 }
 0x427   : > { %1350 = vperm.xlu2 %3952, %v5005_v26   ;;  %v5175_v26 = vadd.f32 %v7379_v18, %v5101_v40  ;;  %v2149_v28 = vrot.slane %v2148_v22, 2  ;;  %v2245_v35 = vrot.slane %v2244_v17, 2  ;;  %v2156_v18 = vmax.f32 %v2154_v34, %v2155_v7 }
 0x428   : > { %v2344_v4 = vadd.f32 %v2242_v23, %v5061_v3  ;;  %v2171_v24 = vrot.slane %v5186_v55, 4  ;;  %v2254_v31 = vadd.f32 %v2253_v33, %v2252_v36  ;;  %v2328_v60 = vmax.f32 %v5051_v46, %v2146_v45 }
 0x429   : > { %v2150_v53 = vmax.f32 %v2148_v22, %v2149_v28  ;;  %v2246_v50 = vadd.f32 %v2245_v35, %v2244_v17  ;;  %v2157_v29 = vrot.slane %v2156_v18, 1  ;;  %v1441_v22 = vrot.slane %v1440_v14, 2 }
 0x42a   : > { %v1537_v34 = vrot.slane %v1536_v52, 2  ;;  %v1663_v17 = vrot.slane %v1627_v62, 4  ;;  %v2346_v43 = vadd.f32 %v2254_v31, %v5157_v10  ;;  %v2263_v3 = vrot.slane %v5175_v26, 2 }
 0x42b   : > { %v2151_v40 = vrot.slane %v2150_v53, 1  ;;  %v2247_v32 = vrot.slane %v2246_v50, 1  ;;  %v2158_v38 = vmax.f32 %v2156_v18, %v2157_v29  ;;  %v2359_v41 = vmul.f32 0.03125, %v2343_v19 }
 0x42c   : > { %v2177_v29 = vrot.slane %v5192_v1, 4  ;;  %v2362_v46 = vmul.f32 0.03125, %v2346_v43  ;;  %v1538_v7 = vadd.f32 %v1537_v34, %v1536_v52  ;;  %v1760_v10 = vadd.f32 %v1663_v17, %v1627_v62  ;;  %v5243_v34 = vpop.permute.xlu2 %1250  ;;  %v3980_v43 = vld [vmem:[%s4430_s27 + $0x1b0] sm:$0xff] }
 0x42d   : > { %v2152_v21 = vmax.f32 %v2150_v53, %v2151_v40  ;;  %v2330_v37 = vmax.f32 %v5153_v58, %v2158_v38  ;;  %v2360_v40 = vmul.f32 0.03125, %v2344_v4  ;;  %v1442_v58 = vmax.f32 %v1440_v14, %v1441_v22  ;;  %v1867_v22 = vld [vmem:[%s4430_s27 + $0xa0] sm:$0xff]  ;;  %7389 = vst [vmem:[#allocation50_spill] sm:$0xff] %v5243_v34 }
 0x42e   : > { %v7383_v35 = vrot.slane %v5118_v11, 2  ;;  %v2172_v56 = vmax.f32 %v5186_v55, %v2171_v24  ;;  %v7386_v23 = vrot.slane %v5084_v8, 1  ;;  %v2178_v52 = vmax.f32 %v5192_v1, %v2177_v29 }
 0x42f   : > { %1375 = vperm.xlu2 %3952, %v4993_v42   ;;  %v2248_v42 = vadd.f32 %v2247_v32, %v2246_v50  ;;  %v2329_v54 = vmax.f32 %v5151_v61, %v2152_v21  ;;  %v5211_v61 = vsel %vm868_vm4, %v2330_v37, %v2328_v60  ;;  %v5221_v13 = vsel %vm868_vm4, %v2362_v46, %v2360_v40  ;;  %v3981_v40 = vld [vmem:[%s4430_s27 + $0x1b8] sm:$0xff] }
 0x430   : > { %v2162_v16 = vmax.f32 %v5118_v11, %v7383_v35  ;;  %7385 = vst [vmem:[#allocation49_spill] sm:$0xff] %v5221_v13  ;;  %v5226_v14 = vmax.f32 %v5084_v8, %v7386_v23  ;;  %v1761_v53 = vrot.slane %v1760_v10, 2  ;;  %v7387_v11 = vrot.slane %v5148_v49, 2  ;;  %v1388_v8 = vld [vmem:[%s4430_s27 + $0x88] sm:$0xff] }
 0x431   : > { %v2345_v25 = vadd.f32 %v2248_v42, %v5155_v47  ;;  %v5208_v28 = vsel %vm868_vm4, %v2329_v54, %v2327_v5  ;;  %v1664_v47 = vmax.f32 %v1627_v62, %v1663_v17  ;;  %v1612_v62 = vld [vmem:[%s4430_s27 + $0x98] sm:$0xff]  ;;  %v7388_v50 = vrot.slane %v5168_v9, 2  ;;  %v1357_v5 = vpop.permute.xlu0 %1356 }
 0x432   : > { %v2168_v18 = vmax.f32 %v5148_v49, %v7387_v11  ;;  %v2268_v45 = vadd.f32 %v2171_v24, %v5186_v55  ;;  %v2274_v33 = vadd.f32 %v2177_v29, %v5192_v1  ;;  %v1443_v19 = vrot.slane %v1442_v58, 1 }
 0x433   : > { %v2361_v32 = vmul.f32 0.03125, %v2345_v25  ;;  %v1665_v27 = vrot.slane %v1664_v47, 2  ;;  %v2258_v36 = vadd.f32 %v7388_v50, %v5168_v9  ;;  %v1539_v4 = vrot.slane %v1538_v7, 1 }
 0x434   : > { %v1762_v38 = vadd.f32 %v1761_v53, %v1760_v10  ;;  %v2163_v42 = vrot.slane %v2162_v16, 1  ;;  %v2264_v49 = vadd.f32 %v2263_v3, %v5175_v26  ;;  %v2173_v31 = vrot.slane %v2172_v56, 2  ;;  %v1868_v26 = vld [vmem:[%s4430_s27 + $0xa8] sm:$0xff] }
 0x435   : > { %v5218_v57 = vsel %vm868_vm4, %v2361_v32, %v2359_v41  ;;  %v1666_v21 = vmax.f32 %v1664_v47, %v1665_v27  ;;  %v1628_v60 = vmul.f32 %v1612_v62, %v5189_v15  ;;  %v2179_v9 = vrot.slane %v2178_v52, 2 }
 0x436   : > { %7384 = vst [vmem:[#allocation48_spill] sm:$0xff] %v5218_v57  ;;  %v1404_v24 = vmul.f32 %v1388_v8, %v5143_v2  ;;  %v1763_v54 = vrot.slane %v1762_v38, 1  ;;  %v2269_v37 = vrot.slane %v2268_v45, 2  ;;  %v2275_v25 = vrot.slane %v2274_v33, 2 }
 0x437   : > { %v1667_v17 = vrot.slane %v1666_v21, 1  ;;  %v5246_v41 = vmul.f32 %v3980_v43, %v1357_v5  ;;  %v5249_v29 = vmul.f32 %v3981_v40, %v1357_v5  ;;  %v5252_v3 = vmax.f32 %v1442_v58, %v1443_v19 }
 0x438   : > { %v1540_v32 = vadd.f32 %v1539_v4, %v1538_v7  ;;  %v1764_v47 = vadd.f32 %v1763_v54, %v1762_v38  ;;  %v2169_v10 = vrot.slane %v2168_v18, 1  ;;  %v2259_v35 = vrot.slane %v2258_v36, 1 }
 0x439   : > { %7390 = vst [vmem:[#allocation51_spill] sm:$0xff] %v5246_v41  ;;  %v5254_v46 = vmax.f32 %v1666_v21, %v1667_v17  ;;  %v1883_v23 = vmul.f32 %v1867_v22, %v5243_v34  ;;  %v1669_v62 = vrot.slane %v1628_v60, 4  ;;  %v1445_v27 = vrot.slane %v1404_v24, 4 }
 0x43a   : > { %7391 = vst [vmem:[#allocation52_spill] sm:$0xff] %v5249_v29  ;;  %v1884_v53 = vmul.f32 %v1868_v26, %v5243_v34  ;;  %v5260_v50 = vadd.f32 %v1764_v47, %v1540_v32  ;;  %v7392_v58 = vrot.slane %v5090_v39, 1  ;;  %v2265_v8 = vrot.slane %v2264_v49, 1  ;;  %v1614_v47 = vld [vmem:[%s4430_s27 + $0xd8] sm:$0xff] }
 0x43b   : > { %v2174_v5 = vmax.f32 %v2172_v56, %v2173_v31  ;;  %v2180_v19 = vmax.f32 %v2178_v52, %v2179_v9  ;;  %v2270_v4 = vadd.f32 %v2269_v37, %v2268_v45  ;;  %v2276_v21 = vadd.f32 %v2275_v25, %v2274_v33 }
 0x43c   : > { %v5265_v7 = vadd.f32 %v7392_v58, %v5090_v39  ;;  %v2207_v38 = vrot.slane %v5246_v41, 4  ;;  %v2213_v22 = vrot.slane %v5249_v29, 4  ;;  %v7394_v17 = vrot.slane %v5092_v44, 1  ;;  %v5286_v58 = vpop.permute.xlu2 %1269 }
 0x43d   : > { %v5274_v43 = vmax.f32 %v2162_v16, %v2163_v42  ;;  %v1919_v39 = vrot.slane %v1883_v23, 4  ;;  %v1670_v40 = vmax.f32 %v1628_v60, %v1669_v62  ;;  %v5276_v26 = vmax.f32 %v2168_v18, %v2169_v10  ;;  %v1613_v42 = vld [vmem:[%s4430_s27 + $0xd0] sm:$0xff]  ;;  %7396 = vst [vmem:[#allocation55_spill] sm:$0xff] %v5286_v58 }
 0x43e   : > { %7393 = vst [vmem:[#allocation53_spill] sm:$0xff] %v5265_v7  ;;  %v5272_v54 = vadd.f32 %v7394_v17, %v5092_v44  ;;  %v5278_v56 = vadd.f32 %v2259_v35, %v2258_v36  ;;  %v1446_v52 = vmax.f32 %v1404_v24, %v1445_v27  ;;  %v1925_v45 = vrot.slane %v1884_v53, 4 }
 0x43f   : > { %v5280_v33 = vadd.f32 %v2265_v8, %v2264_v49  ;;  %v2175_v31 = vrot.slane %v2174_v5, 1  ;;  %v2181_v9 = vrot.slane %v2180_v19, 1  ;;  %v1766_v37 = vadd.f32 %v1669_v62, %v1628_v60 }
 0x440   : > { %7395 = vst [vmem:[#allocation54_spill] sm:$0xff] %v5272_v54  ;;  %v2271_v25 = vrot.slane %v2270_v4, 1  ;;  %v2277_v44 = vrot.slane %v2276_v21, 1  ;;  %v2208_v32 = vmax.f32 %v5246_v41, %v2207_v38  ;;  %v2214_v16 = vmax.f32 %v5249_v29, %v2213_v22 }
 0x441   : > { %v2304_v18 = vadd.f32 %v2207_v38, %v5246_v41  ;;  %v1542_v36 = vadd.f32 %v1445_v27, %v1404_v24  ;;  %v1920_v10 = vmax.f32 %v1883_v23, %v1919_v39  ;;  %v1671_v35 = vrot.slane %v1670_v40, 2 }
 0x442   : > { %v2310_v49 = vadd.f32 %v2213_v22, %v5249_v29  ;;  %v1447_v8 = vrot.slane %v1446_v52, 2  ;;  %v1926_v17 = vmax.f32 %v1884_v53, %v1925_v45  ;;  %v2016_v60 = vadd.f32 %v1919_v39, %v1883_v23 }
 0x443   : > { %v2022_v62 = vadd.f32 %v1925_v45, %v1884_v53  ;;  %v1767_v11 = vrot.slane %v1766_v37, 2  ;;  %v1629_v1 = vmul.f32 %v1613_v42, %v5286_v58  ;;  %v1630_v55 = vmul.f32 %v1614_v47, %v5286_v58 }
 0x444   : > { %v5292_v48 = vmax.f32 %v2174_v5, %v2175_v31  ;;  %v5294_v15 = vmax.f32 %v2180_v19, %v2181_v9  ;;  %v2209_v34 = vrot.slane %v2208_v32, 2  ;;  %v2215_v38 = vrot.slane %v2214_v16, 2 }
 0x445   : > { %v2305_v24 = vrot.slane %v2304_v18, 2  ;;  %v1543_v27 = vrot.slane %v1542_v36, 2  ;;  %v1921_v41 = vrot.slane %v1920_v10, 2  ;;  %v1672_v2 = vmax.f32 %v1670_v40, %v1671_v35 }
 0x446   : > { %7397 = vst [vmem:[#allocation56_spill] sm:$0xff] %v5292_v48  ;;  %v2311_v22 = vrot.slane %v2310_v49, 2  ;;  %v1448_v29 = vmax.f32 %v1446_v52, %v1447_v8  ;;  %v1927_v23 = vrot.slane %v1926_v17, 2  ;;  %v2017_v53 = vrot.slane %v2016_v60, 2  ;;  %v1390_v52 = vld [vmem:[%s4430_s27 + $0xc8] sm:$0xff]  ;;  %v5304_v8 = vpop.permute.xlu1 %1263 }
 0x447   : > { %7398 = vst [vmem:[#allocation57_spill] sm:$0xff] %v5294_v15  ;;  %v2023_v39 = vrot.slane %v2022_v62, 2  ;;  %v1768_v45 = vadd.f32 %v1767_v11, %v1766_v37  ;;  %v1675_v42 = vrot.slane %v1629_v1, 4  ;;  %v1681_v47 = vrot.slane %v1630_v55, 4 }
 0x448   : > { %v5296_v5 = vadd.f32 %v2271_v25, %v2270_v4  ;;  %v5298_v19 = vadd.f32 %v2277_v44, %v2276_v21  ;;  %v2210_v31 = vmax.f32 %v2208_v32, %v2209_v34  ;;  %v2216_v9 = vmax.f32 %v2214_v16, %v2215_v38  ;;  %7400 = vst [vmem:[#allocation59_spill] sm:$0xff] %v5304_v8 }
 0x449   : > { %v5300_v58 = vadd.f32 %v2305_v24, %v2304_v18  ;;  %v1544_v30 = vadd.f32 %v1543_v27, %v1542_v36  ;;  %v1922_v40 = vmax.f32 %v1920_v10, %v1921_v41  ;;  %v1673_v35 = vrot.slane %v1672_v2, 1 }
 0x44a   : > { %v5306_v6 = vadd.f32 %v2311_v22, %v2310_v49  ;;  %v1449_v11 = vrot.slane %v1448_v29, 1  ;;  %v1928_v37 = vmax.f32 %v1926_v17, %v1927_v23  ;;  %v2018_v0 = vadd.f32 %v2017_v53, %v2016_v60  ;;  %v1392_v53 = vld [vmem:[%s4430_s27 + $0x108] sm:$0xff] }
 0x44b   : > { %7399 = vst [vmem:[#allocation58_spill] sm:$0xff] %v5300_v58  ;;  %v2024_v4 = vadd.f32 %v2023_v39, %v2022_v62  ;;  %v1769_v25 = vrot.slane %v1768_v45, 1  ;;  %v1676_v21 = vmax.f32 %v1629_v1, %v1675_v42  ;;  %v1682_v44 = vmax.f32 %v1630_v55, %v1681_v47 }
 0x44c   : > { %7401 = vst [vmem:[#allocation60_spill] sm:$0xff] %v5306_v6  ;;  %v1772_v34 = vadd.f32 %v1675_v42, %v1629_v1  ;;  %v1778_v32 = vadd.f32 %v1681_v47, %v1630_v55  ;;  %v1405_v41 = vmul.f32 %v1389_v63, %v5304_v8  ;;  %v1406_v16 = vmul.f32 %v1390_v52, %v5304_v8  ;;  %v1391_v1 = vld [vmem:[%s4430_s27 + $0x100] sm:$0xff]  ;;  %v5312_v55 = vpop.permute.xlu2 %1288 }
 0x44d   : > { %v2211_v18 = vrot.slane %v2210_v31, 1  ;;  %v1545_v36 = vrot.slane %v1544_v30, 1  ;;  %v1923_v10 = vrot.slane %v1922_v40, 1  ;;  %v1674_v49 = vmax.f32 %v1672_v2, %v1673_v35  ;;  %7402 = vst [vmem:[#allocation61_spill] sm:$0xff] %v5312_v55 }
 0x44e   : > { %v2217_v38 = vrot.slane %v2216_v9, 1  ;;  %v1450_v24 = vmax.f32 %v1448_v29, %v1449_v11  ;;  %v1929_v17 = vrot.slane %v1928_v37, 1  ;;  %v2019_v60 = vrot.slane %v2018_v0, 1 }
 0x44f   : > { %v2025_v62 = vrot.slane %v2024_v4, 1  ;;  %v1770_v27 = vadd.f32 %v1769_v25, %v1768_v45  ;;  %v1677_v22 = vrot.slane %v1676_v21, 2  ;;  %v1683_v23 = vrot.slane %v1682_v44, 2 }
 0x450   : > { %v1773_v39 = vrot.slane %v1772_v34, 2  ;;  %v1779_v63 = vrot.slane %v1778_v32, 2  ;;  %v1451_v42 = vrot.slane %v1405_v41, 4  ;;  %v1457_v47 = vrot.slane %v1406_v16, 4 }
 0x451   : > { %v1546_v8 = vadd.f32 %v1545_v36, %v1544_v30  ;;  %v1924_v2 = vmax.f32 %v1922_v40, %v1923_v10  ;;  %v1836_v35 = vmax.f32 %v1450_v24, %v1674_v49  ;;  %v1930_v29 = vmax.f32 %v1928_v37, %v1929_v17  ;;  %v5331_v24 = vpop.permute.xlu1 %1275 }
 0x452   : > { %v2020_v11 = vadd.f32 %v2019_v60, %v2018_v0  ;;  %v1407_v51 = vmul.f32 %v1391_v1, %v5312_v55  ;;  %v1408_v45 = vmul.f32 %v1392_v53, %v5312_v55  ;;  %v2026_v25 = vadd.f32 %v2025_v62, %v2024_v4  ;;  %7404 = vst [vmem:[#allocation62_spill] sm:$0xff] %v5331_v24  ;;  %v1393_v60 = vld [vmem:[%s4430_s27 + $0x140] sm:$0xff] }
 0x453   : > { %v1852_v59 = vadd.f32 %v1770_v27, %v1546_v8  ;;  %v1678_v12 = vmax.f32 %v1676_v21, %v1677_v22  ;;  %v1684_v7 = vmax.f32 %v1682_v44, %v1683_v23  ;;  %v1774_v54 = vadd.f32 %v1773_v39, %v1772_v34 }
 0x454   : > { %v1780_v6 = vadd.f32 %v1779_v63, %v1778_v32  ;;  %v1452_v57 = vmax.f32 %v1405_v41, %v1451_v42  ;;  %v1458_v13 = vmax.f32 %v1406_v16, %v1457_v47  ;;  %v7403_v30 = vmax.f32 %v5252_v3, %v5254_v46  ;;  %v1869_v3 = vld [vmem:[%s4430_s27 + $0xe0] sm:$0xff]  ;;  %v1870_v46 = vld [vmem:[%s4430_s27 + $0xe8] sm:$0xff]  ;;  %v5339_v62 = vpop.permute.xlu2 %1313 }
 0x455   : > { %v5322_v0 = vmax.f32 %v1836_v35, %v1930_v29  ;;  %v1548_v37 = vadd.f32 %v1451_v42, %v1405_v41  ;;  %v1554_v36 = vadd.f32 %v1457_v47, %v1406_v16  ;;  %v5324_v10 = vmax.f32 %v2210_v31, %v2211_v18  ;;  %7405 = vst [vmem:[#allocation63_spill] sm:$0xff] %v5339_v62 }
 0x456   : > { %v5320_v40 = vmax.f32 %v7403_v30, %v1924_v2  ;;  %v5326_v8 = vmax.f32 %v2216_v9, %v2217_v38  ;;  %v1463_v4 = vrot.slane %v1407_v51, 4  ;;  %v1469_v21 = vrot.slane %v1408_v45, 4 }
 0x457   : > { %v2107_v44 = vadd.f32 %v2020_v11, %v5260_v50  ;;  %v2108_v34 = vadd.f32 %v2026_v25, %v1852_v59  ;;  %v1679_v32 = vrot.slane %v1678_v12, 1  ;;  %v1685_v49 = vrot.slane %v1684_v7, 1  ;;  %v1394_v59 = vld [vmem:[%s4430_s27 + $0x148] sm:$0xff] }
 0x458   : > { %v1775_v17 = vrot.slane %v1774_v54, 1  ;;  %v1781_v41 = vrot.slane %v1780_v6, 1  ;;  %v1453_v16 = vrot.slane %v1452_v57, 2  ;;  %v1459_v31 = vrot.slane %v1458_v13, 2 }
 0x459   : > { %v1549_v38 = vrot.slane %v1548_v37, 2  ;;  %v1555_v50 = vrot.slane %v1554_v36, 2  ;;  %v1464_v27 = vmax.f32 %v1407_v51, %v1463_v4  ;;  %v1470_v22 = vmax.f32 %v1408_v45, %v1469_v21 }
 0x45a   : > { %v1885_v23 = vmul.f32 %v1869_v3, %v5331_v24  ;;  %v1886_v1 = vmul.f32 %v1870_v46, %v5331_v24  ;;  %v2347_v53 = vadd.f32 %v5278_v56, %v2107_v44  ;;  %v2348_v39 = vadd.f32 %v5280_v33, %v2108_v34 }
 0x45b   : > { %v1560_v63 = vadd.f32 %v1463_v4, %v1407_v51  ;;  %v1566_v42 = vadd.f32 %v1469_v21, %v1408_v45  ;;  %v1454_v47 = vmax.f32 %v1452_v57, %v1453_v16  ;;  %v1460_v2 = vmax.f32 %v1458_v13, %v1459_v31  ;;  %v1615_v31 = vld [vmem:[%s4430_s27 + $0x110] sm:$0xff] }
 0x45c   : > { %v1409_v35 = vmul.f32 %v1393_v60, %v5339_v62  ;;  %v1410_v29 = vmul.f32 %v1394_v59, %v5339_v62  ;;  %v5347_v11 = vmax.f32 %v1678_v12, %v1679_v32  ;;  %v5349_v25 = vmax.f32 %v1684_v7, %v1685_v49 }
 0x45d   : > { %v1550_v30 = vadd.f32 %v1549_v38, %v1548_v37  ;;  %v1556_v3 = vadd.f32 %v1555_v50, %v1554_v36  ;;  %v1465_v52 = vrot.slane %v1464_v27, 2  ;;  %v1471_v46 = vrot.slane %v1470_v22, 2  ;;  %v1616_v38 = vld [vmem:[%s4430_s27 + $0x118] sm:$0xff]  ;;  %v5357_v50 = vpop.permute.xlu1 %1294 }
 0x45e   : > { %v1931_v9 = vrot.slane %v1885_v23, 4  ;;  %v1937_v56 = vrot.slane %v1886_v1, 4  ;;  %v1776_v44 = vadd.f32 %v1775_v17, %v1774_v54  ;;  %v1782_v33 = vadd.f32 %v1781_v41, %v1780_v6  ;;  %7408 = vst [vmem:[#allocation66_spill] sm:$0xff] %v5357_v50 }
 0x45f   : > { %v1561_v51 = vrot.slane %v1560_v63, 2  ;;  %v1567_v45 = vrot.slane %v1566_v42, 2  ;;  %v1455_v57 = vrot.slane %v1454_v47, 1  ;;  %v1461_v13 = vrot.slane %v1460_v2, 1 }
 0x460   : > { %v1475_v4 = vrot.slane %v1409_v35, 4  ;;  %v1481_v21 = vrot.slane %v1410_v29, 4  ;;  %v5351_v12 = vmul.f32 0.03125, %v2347_v53  ;;  %v5353_v7 = vmul.f32 0.03125, %v2348_v39 }
 0x461   : > { %v1551_v37 = vrot.slane %v1550_v30, 1  ;;  %v1557_v36 = vrot.slane %v1556_v3, 1  ;;  %v1466_v34 = vmax.f32 %v1464_v27, %v1465_v52  ;;  %v1472_v32 = vmax.f32 %v1470_v22, %v1471_v46 }
 0x462   : > { %7406 = vst [vmem:[#allocation64_spill] sm:$0xff] %v5351_v12  ;;  %v1932_v49 = vmax.f32 %v1885_v23, %v1931_v9  ;;  %v1938_v16 = vmax.f32 %v1886_v1, %v1937_v56  ;;  %v1562_v54 = vadd.f32 %v1561_v51, %v1560_v63  ;;  %v1568_v6 = vadd.f32 %v1567_v45, %v1566_v42 }
 0x463   : > { %7407 = vst [vmem:[#allocation65_spill] sm:$0xff] %v5353_v7  ;;  %v2028_v17 = vadd.f32 %v1931_v9, %v1885_v23  ;;  %v2034_v41 = vadd.f32 %v1937_v56, %v1886_v1  ;;  %v5359_v60 = vmax.f32 %v1454_v47, %v1455_v57  ;;  %v5361_v59 = vmax.f32 %v1460_v2, %v1461_v13 }
 0x464   : > { %v1476_v53 = vmax.f32 %v1409_v35, %v1475_v4  ;;  %v1482_v39 = vmax.f32 %v1410_v29, %v1481_v21  ;;  %v1552_v18 = vadd.f32 %v1551_v37, %v1550_v30  ;;  %v1558_v62 = vadd.f32 %v1557_v36, %v1556_v3  ;;  %v1871_v37 = vld [vmem:[%s4430_s27 + $0x120] sm:$0xff]  ;;  %v1872_v36 = vld [vmem:[%s4430_s27 + $0x128] sm:$0xff] }
 0x465   : > { %v1572_v52 = vadd.f32 %v1475_v4, %v1409_v35  ;;  %v1578_v27 = vadd.f32 %v1481_v21, %v1410_v29  ;;  %v1933_v22 = vrot.slane %v1932_v49, 2  ;;  %v1939_v46 = vrot.slane %v1938_v16, 2 }
 0x466   : > { %v1631_v63 = vmul.f32 %v1615_v31, %v5357_v50  ;;  %v1632_v9 = vmul.f32 %v1616_v38, %v5357_v50  ;;  %v1467_v23 = vrot.slane %v1466_v34, 1  ;;  %v1473_v1 = vrot.slane %v1472_v32, 1  ;;  %v5371_v31 = vpop.permute.xlu2 %1300 }
 0x467   : > { %v2029_v42 = vrot.slane %v2028_v17, 2  ;;  %v2035_v47 = vrot.slane %v2034_v41, 2  ;;  %v1563_v2 = vrot.slane %v1562_v54, 1  ;;  %v1569_v56 = vrot.slane %v1568_v6, 1  ;;  %7409 = vst [vmem:[#allocation67_spill] sm:$0xff] %v5371_v31 }
 0x468   : > { %v1477_v51 = vrot.slane %v1476_v53, 2  ;;  %v1483_v45 = vrot.slane %v1482_v39, 2  ;;  %v1837_v35 = vmax.f32 %v5359_v60, %v5347_v11  ;;  %v1838_v29 = vmax.f32 %v5361_v59, %v5349_v25 }
 0x469   : > { %v1573_v30 = vrot.slane %v1572_v52, 2  ;;  %v1579_v3 = vrot.slane %v1578_v27, 2  ;;  %v1934_v57 = vmax.f32 %v1932_v49, %v1933_v22  ;;  %v1940_v13 = vmax.f32 %v1938_v16, %v1939_v46 }
 0x46a   : > { %v1687_v4 = vrot.slane %v1631_v63, 4  ;;  %v1693_v21 = vrot.slane %v1632_v9, 4  ;;  %v1853_v38 = vadd.f32 %v1776_v44, %v1552_v18  ;;  %v1854_v50 = vadd.f32 %v1782_v33, %v1558_v62 }
 0x46b   : > { %v2030_v24 = vadd.f32 %v2029_v42, %v2028_v17  ;;  %v2036_v55 = vadd.f32 %v2035_v47, %v2034_v41  ;;  %v5373_v58 = vmax.f32 %v1466_v34, %v1467_v23  ;;  %v5375_v11 = vmax.f32 %v1472_v32, %v1473_v1  ;;  %v1617_v42 = vld [vmem:[%s4430_s27 + $0x150] sm:$0xff]  ;;  %v1618_v47 = vld [vmem:[%s4430_s27 + $0x158] sm:$0xff] }
 0x46c   : > { %v1478_v60 = vmax.f32 %v1476_v53, %v1477_v51  ;;  %v1484_v25 = vmax.f32 %v1482_v39, %v1483_v45  ;;  %v1574_v59 = vadd.f32 %v1573_v30, %v1572_v52  ;;  %v1580_v12 = vadd.f32 %v1579_v3, %v1578_v27  ;;  %v5385_v51 = vpop.permute.xlu1 %1319 }
 0x46d   : > { %v1887_v49 = vmul.f32 %v1871_v37, %v5371_v31  ;;  %v1888_v16 = vmul.f32 %v1872_v36, %v5371_v31  ;;  %v1935_v22 = vrot.slane %v1934_v57, 1  ;;  %v1941_v46 = vrot.slane %v1940_v13, 1  ;;  %7410 = vst [vmem:[#allocation68_spill] sm:$0xff] %v5385_v51 }
 0x46e   : > { %v1688_v18 = vmax.f32 %v1631_v63, %v1687_v4  ;;  %v1694_v62 = vmax.f32 %v1632_v9, %v1693_v21  ;;  %v2031_v44 = vrot.slane %v2030_v24, 1  ;;  %v2037_v33 = vrot.slane %v2036_v55, 1 }
 0x46f   : > { %v1784_v34 = vadd.f32 %v1687_v4, %v1631_v63  ;;  %v1790_v17 = vadd.f32 %v1693_v21, %v1632_v9  ;;  %v5379_v32 = vadd.f32 %v1563_v2, %v1562_v54  ;;  %v5381_v41 = vadd.f32 %v1569_v56, %v1568_v6 }
 0x470   : > { %v1479_v53 = vrot.slane %v1478_v60, 1  ;;  %v1485_v39 = vrot.slane %v1484_v25, 1  ;;  %v1575_v52 = vrot.slane %v1574_v59, 1  ;;  %v1581_v27 = vrot.slane %v1580_v12, 1 }
 0x471   : > { %v1943_v23 = vrot.slane %v1887_v49, 4  ;;  %v1949_v1 = vrot.slane %v1888_v16, 4  ;;  %v1936_v45 = vmax.f32 %v1934_v57, %v1935_v22  ;;  %v1942_v30 = vmax.f32 %v1940_v13, %v1941_v46 }
 0x472   : > { %v1689_v3 = vrot.slane %v1688_v18, 2  ;;  %v1695_v37 = vrot.slane %v1694_v62, 2  ;;  %v2032_v63 = vadd.f32 %v2031_v44, %v2030_v24  ;;  %v2038_v9 = vadd.f32 %v2037_v33, %v2036_v55 }
 0x473   : > { %v1785_v54 = vrot.slane %v1784_v34, 2  ;;  %v1791_v2 = vrot.slane %v1790_v17, 2  ;;  %v5387_v6 = vmax.f32 %v1478_v60, %v1479_v53  ;;  %v5389_v56 = vmax.f32 %v1484_v25, %v1485_v39  ;;  %v1619_v53 = vld [vmem:[%s4430_s27 + $0x190] sm:$0xff]  ;;  %v1620_v39 = vld [vmem:[%s4430_s27 + $0x198] sm:$0xff] }
 0x474   : > { %v1633_v4 = vmul.f32 %v1617_v42, %v5385_v51  ;;  %v1634_v21 = vmul.f32 %v1618_v47, %v5385_v51  ;;  %v1944_v36 = vmax.f32 %v1887_v49, %v1943_v23  ;;  %v1950_v31 = vmax.f32 %v1888_v16, %v1949_v1  ;;  %v5403_v42 = vpop.permute.xlu2 %1344 }
 0x475   : > { %v2040_v57 = vadd.f32 %v1943_v23, %v1887_v49  ;;  %v2046_v13 = vadd.f32 %v1949_v1, %v1888_v16  ;;  %v5393_v22 = vadd.f32 %v1575_v52, %v1574_v59  ;;  %v5395_v24 = vadd.f32 %v1581_v27, %v1580_v12  ;;  %7412 = vst [vmem:[#allocation70_spill] sm:$0xff] %v5403_v42 }
 0x476   : > { %v1690_v55 = vmax.f32 %v1688_v18, %v1689_v3  ;;  %v1696_v46 = vmax.f32 %v1694_v62, %v1695_v37  ;;  %v5397_v60 = vmax.f32 %v1837_v35, %v1936_v45  ;;  %v5399_v44 = vmax.f32 %v1838_v29, %v1942_v30 }
 0x477   : > { %v1786_v25 = vadd.f32 %v1785_v54, %v1784_v34  ;;  %v1792_v33 = vadd.f32 %v1791_v2, %v1790_v17  ;;  %v2109_v47 = vadd.f32 %v2032_v63, %v1853_v38  ;;  %v2110_v51 = vadd.f32 %v2038_v9, %v1854_v50 }
 0x478   : > { %7411 = vst [vmem:[#allocation69_spill] sm:$0xff] %v5397_v60  ;;  %v1699_v49 = vrot.slane %v1633_v4, 4  ;;  %v1705_v16 = vrot.slane %v1634_v21, 4  ;;  %v1945_v59 = vrot.slane %v1944_v36, 2  ;;  %v1951_v52 = vrot.slane %v1950_v31, 2 }
 0x479   : > { %v2041_v12 = vrot.slane %v2040_v57, 2  ;;  %v2047_v27 = vrot.slane %v2046_v13, 2  ;;  %v1691_v18 = vrot.slane %v1690_v55, 1  ;;  %v1697_v62 = vrot.slane %v1696_v46, 1 }
 0x47a   : > { %v1635_v35 = vmul.f32 %v1619_v53, %v5403_v42  ;;  %v1636_v29 = vmul.f32 %v1620_v39, %v5403_v42  ;;  %v1787_v38 = vrot.slane %v1786_v25, 1  ;;  %v1793_v50 = vrot.slane %v1792_v33, 1 }
 0x47b   : > { %v1700_v23 = vmax.f32 %v1633_v4, %v1699_v49  ;;  %v1706_v1 = vmax.f32 %v1634_v21, %v1705_v16  ;;  %v1796_v45 = vadd.f32 %v1699_v49, %v1633_v4  ;;  %v1802_v30 = vadd.f32 %v1705_v16, %v1634_v21  ;;  %v5417_v49 = vpop.permute.xlu1 %1338 }
 0x47c   : > { %v1946_v3 = vmax.f32 %v1944_v36, %v1945_v59  ;;  %v1952_v37 = vmax.f32 %v1950_v31, %v1951_v52  ;;  %v2042_v63 = vadd.f32 %v2041_v12, %v2040_v57  ;;  %v2048_v9 = vadd.f32 %v2047_v27, %v2046_v13  ;;  %7415 = vst [vmem:[#allocation73_spill] sm:$0xff] %v5417_v49  ;;  %v5425_v27 = vpop.permute.xlu2 %1363 }
 0x47d   : > { %v1692_v54 = vmax.f32 %v1690_v55, %v1691_v18  ;;  %v1698_v2 = vmax.f32 %v1696_v46, %v1697_v62  ;;  %v1711_v53 = vrot.slane %v1635_v35, 4  ;;  %v1717_v39 = vrot.slane %v1636_v29, 4  ;;  %7416 = vst [vmem:[#allocation74_spill] sm:$0xff] %v5425_v27 }
 0x47e   : > { %v5412_v42 = vadd.f32 %v5296_v5, %v2109_v47  ;;  %v5415_v34 = vadd.f32 %v5298_v19, %v2110_v51  ;;  %v1788_v17 = vadd.f32 %v1787_v38, %v1786_v25  ;;  %v1794_v7 = vadd.f32 %v1793_v50, %v1792_v33  ;;  %v1395_v47 = vld [vmem:[%s4430_s27 + $0x180] sm:$0xff]  ;;  %v1396_v33 = vld [vmem:[%s4430_s27 + $0x188] sm:$0xff] }
 0x47f   : > { %v1701_v4 = vrot.slane %v1700_v23, 2  ;;  %v1707_v21 = vrot.slane %v1706_v1, 2  ;;  %v1797_v36 = vrot.slane %v1796_v45, 2  ;;  %v1803_v31 = vrot.slane %v1802_v30, 2 }
 0x480   : > { %7413 = vst [vmem:[#allocation71_spill] sm:$0xff] %v5412_v42  ;;  %v1947_v57 = vrot.slane %v1946_v3, 1  ;;  %v1953_v13 = vrot.slane %v1952_v37, 1  ;;  %v2043_v55 = vrot.slane %v2042_v63, 1  ;;  %v2049_v46 = vrot.slane %v2048_v9, 1 }
 0x481   : > { %7414 = vst [vmem:[#allocation72_spill] sm:$0xff] %v5415_v34  ;;  %v1839_v5 = vmax.f32 %v5373_v58, %v1692_v54  ;;  %v1840_v19 = vmax.f32 %v5375_v11, %v1698_v2  ;;  %v1712_v51 = vmax.f32 %v1635_v35, %v1711_v53  ;;  %v1718_v25 = vmax.f32 %v1636_v29, %v1717_v39  ;;  %v1397_v58 = vld [vmem:[%s4430_s27 + $0x1c0] sm:$0xff]  ;;  %v1398_v54 = vld [vmem:[%s4430_s27 + $0x1c8] sm:$0xff] }
 0x482   : > { %v1855_v16 = vadd.f32 %v1788_v17, %v5379_v32  ;;  %v1856_v59 = vadd.f32 %v1794_v7, %v5381_v41  ;;  %v1808_v52 = vadd.f32 %v1711_v53, %v1635_v35  ;;  %v1814_v12 = vadd.f32 %v1717_v39, %v1636_v29 }
 0x483   : > { %v1702_v18 = vmax.f32 %v1700_v23, %v1701_v4  ;;  %v1708_v62 = vmax.f32 %v1706_v1, %v1707_v21  ;;  %v1798_v38 = vadd.f32 %v1797_v36, %v1796_v45  ;;  %v1804_v50 = vadd.f32 %v1803_v31, %v1802_v30  ;;  %v5437_v39 = vpop.permute.xlu1 %1325 }
 0x484   : > { %v1948_v42 = vmax.f32 %v1946_v3, %v1947_v57  ;;  %v1954_v11 = vmax.f32 %v1952_v37, %v1953_v13  ;;  %v1411_v2 = vmul.f32 %v1395_v47, %v5417_v49  ;;  %v1412_v34 = vmul.f32 %v1396_v33, %v5417_v49  ;;  %7417 = vst [vmem:[#allocation75_spill] sm:$0xff] %v5437_v39  ;;  %v1873_v57 = vld [vmem:[%s4430_s27 + $0x160] sm:$0xff] }
 0x485   : > { %v2044_v48 = vadd.f32 %v2043_v55, %v2042_v63  ;;  %v2050_v32 = vadd.f32 %v2049_v46, %v2048_v9  ;;  %v1713_v17 = vrot.slane %v1712_v51, 2  ;;  %v1719_v7 = vrot.slane %v1718_v25, 2 }
 0x486   : > { %v1809_v41 = vrot.slane %v1808_v52, 2  ;;  %v1815_v35 = vrot.slane %v1814_v12, 2  ;;  %v1413_v29 = vmul.f32 %v1397_v58, %v5425_v27  ;;  %v1414_v23 = vmul.f32 %v1398_v54, %v5425_v27  ;;  %v1876_v54 = vld [vmem:[%s4430_s27 + $0x1a8] sm:$0xff] }
 0x487   : > { %v1703_v1 = vrot.slane %v1702_v18, 1  ;;  %v1709_v45 = vrot.slane %v1708_v62, 1  ;;  %v1799_v30 = vrot.slane %v1798_v38, 1  ;;  %v1805_v3 = vrot.slane %v1804_v50, 1 }
 0x488   : > { %v5433_v37 = vmax.f32 %v1839_v5, %v1948_v42  ;;  %v5435_v53 = vmax.f32 %v1840_v19, %v1954_v11  ;;  %v1487_v63 = vrot.slane %v1411_v2, 4  ;;  %v1493_v9 = vrot.slane %v1412_v34, 4  ;;  %v1874_v42 = vld [vmem:[%s4430_s27 + $0x168] sm:$0xff]  ;;  %v1875_v5 = vld [vmem:[%s4430_s27 + $0x1a0] sm:$0xff]  ;;  %v5446_v19 = vpop.permute.xlu2 %1350 }
 0x489   : > { %v5439_v4 = vadd.f32 %v2044_v48, %v1855_v16  ;;  %v5441_v21 = vadd.f32 %v2050_v32, %v1856_v59  ;;  %v1714_v36 = vmax.f32 %v1712_v51, %v1713_v17  ;;  %v1720_v31 = vmax.f32 %v1718_v25, %v1719_v7  ;;  %7420 = vst [vmem:[#allocation78_spill] sm:$0xff] %v5446_v19 }
 0x48a   : > { %v1810_v13 = vadd.f32 %v1809_v41, %v1808_v52  ;;  %v1816_v55 = vadd.f32 %v1815_v35, %v1814_v12  ;;  %v1499_v46 = vrot.slane %v1413_v29, 4  ;;  %v1505_v47 = vrot.slane %v1414_v23, 4 }
 0x48b   : > { %7418 = vst [vmem:[#allocation76_spill] sm:$0xff] %v5439_v4  ;;  %v5448_v33 = vmax.f32 %v1702_v18, %v1703_v1  ;;  %v5450_v58 = vmax.f32 %v1708_v62, %v1709_v45  ;;  %v1800_v48 = vadd.f32 %v1799_v30, %v1798_v38  ;;  %v1806_v16 = vadd.f32 %v1805_v3, %v1804_v50 }
 0x48c   : > { %7419 = vst [vmem:[#allocation77_spill] sm:$0xff] %v5441_v21  ;;  %v1488_v59 = vmax.f32 %v1411_v2, %v1487_v63  ;;  %v1494_v11 = vmax.f32 %v1412_v34, %v1493_v9  ;;  %v1584_v51 = vadd.f32 %v1487_v63, %v1411_v2  ;;  %v5454_v25 = vmul.f32 %v1873_v57, %v5437_v39  ;;  %v1307_v63 = vpop.permute.xlu1 %1306 }
 0x48d   : > { %v1715_v52 = vrot.slane %v1714_v36, 1  ;;  %v1721_v12 = vrot.slane %v1720_v31, 1  ;;  %v5457_v32 = vmul.f32 %v1874_v42, %v5437_v39  ;;  %v5460_v17 = vmul.f32 %v1875_v5, %v5446_v19 }
 0x48e   : > { %v1811_v18 = vrot.slane %v1810_v13, 1  ;;  %v1500_v62 = vmax.f32 %v1413_v29, %v1499_v46  ;;  %v1506_v7 = vmax.f32 %v1414_v23, %v1505_v47  ;;  %v5463_v38 = vmul.f32 %v1876_v54, %v5446_v19 }
 0x48f   : > { %v1817_v41 = vrot.slane %v1816_v55, 1  ;;  %v1590_v35 = vadd.f32 %v1493_v9, %v1412_v34  ;;  %v1489_v1 = vrot.slane %v1488_v59, 2  ;;  %v1495_v45 = vrot.slane %v1494_v11, 2 }
 0x490   : > { %v1585_v30 = vrot.slane %v1584_v51, 2  ;;  %v1955_v3 = vrot.slane %v5454_v25, 4  ;;  %v5471_v57 = vadd.f32 %v1800_v48, %v5393_v22  ;;  %v5474_v42 = vadd.f32 %v1806_v16, %v5395_v24 }
 0x491   : > { %v1961_v5 = vrot.slane %v5457_v32, 4  ;;  %v5478_v50 = vmax.f32 %v1714_v36, %v1715_v52  ;;  %v1501_v2 = vrot.slane %v1500_v62, 2  ;;  %v1507_v34 = vrot.slane %v1506_v7, 2 }
 0x492   : > { %7421 = vst [vmem:[#allocation79_spill] sm:$0xff] %v5471_v57  ;;  %v1973_v9 = vrot.slane %v5463_v38, 4  ;;  %v5481_v19 = vmax.f32 %v1720_v31, %v1721_v12  ;;  %v1591_v39 = vrot.slane %v1590_v35, 2  ;;  %v1596_v22 = vadd.f32 %v1499_v46, %v1413_v29 }
 0x493   : > { %7422 = vst [vmem:[#allocation80_spill] sm:$0xff] %v5474_v42  ;;  %v1602_v48 = vadd.f32 %v1505_v47, %v1414_v23  ;;  %v1490_v24 = vmax.f32 %v1488_v59, %v1489_v1  ;;  %v1496_v16 = vmax.f32 %v1494_v11, %v1495_v45  ;;  %v5483_v27 = vadd.f32 %v1585_v30, %v1584_v51  ;;  %v3982_v47 = vld [vmem:[%s4430_s27 + $0x130] sm:$0xff]  ;;  %v1877_v11 = vld [vmem:[%s4430_s27 + $0x1e0] sm:$0xff]  ;;  %v1878_v51 = vld [vmem:[%s4430_s27 + $0x1e8] sm:$0xff]  ;;  %v5500_v1 = vpop.permute.xlu2 %1375 }
 0x494   : > { %v1956_v54 = vmax.f32 %v5454_v25, %v1955_v3  ;;  %v5486_v36 = vadd.f32 %v1811_v18, %v1810_v13  ;;  %v5488_v52 = vadd.f32 %v1817_v41, %v1816_v55  ;;  %v1962_v49 = vmax.f32 %v5457_v32, %v1961_v5  ;;  %7428 = vst [vmem:[#allocation85_spill] sm:$0xff] %v5500_v1  ;;  %v3983_v41 = vld [vmem:[%s4430_s27 + $0x138] sm:$0xff] }
 0x495   : > { %7423 = vst [vmem:[#allocation81_spill] sm:$0xff] %v5483_v27  ;;  %v7426_v31 = vrot.slane %v5460_v17, 4  ;;  %v1502_v29 = vmax.f32 %v1500_v62, %v1501_v2  ;;  %v1508_v46 = vmax.f32 %v1506_v7, %v1507_v34  ;;  %v1974_v23 = vmax.f32 %v5463_v38, %v1973_v9 }
 0x496   : > { %7424 = vst [vmem:[#allocation82_spill] sm:$0xff] %v5486_v36  ;;  %v5496_v59 = vmul.f32 %v3982_v47, %v1307_v63  ;;  %v5502_v13 = vadd.f32 %v1591_v39, %v1590_v35  ;;  %v1597_v55 = vrot.slane %v1596_v22, 2  ;;  %v1603_v18 = vrot.slane %v1602_v48, 2 }
 0x497   : > { %7425 = vst [vmem:[#allocation83_spill] sm:$0xff] %v5488_v52  ;;  %v1968_v12 = vmax.f32 %v5460_v17, %v7426_v31  ;;  %v5505_v45 = vmul.f32 %v3983_v41, %v1307_v63  ;;  %v1491_v30 = vrot.slane %v1490_v24, 1  ;;  %v1497_v31 = vrot.slane %v1496_v16, 1  ;;  %v1332_v63 = vpop.permute.xlu1 %1331 }
 0x498   : > { %7427 = vst [vmem:[#allocation84_spill] sm:$0xff] %v5496_v59  ;;  %v1957_v7 = vrot.slane %v1956_v54, 2  ;;  %v1963_v2 = vrot.slane %v1962_v49, 2  ;;  %v5509_v47 = vmul.f32 %v1877_v11, %v5500_v1  ;;  %v5512_v4 = vmul.f32 %v1878_v51, %v5500_v1 }
 0x499   : > { %7429 = vst [vmem:[#allocation86_spill] sm:$0xff] %v5502_v13  ;;  %v1969_v34 = vrot.slane %v1968_v12, 2  ;;  %v1503_v39 = vrot.slane %v1502_v29, 1  ;;  %v1509_v35 = vrot.slane %v1508_v46, 1  ;;  %v1975_v21 = vrot.slane %v1974_v23, 2 }
 0x49a   : > { %7430 = vst [vmem:[#allocation87_spill] sm:$0xff] %v5505_v45  ;;  %v5515_v41 = vadd.f32 %v1597_v55, %v1596_v22  ;;  %v2052_v52 = vadd.f32 %v1955_v3, %v5454_v25  ;;  %v2058_v62 = vadd.f32 %v1961_v5, %v5457_v32  ;;  %v2189_v42 = vrot.slane %v5505_v45, 4 }
 0x49b   : > { %v1492_v36 = vmax.f32 %v1490_v24, %v1491_v30  ;;  %v1498_v11 = vmax.f32 %v1496_v16, %v1497_v31  ;;  %v5520_v27 = vadd.f32 %v1603_v18, %v1602_v48  ;;  %v1958_v51 = vmax.f32 %v1956_v54, %v1957_v7 }
 0x49c   : > { %7431 = vst [vmem:[#allocation88_spill] sm:$0xff] %v5515_v41  ;;  %v1964_v1 = vmax.f32 %v1962_v49, %v1963_v2  ;;  %v1970_v13 = vmax.f32 %v1968_v12, %v1969_v34  ;;  %v7244_v60 = vrot.slane %v5509_v47, 4  ;;  %v7243_v57 = vrot.slane %v5512_v4, 4  ;;  %v3986_v41 = vld [vmem:[%s4430_s27 + $0x1f0] sm:$0xff] }
 0x49d   : > { %7432 = vst [vmem:[#allocation89_spill] sm:$0xff] %v5520_v27  ;;  %v5524_v15 = vmax.f32 %v1502_v29, %v1503_v39  ;;  %v5526_v22 = vmax.f32 %v1508_v46, %v1509_v35  ;;  %v1976_v25 = vmax.f32 %v1974_v23, %v1975_v21  ;;  %v7433_v32 = vrot.slane %v5496_v59, 4  ;;  %v3984_v39 = vld [vmem:[%s4430_s27 + $0x170] sm:$0xff]  ;;  %v3985_v35 = vld [vmem:[%s4430_s27 + $0x178] sm:$0xff] }
 0x49e   : > { %v2053_v5 = vrot.slane %v2052_v52, 2  ;;  %v2059_v24 = vrot.slane %v2058_v62, 2  ;;  %v2070_v48 = vadd.f32 %v1973_v9, %v5463_v38  ;;  %v2190_v49 = vmax.f32 %v5505_v45, %v2189_v42 }
 0x49f   : > { %v2184_v3 = vmax.f32 %v5496_v59, %v7433_v32  ;;  %v1843_v54 = vmax.f32 %v1492_v36, %v5478_v50  ;;  %v1844_v16 = vmax.f32 %v1498_v11, %v5481_v19  ;;  %v1980_v12 = vmax.f32 %v5509_v47, %v7244_v60  ;;  %v1382_v32 = vpop.permute.xlu1 %1381 }
 0x4a0   : > { %v1986_v21 = vmax.f32 %v5512_v4, %v7243_v57  ;;  %v1959_v29 = vrot.slane %v1958_v51, 1  ;;  %v1965_v46 = vrot.slane %v1964_v1, 1  ;;  %v1971_v23 = vrot.slane %v1970_v13, 1 }
 0x4a1   : > { %v7434_v38 = vrot.slane %v5460_v17, 4  ;;  %v1977_v36 = vrot.slane %v1976_v25, 1  ;;  %v2185_v55 = vrot.slane %v2184_v3, 2  ;;  %v5550_v18 = vadd.f32 %v2053_v5, %v2052_v52 }
 0x4a2   : > { %v5552_v30 = vadd.f32 %v2059_v24, %v2058_v62  ;;  %v2071_v31 = vrot.slane %v2070_v48, 2  ;;  %v2191_v7 = vrot.slane %v2190_v49, 2  ;;  %v1981_v2 = vrot.slane %v1980_v12, 2 }
 0x4a3   : > { %v5544_v9 = vadd.f32 %v7434_v38, %v5460_v17  ;;  %v1987_v34 = vrot.slane %v1986_v21, 2  ;;  %v5555_v17 = vmul.f32 %v3984_v39, %v1332_v63  ;;  %v5558_v11 = vmul.f32 %v3985_v35, %v1332_v63  ;;  %v3987_v63 = vld [vmem:[%s4430_s27 + $0x1f8] sm:$0xff]  ;;  %s4253_s27 = smov 112  }
 0x4a4   : > { %v1960_v38 = vmax.f32 %v1958_v51, %v1959_v29  ;;  %v1966_v50 = vmax.f32 %v1964_v1, %v1965_v46  ;;  %v1972_v19 = vmax.f32 %v1970_v13, %v1971_v23  ;;  %v1978_v62 = vmax.f32 %v1976_v25, %v1977_v36 }
 0x4a5   : > { %7435 = vst [vmem:[#allocation90_spill] sm:$0xff] %v5555_v17  ;;  %v2186_v5 = vmax.f32 %v2184_v3, %v2185_v55  ;;  %v2195_v24 = vrot.slane %v5555_v17, 4  ;;  %v2201_v57 = vrot.slane %v5558_v11, 4  ;;  %v5563_v60 = vadd.f32 %v2071_v31, %v2070_v48 }
 0x4a6   : > { %7436 = vst [vmem:[#allocation91_spill] sm:$0xff] %v5558_v11  ;;  %v2192_v39 = vmax.f32 %v2190_v49, %v2191_v7  ;;  %v5566_v27 = vmul.f32 %v3986_v41, %v1382_v32  ;;  %v5569_v35 = vmul.f32 %v3987_v63, %v1382_v32  ;;  %v1982_v51 = vmax.f32 %v1980_v12, %v1981_v2 }
 0x4a7   : > { %v1988_v1 = vmax.f32 %v1986_v21, %v1987_v34  ;;  %v2196_v13 = vmax.f32 %v5555_v17, %v2195_v24  ;;  %v2202_v25 = vmax.f32 %v5558_v11, %v2201_v57  ;;  %v7439_v3 = vmax.f32 %v5387_v6, %v5448_v33 }
 0x4a8   : > { %7437 = vst [vmem:[#allocation92_spill] sm:$0xff] %v5566_v27  ;;  %v5578_v48 = vmax.f32 %v1843_v54, %v1972_v19  ;;  %v7440_v41 = vrot.slane %v5496_v59, 4  ;;  %v2286_v46 = vadd.f32 %v2189_v42, %v5505_v45  ;;  %v5584_v23 = vmax.f32 %v1844_v16, %v1978_v62 }
 0x4a9   : > { %7438 = vst [vmem:[#allocation93_spill] sm:$0xff] %v5569_v35  ;;  %v5576_v29 = vmax.f32 %v7439_v3, %v1960_v38  ;;  %v2187_v12 = vrot.slane %v2186_v5, 1  ;;  %v2197_v21 = vrot.slane %v2196_v13, 2  ;;  %v2203_v36 = vrot.slane %v2202_v25, 2 }
 0x4aa   : > { %v2280_v49 = vadd.f32 %v7440_v41, %v5496_v59  ;;  %v2193_v55 = vrot.slane %v2192_v39, 1  ;;  %v2219_v31 = vrot.slane %v5566_v27, 4  ;;  %v2225_v6 = vrot.slane %v5569_v35, 4 }
 0x4ab   : > { %v7441_v33 = vmax.f32 %v5322_v0, %v5276_v26  ;;  %v1983_v19 = vrot.slane %v1982_v51, 1  ;;  %v1989_v7 = vrot.slane %v1988_v1, 1  ;;  %v2198_v2 = vmax.f32 %v2196_v13, %v2197_v21 }
 0x4ac   : > { %v2204_v42 = vmax.f32 %v2202_v25, %v2203_v36  ;;  %v7442_v16 = vmax.f32 %v5389_v56, %v5450_v58  ;;  %v2281_v32 = vrot.slane %v2280_v49, 2  ;;  %v2220_v38 = vmax.f32 %v5566_v27, %v2219_v31 }
 0x4ad   : > { %v2399_v54 = vsel %vm870_vm5, %v7441_v33, %v5211_v61  ;;  %v2226_v62 = vmax.f32 %v5569_v35, %v2225_v6  ;;  %v2339_v63 = vmax.f32 %v5578_v48, %v5324_v10  ;;  %v2287_v3 = vrot.slane %v2286_v46, 2 }
 0x4ae   : > { %v2098_v34 = vmax.f32 %v7442_v16, %v1966_v50  ;;  %v2199_v26 = vrot.slane %v2198_v2, 1  ;;  %v2205_v0 = vrot.slane %v2204_v42, 1  ;;  %v2188_v61 = vmax.f32 %v2186_v5, %v2187_v12 }
 0x4af   : > { %v2194_v41 = vmax.f32 %v2192_v39, %v2193_v55  ;;  %v2221_v33 = vrot.slane %v2220_v38, 2  ;;  %v2227_v13 = vrot.slane %v2226_v62, 2  ;;  %v2340_v25 = vmax.f32 %v5584_v23, %v5326_v8 }
 0x4b0   : > { %v1984_v56 = vmax.f32 %v1982_v51, %v1983_v19  ;;  %v1990_v58 = vmax.f32 %v1988_v1, %v1989_v7  ;;  %v2206_v50 = vmax.f32 %v2204_v42, %v2205_v0  ;;  %v2200_v21 = vmax.f32 %v2198_v2, %v2199_v26  ;;  %v7454_v0 = vld [vmem:[#allocation65_spill] sm:$0xff] }
 0x4b1   : > { %v2292_v36 = vadd.f32 %v2195_v24, %v5555_v17  ;;  %v2222_v16 = vmax.f32 %v2220_v38, %v2221_v33  ;;  %v2228_v52 = vmax.f32 %v2226_v62, %v2227_v13  ;;  %v5603_v45 = vadd.f32 %v2281_v32, %v2280_v49 }
 0x4b2   : > { %v7443_v10 = vrot.slane %v5509_v47, 4  ;;  %v7444_v39 = vrot.slane %v5512_v4, 4  ;;  %v2298_v8 = vadd.f32 %v2201_v57, %v5558_v11  ;;  %v2335_v51 = vmax.f32 %v5433_v37, %v2188_v61 }
 0x4b3   : > { %v2336_v1 = vmax.f32 %v5435_v53, %v2194_v41  ;;  %v2223_v23 = vrot.slane %v2222_v16, 1  ;;  %v2229_v24 = vrot.slane %v2228_v52, 1  ;;  %v7445_v49 = vmax.f32 %v5524_v15, %v5163_v20 }
 0x4b4   : > { %v2076_v5 = vadd.f32 %v7443_v10, %v5509_v47  ;;  %v2082_v48 = vadd.f32 %v7444_v39, %v5512_v4  ;;  %v7446_v55 = vmax.f32 %v5526_v22, %v5226_v14  ;;  %v2338_v19 = vmax.f32 %v2098_v34, %v2206_v50  ;;  %v7448_v14 = vld [vmem:[#allocation57_spill] sm:$0xff]  ;;  %v7457_v39 = vld [vmem:[#allocation86_spill] sm:$0xff] }
 0x4b5   : > { %v2101_v12 = vmax.f32 %v7445_v49, %v1984_v56  ;;  %v7447_v4 = vmax.f32 %v5320_v40, %v5274_v43  ;;  %v2293_v37 = vrot.slane %v2292_v36, 2  ;;  %v2337_v53 = vmax.f32 %v5576_v29, %v2200_v21  ;;  %v7451_v40 = vld [vmem:[#allocation56_spill] sm:$0xff] }
 0x4b6   : > { %v2102_v47 = vmax.f32 %v7446_v55, %v1990_v58  ;;  %v2224_v7 = vmax.f32 %v2222_v16, %v2223_v23  ;;  %v2230_v2 = vmax.f32 %v2228_v52, %v2229_v24  ;;  %v2299_v42 = vrot.slane %v2298_v8, 2  ;;  %v7459_v23 = vld [vmem:[#allocation81_spill] sm:$0xff] }
 0x4b7   : > { %v2392_v57 = vsel %vm870_vm5, %v7447_v4, %v5208_v28  ;;  %v2316_v20 = vadd.f32 %v2219_v31, %v5566_v27  ;;  %v2322_v15 = vadd.f32 %v2225_v6, %v5569_v35  ;;  %v7449_v22 = vmax.f32 %v5399_v44, %v7448_v14  ;;  %v7450_v28 = vld [vmem:[#allocation69_spill] sm:$0xff] }
 0x4b8   : > { %v2341_v32 = vmax.f32 %v2101_v12, %v2224_v7  ;;  %v2342_v38 = vmax.f32 %v2102_v47, %v2230_v2  ;;  %v7452_v62 = vmax.f32 %v7450_v28, %v7451_v40  ;;  %v2083_v52 = vrot.slane %v2082_v48, 2  ;;  %v7453_v6 = vld [vmem:[#allocation49_spill] sm:$0xff] }
 0x4b9   : > { %v2400_v34 = vsel %vm872_vm6, %v7449_v22, %v2399_v54  ;;  %v5642_v44 = vsel %vm870_vm5, %v7454_v0, %v7453_v6  ;;  %v2288_v54 = vadd.f32 %v2287_v3, %v2286_v46  ;;  %v2077_v61 = vrot.slane %v2076_v5, 2  ;;  %v7455_v3 = vld [vmem:[#allocation48_spill] sm:$0xff] }
 0x4ba   : > { %v2401_v43 = vsel %vm874_vm7, %v2336_v1, %v2400_v34  ;;  %v2393_v29 = vsel %vm872_vm6, %v7452_v62, %v2392_v57  ;;  %v2300_v13 = vadd.f32 %v2299_v42, %v2298_v8  ;;  %v2323_v56 = vrot.slane %v2322_v15, 2  ;;  %v7464_v6 = vld [vmem:[#allocation60_spill] sm:$0xff] }
 0x4bb   : > { %v2402_v26 = vsel %vm876_vm8, %v2338_v19, %v2401_v43  ;;  %v2394_v31 = vsel %vm874_vm7, %v2335_v51, %v2393_v29  ;;  %v2294_v21 = vadd.f32 %v2293_v37, %v2292_v36  ;;  %v2317_v16 = vrot.slane %v2316_v20, 2  ;;  %v7461_v19 = vld [vmem:[#allocation89_spill] sm:$0xff]  ;;  %v7462_v37 = vld [vmem:[#allocation88_spill] sm:$0xff] }
 0x4bc   : > { %v2403_v41 = vsel %vm878_vm9, %v2340_v25, %v2402_v26  ;;  %v2395_v33 = vsel %vm876_vm8, %v2337_v53, %v2394_v31  ;;  %v7456_v25 = vld [vmem:[#allocation64_spill] sm:$0xff]  ;;  %v1593_v8 = vrot.slane %v7457_v39, 1  ;;  %v2061_v51 = vrot.slane %v5552_v30, 1 }
 0x4bd   : > { %v5647_v58 = vsel %vm880_vm10, %v2342_v38, %v2403_v41  ;;  %v2396_v50 = vsel %vm878_vm9, %v2339_v63, %v2395_v33  ;;  %v5658_v10 = vsel %vm870_vm5, %v7456_v25, %v7455_v3  ;;  %v7458_v63 = vrot.slane %v5544_v9, 2  ;;  %v7463_v38 = vld [vmem:[#allocation82_spill] sm:$0xff]  ;;  %v7465_v0 = vld [vmem:[#allocation80_spill] sm:$0xff]  ;;  %v7467_v33 = vld [vmem:[#allocation79_spill] sm:$0xff] }
 0x4be   : > { %2536 = vrot.lane.b32.xlu0 %v5647_v58, %s4244_s16  ;;  %v5653_v46 = vsel %vm880_vm10, %v2341_v32, %v2396_v50  ;;  %v2084_v1 = vadd.f32 %v2083_v52, %v2082_v48  ;;  %v7460_v24 = vrot.slane %v7459_v23, 1  ;;  %v2055_v12 = vrot.slane %v5550_v18, 1  ;;  %v7470_v25 = vld [vmem:[#allocation76_spill] sm:$0xff] }
 0x4bf   : > { %v2066_v36 = vadd.f32 %v7458_v63, %v5544_v9  ;;  %2532 = vrot.lane.b32.xlu1 %v5653_v46, %s4244_s16  ;;  %2439 = vrot.lane.b32.xlu2 %v5653_v46, %s4245_s21  ;;  %v2289_v55 = vrot.slane %v2288_v54, 1  ;;  %v2078_v47 = vadd.f32 %v2077_v61, %v2076_v5  ;;  %v1605_v4 = vrot.slane %v7461_v19, 1  ;;  %v7471_v63 = vld [vmem:[#allocation53_spill] sm:$0xff] }
 0x4c0   : > { %v1588_v49 = vadd.f32 %v7460_v24, %v7459_v23  ;;  %v2283_v9 = vrot.slane %v5603_v45, 1  ;;  %v2301_v48 = vrot.slane %v2300_v13, 1  ;;  %v2324_v57 = vadd.f32 %v2323_v56, %v2322_v15  ;;  %v7468_v56 = vld [vmem:[#allocation77_spill] sm:$0xff] }
 0x4c1   : > { %v1599_v53 = vrot.slane %v7462_v37, 1  ;;  %v2073_v7 = vrot.slane %v5563_v60, 1  ;;  %v2295_v2 = vrot.slane %v2294_v21, 1  ;;  %v2318_v42 = vadd.f32 %v2317_v16, %v2316_v20  ;;  %v7469_v16 = vld [vmem:[#allocation54_spill] sm:$0xff] }
 0x4c2   : > { %v1594_v14 = vadd.f32 %v1593_v8, %v7457_v39  ;;  %v2062_v22 = vadd.f32 %v2061_v51, %v5552_v30  ;;  %v2067_v34 = vrot.slane %v2066_v36, 1  ;;  %v2085_v32 = vrot.slane %v2084_v1, 1 }
 0x4c3   : > { %v1859_v5 = vadd.f32 %v7463_v38, %v1588_v49  ;;  %v2056_v43 = vadd.f32 %v2055_v12, %v5550_v18  ;;  %v2290_v28 = vadd.f32 %v2289_v55, %v2288_v54  ;;  %v2079_v40 = vrot.slane %v2078_v47, 1  ;;  %v7472_v49 = vld [vmem:[#allocation72_spill] sm:$0xff] }
 0x4c4   : > { %v1606_v15 = vadd.f32 %v1605_v4, %v7461_v19  ;;  %v2284_v62 = vadd.f32 %v2283_v9, %v5603_v45  ;;  %v2302_v29 = vadd.f32 %v2301_v48, %v2300_v13  ;;  %v2325_v52 = vrot.slane %v2324_v57, 1  ;;  %v7473_v9 = vld [vmem:[#allocation71_spill] sm:$0xff] }
 0x4c5   : > { %v1600_v20 = vadd.f32 %v1599_v53, %v7462_v37  ;;  %v2074_v26 = vadd.f32 %v2073_v7, %v5563_v60  ;;  %v2296_v31 = vadd.f32 %v2295_v2, %v2294_v21  ;;  %v2319_v30 = vrot.slane %v2318_v42, 1  ;;  %v7466_v60 = vld [vmem:[#allocation83_spill] sm:$0xff]  ;;  %v7474_v53 = vld [vmem:[#allocation58_spill] sm:$0xff] }
 0x4c6   : > { %2843 = vrot.lane.b32.xlu0 %v5653_v46, %s4246_s24  ;;  %v2313_v18 = vrot.slane %v7464_v6, 1  ;;  %v2114_v54 = vadd.f32 %v2062_v22, %v7465_v0  ;;  %v2068_v61 = vadd.f32 %v2067_v34, %v2066_v36  ;;  %v2086_v41 = vadd.f32 %v2085_v32, %v2084_v1 }
 0x4c7   : > { %2644 = vrot.lane.b32.xlu1 %v5647_v58, %s4247_s20  ;;  %2443 = vrot.lane.b32.xlu2 %v5647_v58, %s4245_s21  ;;  %v1860_v45 = vadd.f32 %v7466_v60, %v1594_v14  ;;  %v2113_v13 = vadd.f32 %v2056_v43, %v7467_v33  ;;  %v2352_v50 = vadd.f32 %v2290_v28, %v7468_v56  ;;  %v2366_v12 = vmul.f32 0.03125, %v7472_v49 }
 0x4c8   : > { %v2080_v21 = vadd.f32 %v2079_v40, %v2078_v47  ;;  %v1862_v3 = vadd.f32 %v7469_v16, %v1606_v15  ;;  %v2351_v39 = vadd.f32 %v2284_v62, %v7470_v25  ;;  %v2354_v8 = vadd.f32 %v2302_v29, %v2114_v54 }
 0x4c9   : > { %v2326_v51 = vadd.f32 %v2325_v52, %v2324_v57  ;;  %v1861_v36 = vadd.f32 %v7471_v63, %v1600_v20  ;;  %v2116_v1 = vadd.f32 %v2074_v26, %v1860_v45  ;;  %v2353_v23 = vadd.f32 %v2296_v31, %v2113_v13 }
 0x4ca   : > { %v2320_v24 = vadd.f32 %v2319_v30, %v2318_v42  ;;  %v2115_v55 = vadd.f32 %v2068_v61, %v1859_v5  ;;  %v2118_v19 = vadd.f32 %v2086_v41, %v1862_v3  ;;  %v2314_v4 = vadd.f32 %v2313_v18, %v7464_v6  ;;  %v2749_v6 = vld [vmem:[#allocation9 + $0x3] ss:$8 sm:$0x3] }
 0x4cb   : > { %v2365_v48 = vmul.f32 0.03125, %v7473_v9  ;;  %v2368_v47 = vmul.f32 0.03125, %v2352_v50  ;;  %v2117_v37 = vadd.f32 %v2080_v21, %v1861_v36  ;;  %v7475_v7 = vrot.slane %v7474_v53, 1 }
 0x4cc   : > { %v2367_v57 = vmul.f32 0.03125, %v2351_v39  ;;  %v2370_v14 = vmul.f32 0.03125, %v2354_v8  ;;  %v2358_v22 = vadd.f32 %v2326_v51, %v2118_v19  ;;  %v2356_v34 = vadd.f32 %v2314_v4, %v2116_v1 }
 0x4cd   : > { %v2308_v2 = vadd.f32 %v7475_v7, %v7474_v53  ;;  %v2369_v32 = vmul.f32 0.03125, %v2353_v23  ;;  %v2357_v42 = vadd.f32 %v2320_v24, %v2117_v37  ;;  %v2432_v5 = vsel %vm872_vm6, %v2366_v12, %v5642_v44 }
 0x4ce   : > { %2955 = vrot.lane.b32.xlu0 %v5647_v58, %s4248_s25  ;;  %v2433_v43 = vsel %vm874_vm7, %v2368_v47, %v2432_v5  ;;  %v2425_v28 = vsel %vm872_vm6, %v2365_v48, %v5658_v10  ;;  %v2374_v40 = vmul.f32 0.03125, %v2358_v22  ;;  %v2372_v29 = vmul.f32 0.03125, %v2356_v34 }
 0x4cf   : > { %v2355_v38 = vadd.f32 %v2308_v2, %v2115_v55  ;;  %2951 = vrot.lane.b32.xlu1 %v5653_v46, %s4248_s25  ;;  %2640 = vrot.lane.b32.xlu2 %v5653_v46, %s4247_s20  ;;  %v2434_v15 = vsel %vm876_vm8, %v2370_v14, %v2433_v43  ;;  %v2426_v62 = vsel %vm874_vm7, %v2367_v57, %v2425_v28  ;;  %v2373_v52 = vmul.f32 0.03125, %v2357_v42 }
 0x4d0   : > { %v2427_v20 = vsel %vm876_vm8, %v2369_v32, %v2426_v62  ;;  %v2435_v31 = vsel %vm878_vm9, %v2372_v29, %v2434_v15  ;;  %v2752_v18 = vperm.slane %v2749_v6, 1  ;;  %v2751_v0 = vperm.slane %v2749_v6, 0 }
 0x4d1   : > { %v2371_v26 = vmul.f32 0.03125, %v2355_v38  ;;  %v2436_v30 = vsel %vm880_vm10, %v2374_v40, %v2435_v31  ;;  %v2760_v45 = vstv %s3746_s15  ;;  %v2772_v33 = vstv %s5737_s18  ;;  %s3752_s15 = sld [smem:[#allocation12 + $0x18]] }
 0x4d2   : > { %v5744_v54 = vmul.f32 %v2752_v18, %v5647_v58  ;;  %v2755_v61 = vmul.f32 %v2751_v0, %v5653_v46  ;;  %v5751_v41 = vmul.f32 %v2752_v18, %v2436_v30  ;;  %v2784_v13 = vstv %s3750_s30  ;;  %s3753_s18 = sld [smem:[#allocation12 + $0x49]] }
 0x4d3   : > { %v2428_v44 = vsel %vm878_vm9, %v2371_v26, %v2427_v20  ;;  %v2808_v50 = vstv %s5739_s22  ;;  %v2776_v16 = vstv %s3749_s5  ;;  %s5815_s30 = sld [smem:[#allocation12 + $0x31]] }
 0x4d4   : > { %v2429_v10 = vsel %vm880_vm10, %v2373_v52, %v2428_v44  ;;  %v2762_v56 = vmul.f32 %v2760_v45, %v5744_v54  ;;  %v2773_v21 = vmul.f32 %v2772_v33, %v2755_v61  ;;  %v2785_v8 = vmul.f32 %v2784_v13, %v2755_v61  ;;  %s5817_s22 = sld [smem:[#allocation12 + $0x1]] }
 0x4d5   : > { %v2757_v60 = vmul.f32 %v2751_v0, %v2429_v10  ;;  %v2786_v63 = vmul.f32 %v2784_v13, %v5744_v54  ;;  %v2774_v36 = vmul.f32 %v2772_v33, %v5744_v54  ;;  %v2778_v1 = vmul.f32 %v2776_v16, %v5751_v41  ;;  %s5819_s5 = sld [smem:[#allocation12 + $0x32]] }
 0x4d6   : > { %2445 = vrot.lane.b32.xlu0 %v2436_v30, %s4245_s21  ;;  %v2810_v4 = vmul.f32 %v2808_v50, %v5744_v54  ;;  %v2809_v34 = vmul.f32 %v2808_v50, %v2755_v61 }
 0x4d7   : > { %2441 = vrot.lane.b32.xlu1 %v2429_v10, %s4245_s21  ;;  %2847 = vrot.lane.b32.xlu2 %v5647_v58, %s4246_s24  ;;  %s5746_s21 = sld [smem:[#allocation12 + $0x50]]  ;;  %v2777_v25 = vmul.f32 %v2776_v16, %v2757_v60  ;;  %v5774_v19 = vadd.f32 %v2778_v1, %v2774_v36  ;;  %v2796_v44 = vstv %s3752_s15 }
 0x4d8   : > { %v2797_v18 = vmul.f32 %v2796_v44, %v2755_v61  ;;  %v2798_v0 = vmul.f32 %v2796_v44, %v5744_v54  ;;  %s5864_s15 = sld [smem:[#allocation12 + $0x6]] }
 0x4d9   : > { %v5769_v24 = vadd.f32 %v2777_v25, %v2773_v21 }
 0x4dd   : > { %v2812_v9 = vstv %s5746_s21  ;;  %s5823_s21 = sld [smem:[#allocation12 + $0x33]] }
 0x4de   : > { %2642 = vrot.lane.b32.xlu0 %v2429_v10, %s4247_s20  ;;  %v2814_v37 = vmul.f32 %v2812_v9, %v5751_v41  ;;  %v2813_v42 = vmul.f32 %v2812_v9, %v2757_v60  ;;  %v5853_v9 = vld [vmem:[#allocation9 + $0x5] ss:$8 sm:$0x3] }
 0x4df   : > { %2538 = vrot.lane.b32.xlu1 %v2436_v30, %s4244_s16  ;;  %3059 = vrot.lane.b32.xlu2 %v5653_v46, %s4249_s26  ;;  %v2761_v46 = vmul.f32 %v2760_v45, %v2755_v61 }
 0x4e0   : > { %v5787_v22 = vadd.f32 %v2814_v37, %v2810_v4  ;;  %v5795_v62 = vadd.f32 %v2813_v42, %v2809_v34 }
 0x4e6   : > { %2849 = vrot.lane.b32.xlu0 %v2436_v30, %s4246_s24 }
 0x4e7   : > { %2845 = vrot.lane.b32.xlu1 %v2429_v10, %s4246_s24  ;;  %2534 = vrot.lane.b32.xlu2 %v2429_v10, %s4244_s16  ;;  %s5741_s16 = sld [smem:[#allocation12 + $0x42]] }
 0x4e8   : > { %s5749_s24 = sld [smem:[#allocation12 + $0x26]] }
 0x4ed   : > { %v2788_v51 = vstv %s5741_s16  ;;  %s5821_s16 = sld [smem:[#allocation12 + $0x2]] }
 0x4ee   : > { %3061 = vrot.lane.b32.xlu0 %v2429_v10, %s4249_s26  ;;  %v2789_v12 = vmul.f32 %v2788_v51, %v2757_v60  ;;  %v2790_v55 = vmul.f32 %v2788_v51, %v5751_v41  ;;  %v2820_v53 = vstv %s5749_s24  ;;  %s5827_s24 = sld [smem:[#allocation12 + $0x4]]  ;;  %v5840_v51 = vld [vmem:[#allocation9 + $0x2] ss:$8 sm:$0x3] }
 0x4ef   : > { %2957 = vrot.lane.b32.xlu1 %v2436_v30, %s4248_s25  ;;  %2646 = vrot.lane.b32.xlu2 %v2436_v30, %s4247_s20  ;;  %s5753_s20 = sld [smem:[#allocation12 + $0x57]]  ;;  %v2821_v57 = vmul.f32 %v2820_v53, %v2755_v61  ;;  %v2822_v26 = vmul.f32 %v2820_v53, %v5744_v54 }
 0x4f0   : > { %v5780_v47 = vadd.f32 %v2789_v12, %v2785_v8  ;;  %v5785_v2 = vadd.f32 %v2790_v55, %v2786_v63 }
 0x4f5   : > { %v2824_v7 = vstv %s5753_s20  ;;  %s5831_s20 = sld [smem:[#allocation12 + $0x35]] }
 0x4f6   : > { %v2825_v14 = vmul.f32 %v2824_v7, %v2757_v60  ;;  %v2826_v31 = vmul.f32 %v2824_v7, %v5751_v41 }
 0x4f7   : > { %3063 = vrot.lane.b32.xlu1 %v5647_v58, %s4249_s26  ;;  %2953 = vrot.lane.b32.xlu2 %v2429_v10, %s4248_s25  ;;  %s5758_s25 = sld [smem:[#allocation12 + $0x2d]]  ;;  %v2764_v58 = vstv %s3747_s19  ;;  %v2800_v10 = vstv %s3753_s18 }
 0x4f8   : > { %v2766_v3 = vmul.f32 %v2764_v58, %v5751_v41  ;;  %v2765_v39 = vmul.f32 %v2764_v58, %v2757_v60  ;;  %v5789_v32 = vadd.f32 %v2825_v14, %v2821_v57  ;;  %v2801_v45 = vmul.f32 %v2800_v10, %v2757_v60  ;;  %s5813_s19 = sld [smem:[#allocation12]] }
 0x4f9   : > { %v2802_v33 = vmul.f32 %v2800_v10, %v5751_v41  ;;  %v2656_v57 = vperm.slane %v5840_v51, 0  ;;  %s5873_s18 = sld [smem:[#allocation12 + $0x37]] }
 0x4fa   : > { %v5767_v23 = vadd.f32 %v2766_v3, %v2762_v56  ;;  %v5771_v49 = vadd.f32 %v2765_v39, %v2761_v46  ;;  %v5807_v13 = vadd.f32 %v2801_v45, %v2797_v18  ;;  %v7478_v39 = vld [vmem:[#allocation41_spill] sm:$0xff] }
 0x4fb   : > { %v5809_v56 = vadd.f32 %v2802_v33, %v2798_v0  ;;  %vm2447_vm0 = vcmp.lt.s32.totalorder %v7478_v39, 3  ;;  %vm2540_vm1 = vcmp.lt.s32.totalorder %v7478_v39, 2  ;;  %vm2851_vm2 = vcmp.lt.s32.totalorder %v7478_v39, 127  ;;  %v5908_v0 = vld [vmem:[#allocation9 + $0x6] ss:$8 sm:$0x3] }
 0x4fc   : > { %7476 = vst [vmem:[#allocation57_spill] sm:$0xff] %v5807_v13  ;;  %vm2648_vm3 = vcmp.lt.s32.totalorder %v7478_v39, 1  ;;  %vm2959_vm10 = vcmp.lt.s32.totalorder %v7478_v39, 126  ;;  %vm3067_vm11 = vcmp.lt.s32.totalorder %v7478_v39, 125 }
 0x4fd   : > { %v2832_v38 = vstv %s5758_s25  ;;  %7477 = vst [vmem:[#allocation69_spill] sm:$0xff] %v5809_v56  ;;  %s5835_s25 = sld [smem:[#allocation12 + $0x5]] }
 0x4fe   : > { %v2833_v43 = vmul.f32 %v2832_v38, %v2755_v61  ;;  %v2834_v40 = vmul.f32 %v2832_v38, %v5744_v54  ;;  %v5825_v54 = vld [vmem:[#allocation9] ss:$8 sm:$0x3]  ;;  %v5829_v61 = vld [vmem:[#allocation9 + $0x1] ss:$8 sm:$0x3] }
 0x4ff   : > { %3065 = vrot.lane.b32.xlu2 %v2436_v30, %s4249_s26  ;;  %s5760_s26 = sld [smem:[#allocation12 + $0x5e]]  ;;  %v5803_v30 = vadd.f32 %v2826_v31, %v2822_v26  ;;  %v2454_v8 = vperm.slane %v5825_v54, 0  ;;  %v2455_v36 = vperm.slane %v5825_v54, 1  ;;  %v2548_v1 = vperm.slane %v5829_v61, 0 }
 0x500   : > { %v2549_v12 = vperm.slane %v5829_v61, 1  ;;  %v7265_v54 = vstv %s5815_s30 }
 0x505   : > { %v2836_v5 = vstv %s5760_s26  ;;  %s5848_s26 = sld [smem:[#allocation12 + $0x36]] }
 0x506   : > { %v2837_v28 = vmul.f32 %v2836_v5, %v2757_v60  ;;  %v2838_v15 = vmul.f32 %v2836_v5, %v5751_v41  ;;  %v5833_v60 = vld [vmem:[#allocation9 + $0x4] ss:$8 sm:$0x3]  ;;  %v7251_v5 = vperm.slane %v5853_v9, 0 }
 0x507   : > { %v7268_v55 = vperm.slane %v5833_v60, 0  ;;  %v7267_v4 = vperm.slane %v5833_v60, 1 }
 0x508   : > { %v5797_v29 = vadd.f32 %v2837_v28, %v2833_v43  ;;  %v5799_v52 = vadd.f32 %v2838_v15, %v2834_v40  ;;  %v7250_v43 = vperm.slane %v5853_v9, 1 }
 0x519   : > { %v5778_v48 = vpop.permute.xlu2 %2439 }
 0x521   : > { %v2444_v20 = vpop.permute.xlu2 %2443 }
 0x522   : > { %v2448_v37 = vsel %vm2447_vm0, %v5778_v48, %v2444_v20  ;;  %v2450_v53 = vsel %vm2447_vm0, %v2444_v20, %v5778_v48  ;;  %v2657_v48 = vperm.slane %v5840_v51, 1 }
 0x523   : > { %v5882_v28 = vmul.f32 %v2454_v8, %v2450_v53  ;;  %v5884_v40 = vmul.f32 %v2455_v36, %v2448_v37  ;;  %v7264_v53 = vstv %s5817_s22 }
 0x529   : > { %v2641_v6 = vpop.permute.xlu2 %2640 }
 0x530   : > { %v2537_v50 = vpop.permute.xlu0 %2536 }
 0x531   : > { %v2533_v58 = vpop.permute.xlu1 %2532  ;;  %v2848_v21 = vpop.permute.xlu2 %2847 }
 0x532   : > { %v2543_v7 = vsel %vm2540_vm1, %v2537_v50, %v2533_v58  ;;  %v2541_v14 = vsel %vm2540_vm1, %v2533_v58, %v2537_v50 }
 0x533   : > { %v5888_v15 = vmul.f32 %v2548_v1, %v2543_v7  ;;  %v5896_v31 = vmul.f32 %v2549_v12, %v2541_v14 }
 0x538   : > { %v2844_v16 = vpop.permute.xlu0 %2843 }
 0x539   : > { %v2645_v46 = vpop.permute.xlu1 %2644  ;;  %v5811_v3 = vpop.permute.xlu2 %3059  ;;  %v2852_v34 = vsel %vm2851_vm2, %v2844_v16, %v2848_v21  ;;  %v2854_v42 = vsel %vm2851_vm2, %v2848_v21, %v2844_v16 }
 0x53a   : > { %v2651_v38 = vsel %vm2648_vm3, %v2645_v46, %v2641_v6  ;;  %v2649_v20 = vsel %vm2648_vm3, %v2641_v6, %v2645_v46  ;;  %v5900_v44 = vmul.f32 %v7268_v55, %v2852_v34  ;;  %v5904_v10 = vmul.f32 %v7267_v4, %v2854_v42 }
 0x53b   : > { %v5914_v45 = vmul.f32 %v2656_v57, %v2651_v38  ;;  %v5924_v21 = vmul.f32 %v2657_v48, %v2649_v20  ;;  %v7266_v46 = vstv %s5813_s19  ;;  %v7263_v20 = vstv %s5819_s5 }
 0x53c   : > { %v2465_v38 = vmul.f32 %v7266_v46, %v5884_v40 }
 0x540   : > { %v2956_v41 = vpop.permute.xlu0 %2955 }
 0x541   : > { %v2952_v25 = vpop.permute.xlu1 %2951  ;;  %v5842_v63 = vpop.permute.xlu2 %2534 }
 0x542   : > { %v2962_v6 = vsel %vm2959_vm10, %v2956_v41, %v2952_v25  ;;  %v2960_v33 = vsel %vm2959_vm10, %v2952_v25, %v2956_v41 }
 0x543   : > { %v5934_v41 = vmul.f32 %v7250_v43, %v2962_v6  ;;  %v5943_v7 = vmul.f32 %v7251_v5, %v2960_v33  ;;  %v7257_v6 = vstv %s5835_s25  ;;  %v7261_v33 = vstv %s5823_s21 }
 0x545   : > { %v5979_v34 = vmul.f32 %v7257_v6, %v5934_v41 }
 0x548   : > { %v2446_v26 = vpop.permute.xlu0 %2445 }
 0x549   : > { %v2442_v18 = vpop.permute.xlu1 %2441  ;;  %v2647_v25 = vpop.permute.xlu2 %2646 }
 0x54a   : > { %v2449_v50 = vsel %vm2447_vm0, %v2442_v18, %v2446_v26  ;;  %v2451_v58 = vsel %vm2447_vm0, %v2446_v26, %v2442_v18  ;;  %v7254_v26 = vstv %s5827_s24 }
 0x54b   : > { %v5926_v16 = vmul.f32 %v2455_v36, %v2449_v50  ;;  %v7253_v36 = vstv %s5821_s16  ;;  %v5945_v14 = vmul.f32 %v2454_v8, %v2451_v58  ;;  %v2559_v8 = vmul.f32 %v7264_v53, %v5896_v31 }
 0x54c   : > { %v2667_v18 = vmul.f32 %v7253_v36, %v5924_v21  ;;  %v5974_v5 = vmul.f32 %v7254_v26, %v5904_v10  ;;  %v7270_v53 = vstv %s5951_s7 }
 0x54d   : > { %v2469_v42 = vmul.f32 %v7265_v54, %v5926_v16 }
 0x54f   : > { %v2471_v43 = vadd.f32 %v2469_v42, %v2465_v38 }
 0x550   : > { %v2643_v58 = vpop.permute.xlu0 %2642 }
 0x551   : > { %v2650_v36 = vsel %vm2648_vm3, %v2643_v58, %v2647_v25  ;;  %v2652_v42 = vsel %vm2648_vm3, %v2647_v25, %v2643_v58  ;;  %v2539_v38 = vpop.permute.xlu1 %2538 }
 0x552   : > { %v5994_v37 = vmul.f32 %v2656_v57, %v2652_v42  ;;  %v5996_v6 = vmul.f32 %v2657_v48, %v2650_v36  ;;  %v2542_v25 = vsel %vm2540_vm1, %v5842_v63, %v2539_v38  ;;  %v2544_v58 = vsel %vm2540_vm1, %v2539_v38, %v5842_v63 }
 0x553   : > { %v6006_v26 = vmul.f32 %v2548_v1, %v2544_v58  ;;  %v6010_v51 = vmul.f32 %v2549_v12, %v2542_v25  ;;  %v7259_v57 = vstv %s5880_s2  ;;  %v7260_v48 = vstv %s5892_s0  ;;  %v6034_v58 = vpop.permute.xlu2 %2953 }
 0x554   : > { %v2671_v36 = vmul.f32 %v7261_v33, %v5996_v6  ;;  %v2474_v63 = vmul.f32 %v7259_v57, %v5882_v28  ;;  %v2478_v61 = vmul.f32 %v7260_v48, %v5945_v14  ;;  %v7262_v1 = vstv %s5910_s1 }
 0x555   : > { %v2563_v12 = vmul.f32 %v7263_v20, %v6010_v51  ;;  %v2570_v42 = vmul.f32 %v7262_v1, %v5888_v15  ;;  %v7274_v38 = vstv %s5922_s3  ;;  %v7272_v25 = vstv %s5930_s4 }
 0x556   : > { %v2673_v57 = vadd.f32 %v2671_v36, %v2667_v18  ;;  %v2480_v50 = vadd.f32 %v2478_v61, %v2474_v63  ;;  %v2574_v48 = vmul.f32 %v7274_v38, %v6006_v26  ;;  %v2678_v33 = vmul.f32 %v7272_v25, %v5914_v45 }
 0x557   : > { %v2565_v1 = vadd.f32 %v2563_v12, %v2559_v8  ;;  %v7271_v20 = vstv %s5939_s6  ;;  %v2881_v18 = vmul.f32 %v7270_v53, %v5900_v44  ;;  %v7273_v36 = vstv %s5969_s13 }
 0x558   : > { %v2850_v46 = vpop.permute.xlu0 %2849  ;;  %v2576_v4 = vadd.f32 %v2574_v48, %v2570_v42  ;;  %v2682_v55 = vmul.f32 %v7271_v20, %v5994_v37  ;;  %v6058_v8 = vmul.f32 %v7273_v36, %v5943_v7  ;;  %v7480_v36 = vperm.slane %v5833_v60, 1 }
 0x559   : > { %v2846_v63 = vpop.permute.xlu1 %2845  ;;  %v2567_v61 = vadd.f32 %v2565_v1, %v2471_v43  ;;  %v7479_v43 = vperm.slane %v5833_v60, 0 }
 0x55a   : > { %v2853_v42 = vsel %vm2851_vm2, %v2846_v63, %v2850_v46  ;;  %v2855_v53 = vsel %vm2851_vm2, %v2850_v46, %v2846_v63  ;;  %v2578_v20 = vadd.f32 %v2576_v4, %v2480_v50  ;;  %v2684_v25 = vadd.f32 %v2682_v55, %v2678_v33 }
 0x55b   : > { %v6068_v1 = vmul.f32 %v7479_v43, %v2853_v42  ;;  %v6072_v38 = vmul.f32 %v7480_v36, %v2855_v53  ;;  %v2675_v12 = vadd.f32 %v2673_v57, %v2567_v61  ;;  %v7481_v46 = vstv %s5813_s19  ;;  %s6098_s19 = sld [smem:[#allocation12 + $0x40]]  ;;  %v3066_v35 = vpop.permute.xlu2 %3065 }
 0x55c   : > { %v2686_v54 = vadd.f32 %v2684_v25, %v2578_v20  ;;  %v2464_v63 = vmul.f32 %v7481_v46, %v5882_v28  ;;  %v7482_v55 = vstv %s5815_s30  ;;  %v7483_v33 = vstv %s5817_s22  ;;  %s6107_s30 = sld [smem:[#allocation12 + $0x10]] }
 0x55d   : > { %v2468_v4 = vmul.f32 %v7482_v55, %v5945_v14  ;;  %v2558_v50 = vmul.f32 %v7483_v33, %v5888_v15  ;;  %v2770_v60 = vadd.f32 %v5767_v23, %v2675_v12  ;;  %v7484_v53 = vstv %s5831_s20  ;;  %s6124_s22 = sld [smem:[#allocation12 + $0x41]] }
 0x55e   : > { %v2874_v57 = vmul.f32 %v7484_v53, %v6072_v38  ;;  %v7485_v36 = vstv %s5959_s28  ;;  %v7486_v25 = vstv %s5819_s5  ;;  %v2781_v42 = vadd.f32 %v5769_v24, %v2686_v54  ;;  %s6140_s5 = sld [smem:[#allocation12 + $0x12]] }
 0x55f   : > { %v2885_v20 = vmul.f32 %v7485_v36, %v6068_v1  ;;  %v2562_v61 = vmul.f32 %v7486_v25, %v6006_v26  ;;  %v2470_v43 = vadd.f32 %v2468_v4, %v2464_v63  ;;  %v7487_v46 = vstv %s5821_s16  ;;  %s6150_s16 = sld [smem:[#allocation12 + $0x43]] }
 0x560   : > { %v2666_v23 = vmul.f32 %v7487_v46, %v5914_v45  ;;  %v7488_v12 = vstv %s5823_s21  ;;  %v2876_v33 = vadd.f32 %v2874_v57, %v5974_v5  ;;  %v7489_v25 = vstv %s5827_s24  ;;  %v3062_v27 = vpop.permute.xlu0 %3061  ;;  %s6164_s21 = sld [smem:[#allocation12 + $0x13]] }
 0x561   : > { %v2670_v55 = vmul.f32 %v7488_v12, %v5994_v37  ;;  %v2887_v53 = vadd.f32 %v2885_v20, %v2881_v18  ;;  %v2564_v36 = vadd.f32 %v2562_v61, %v2558_v50  ;;  %v2869_v48 = vmul.f32 %v7489_v25, %v5900_v44  ;;  %v2958_v18 = vpop.permute.xlu1 %2957  ;;  %s6179_s24 = sld [smem:[#allocation12 + $0x44]] }
 0x562   : > { %v7490_v24 = vstv %s5831_s20  ;;  %v7491_v63 = vstv %s5835_s25  ;;  %v7281_v46 = vstv %s6053_s17  ;;  %v3069_v12 = vsel %vm3067_vm11, %v3062_v27, %v3066_v35  ;;  %s6184_s20 = sld [smem:[#allocation12 + $0x14]] }
 0x563   : > { %v2672_v11 = vadd.f32 %v2670_v55, %v2666_v23  ;;  %v2873_v54 = vmul.f32 %v7490_v24, %v6068_v1  ;;  %v2977_v4 = vmul.f32 %v7491_v63, %v5943_v7  ;;  %v3071_v5 = vsel %vm3067_vm11, %v3066_v35, %v3062_v27  ;;  %s6198_s25 = sld [smem:[#allocation12 + $0x45]] }
 0x564   : > { %v2878_v50 = vadd.f32 %v2876_v33, %v2770_v60  ;;  %v2889_v57 = vadd.f32 %v2887_v53, %v2781_v42  ;;  %v7492_v20 = vperm.slane %v5908_v0, 0  ;;  %v7493_v23 = vperm.slane %v5908_v0, 1 }
 0x565   : > { %v2961_v27 = vsel %vm2959_vm10, %v6034_v58, %v2958_v18  ;;  %v2963_v35 = vsel %vm2959_vm10, %v2958_v18, %v6034_v58  ;;  %v7494_v60 = vperm.slane %v5853_v9, 0  ;;  %v7495_v33 = vperm.slane %v5853_v9, 1 }
 0x566   : > { %v6128_v61 = vmul.f32 %v7492_v20, %v3069_v12  ;;  %v6132_v55 = vmul.f32 %v7493_v23, %v3071_v5  ;;  %v2566_v25 = vadd.f32 %v2564_v36, %v2470_v43  ;;  %v2875_v24 = vadd.f32 %v2873_v54, %v2869_v48 }
 0x567   : > { %v6144_v42 = vmul.f32 %v7494_v60, %v2961_v27  ;;  %v6148_v53 = vmul.f32 %v7495_v33, %v2963_v35  ;;  %v7496_v58 = vstv %s5873_s18  ;;  %v7497_v12 = vstv %s6014_s14  ;;  %s6240_s18 = sld [smem:[#allocation12 + $0x1d]] }
 0x568   : > { %v3090_v63 = vmul.f32 %v7496_v58, %v6132_v55  ;;  %v3101_v5 = vmul.f32 %v7497_v12, %v6128_v61  ;;  %v7498_v18 = vmov %v7496_v58  ;;  %v2484_v9 = vmul.f32 %v7281_v46, %v5882_v28 }
 0x569   : > { %v3089_v20 = vmul.f32 %v7498_v18, %v6128_v61  ;;  %v7499_v43 = vstv %s5848_s26  ;;  %v7500_v36 = vstv %s5982_s12  ;;  %v2674_v23 = vadd.f32 %v2672_v11, %v2566_v25  ;;  %s6216_s26 = sld [smem:[#allocation12 + $0x1c]] }
 0x56a   : > { %v2982_v48 = vmul.f32 %v7499_v43, %v6148_v53  ;;  %v2993_v54 = vmul.f32 %v7500_v36, %v6144_v42  ;;  %v7501_v27 = vmov %v7499_v43  ;;  %v7286_v60 = vstv %s6075_s11 }
 0x56b   : > { %v2981_v35 = vmul.f32 %v7501_v27, %v6144_v42  ;;  %v7285_v33 = vstv %s6086_s29  ;;  %v7284_v58 = vstv %s6098_s19  ;;  %v7283_v12 = vstv %s6107_s30 }
 0x56c   : > { %v2984_v18 = vadd.f32 %v2982_v48, %v5979_v34  ;;  %v2995_v43 = vadd.f32 %v2993_v54, %v6058_v8  ;;  %v2769_v46 = vadd.f32 %v5771_v49, %v2674_v23  ;;  %v2488_v11 = vmul.f32 %v7286_v60, %v5945_v14  ;;  %v3064_v34 = vpop.permute.xlu1 %3063 }
 0x56d   : > { %v2983_v17 = vadd.f32 %v2981_v35, %v2977_v4  ;;  %v2582_v25 = vmul.f32 %v7285_v33, %v5888_v15  ;;  %v2586_v36 = vmul.f32 %v7284_v58, %v6006_v26  ;;  %v2690_v27 = vmul.f32 %v7283_v12, %v5914_v45 }
 0x56e   : > { %v2986_v49 = vadd.f32 %v2984_v18, %v2878_v50  ;;  %v2997_v8 = vadd.f32 %v2995_v43, %v2889_v57  ;;  %v2877_v4 = vadd.f32 %v2875_v24, %v2769_v46  ;;  %v2693_v48 = vstv %s6124_s22  ;;  %s6247_s22 = sld [smem:[#allocation12 + $0x4e]] }
 0x56f   : > { %v3068_v54 = vsel %vm3067_vm11, %v5811_v3, %v3064_v34  ;;  %v3070_v23 = vsel %vm3067_vm11, %v3064_v34, %v5811_v3  ;;  %v2490_v35 = vadd.f32 %v2488_v11, %v2484_v9  ;;  %v2588_v12 = vadd.f32 %v2586_v36, %v2582_v25 }
 0x570   : > { %v7502_v58 = vperm.slane %v5908_v0, 0  ;;  %v7503_v57 = vperm.slane %v5908_v0, 1  ;;  %v2985_v24 = vadd.f32 %v2983_v17, %v2877_v4  ;;  %v2694_v18 = vmul.f32 %v2693_v48, %v5994_v37 }
 0x571   : > { %v2590_v43 = vadd.f32 %v2588_v12, %v2490_v35  ;;  %v2892_v33 = vstv %s6140_s5  ;;  %v2896_v60 = vstv %s6150_s16  ;;  %v3000_v3 = vstv %s6164_s21  ;;  %s4250_s5 = smov 48   ;;  %s4251_s16 = smov 32  }
 0x572   : > { %v6209_v50 = vmul.f32 %v7502_v58, %v3068_v54  ;;  %v6213_v46 = vmul.f32 %v7503_v57, %v3070_v23  ;;  %v7504_v9 = vstv %s5864_s15  ;;  %v7505_v11 = vstv %s5990_s23  ;;  %s6237_s15 = sld [smem:[#allocation12 + $0x4d]] }
 0x573   : > { %v7506_v25 = vmov %v7504_v9  ;;  %v2696_v17 = vadd.f32 %v2694_v18, %v2690_v27  ;;  %v2893_v34 = vmul.f32 %v2892_v33, %v5900_v44  ;;  %v2897_v4 = vmul.f32 %v2896_v60, %v6068_v1  ;;  %s6257_s21 = sld [smem:[#allocation12 + $0x1e]] }
 0x574   : > { %v3086_v58 = vmul.f32 %v7504_v9, %v6213_v46  ;;  %v3097_v0 = vmul.f32 %v7505_v11, %v6209_v50  ;;  %v3085_v36 = vmul.f32 %v7506_v25, %v6209_v50  ;;  %v3001_v12 = vmul.f32 %v3000_v3, %v5943_v7 }
 0x575   : > { %v3004_v54 = vstv %s6179_s24  ;;  %v2698_v59 = vadd.f32 %v2696_v17, %v2590_v43  ;;  %v2899_v9 = vadd.f32 %v2897_v4, %v2893_v34  ;;  %v3108_v11 = vstv %s6184_s20  ;;  %s6378_s24 = sld [smem:[#allocation12 + $0x59]] }
 0x576   : > { %v3092_v23 = vadd.f32 %v3090_v63, %v3086_v58  ;;  %v3103_v35 = vadd.f32 %v3101_v5, %v3097_v0  ;;  %v3091_v57 = vadd.f32 %v3089_v20, %v3085_v36  ;;  %v3005_v39 = vmul.f32 %v3004_v54, %v6144_v42  ;;  %s6386_s20 = sld [smem:[#allocation12 + $0x29]] }
 0x577   : > { %v3112_v56 = vstv %s6198_s25  ;;  %v2793_v13 = vadd.f32 %v5780_v47, %v2698_v59  ;;  %v3109_v5 = vmul.f32 %v3108_v11, %v6209_v50  ;;  %v7507_v43 = vstv %s6053_s17  ;;  %s6266_s17 = sld [smem:[#allocation12 + $0x4f]] }
 0x578   : > { %v3094_v27 = vadd.f32 %v3092_v23, %v2986_v49  ;;  %v3105_v18 = vadd.f32 %v3103_v35, %v2997_v8  ;;  %v3093_v25 = vadd.f32 %v3091_v57, %v2985_v24  ;;  %v3007_v63 = vadd.f32 %v3005_v39, %v3001_v12  ;;  %s6393_s25 = sld [smem:[#allocation12 + $0x5a]] }
 0x579   : > { %v3113_v20 = vmul.f32 %v3112_v56, %v6128_v61  ;;  %v2485_v58 = vmul.f32 %v7507_v43, %v5884_v40  ;;  %v2901_v59 = vadd.f32 %v2899_v9, %v2793_v13  ;;  %v7508_v47 = vstv %s6075_s11  ;;  %s6270_s11 = sld [smem:[#allocation12 + $0x20]] }
 0x57a   : > { %3169 = vrot.lane.b32.xlu1 %v3094_v27, %s4250_s5  ;;  %3182 = vrot.lane.b32.xlu2 %v3105_v18, %s4251_s16  ;;  %v2489_v39 = vmul.f32 %v7508_v47, %v5926_v16  ;;  %v7509_v49 = vstv %s6086_s29  ;;  %v2503_v24 = vstv %s6216_s26  ;;  %v2695_v12 = vmul.f32 %v2693_v48, %v5996_v6  ;;  %s6274_s29 = sld [smem:[#allocation12 + $0x51]] }
 0x57b   : > { %v2583_v8 = vmul.f32 %v7509_v49, %v5896_v31  ;;  %3167 = vrot.lane.b32.xlu0 %v3093_v25, %s4250_s5  ;;  %v3115_v0 = vadd.f32 %v3113_v20, %v3109_v5  ;;  %v7510_v36 = vstv %s6098_s19  ;;  %v7511_v34 = vstv %s6107_s30  ;;  %s6278_s19 = sld [smem:[#allocation12 + $0x21]] }
 0x57c   : > { %v2587_v17 = vmul.f32 %v7510_v36, %v6010_v51  ;;  %v2691_v4 = vmul.f32 %v7511_v34, %v5924_v21  ;;  %v3009_v13 = vadd.f32 %v3007_v63, %v2901_v59  ;;  %v2491_v23 = vadd.f32 %v2489_v39, %v2485_v58  ;;  %s6286_s30 = sld [smem:[#allocation12 + $0x52]] }
 0x57d   : > { %v2894_v35 = vmul.f32 %v2892_v33, %v5904_v10  ;;  %v2898_v57 = vmul.f32 %v2896_v60, %v6072_v38  ;;  %v3002_v18 = vmul.f32 %v3000_v3, %v5934_v41  ;;  %v3006_v48 = vmul.f32 %v3004_v54, %v6148_v53  ;;  %7524 = sst [smem:[#allocation94_spill]] %s6386_s20 }
 0x57e   : > { %v2589_v9 = vadd.f32 %v2587_v17, %v2583_v8  ;;  %v2697_v27 = vadd.f32 %v2695_v12, %v2691_v4  ;;  %v3117_v25 = vadd.f32 %v3115_v0, %v3009_v13  ;;  %v3110_v33 = vmul.f32 %v3108_v11, %v6213_v46  ;;  %s6418_s5 = sld [smem:[#allocation12 + $0x2a]] }
 0x57f   : > { %v2900_v63 = vadd.f32 %v2898_v57, %v2894_v35  ;;  %v3114_v60 = vmul.f32 %v3112_v56, %v6132_v55  ;;  %v3008_v20 = vadd.f32 %v3006_v48, %v3002_v18  ;;  %v7512_v43 = vstv %s5880_s2  ;;  %s6297_s2 = sld [smem:[#allocation12 + $0x22]] }
 0x580   : > { %v2591_v5 = vadd.f32 %v2589_v9, %v2491_v23  ;;  %v2475_v3 = vmul.f32 %v7512_v43, %v5884_v40  ;;  %v7513_v58 = vstv %s5892_s0  ;;  %v7514_v11 = vstv %s5910_s1  ;;  %s6305_s0 = sld [smem:[#allocation12 + $0x53]]  ;;  %s7289_s1 = smov 16  }
 0x581   : > { %v2479_v54 = vmul.f32 %v7513_v58, %v5926_v16  ;;  %v3116_v59 = vadd.f32 %v3114_v60, %v3110_v33  ;;  %v2571_v47 = vmul.f32 %v7514_v11, %v5896_v31  ;;  %v7515_v56 = vstv %s5922_s3  ;;  %s6317_s3 = sld [smem:[#allocation12 + $0x23]] }
 0x582   : > { %v2575_v39 = vmul.f32 %v7515_v56, %v6010_v51  ;;  %v7516_v49 = vstv %s5930_s4  ;;  %v2699_v0 = vadd.f32 %v2697_v27, %v2591_v5  ;;  %v7517_v17 = vstv %s5939_s6  ;;  %3198 = vrot.lane.b32.xlu1 %v3117_v25, %s7289_s1  ;;  %s6326_s4 = sld [smem:[#allocation12 + $0x54]] }
 0x583   : > { %v2679_v8 = vmul.f32 %v7516_v49, %v5924_v21  ;;  %v2481_v36 = vadd.f32 %v2479_v54, %v2475_v3  ;;  %v2683_v34 = vmul.f32 %v7517_v17, %v5996_v6  ;;  %v7518_v4 = vstv %s5951_s7  ;;  %s6331_s6 = sld [smem:[#allocation12 + $0x24]] }
 0x584   : > { %v2882_v12 = vmul.f32 %v7518_v4, %v5904_v10  ;;  %v2577_v13 = vadd.f32 %v2575_v39, %v2571_v47  ;;  %v7519_v23 = vstv %s5959_s28  ;;  %v7520_v57 = vstv %s5969_s13  ;;  %s6335_s7 = sld [smem:[#allocation12 + $0x55]] }
 0x585   : > { %v2886_v35 = vmul.f32 %v7519_v23, %v6072_v38  ;;  %v2990_v9 = vmul.f32 %v7520_v57, %v5934_v41  ;;  %v7521_v27 = vstv %s5982_s12  ;;  %v2794_v48 = vadd.f32 %v5785_v2, %v2699_v0  ;;  %s6344_s12 = sld [smem:[#allocation12 + $0x25]] }
 0x586   : > { %v2994_v18 = vmul.f32 %v7521_v27, %v6148_v53  ;;  %v2685_v33 = vadd.f32 %v2683_v34, %v2679_v8  ;;  %v7522_v25 = vstv %s5990_s23  ;;  %v7523_v5 = vstv %s6014_s14  ;;  %s6351_s13 = sld [smem:[#allocation12 + $0x56]] }
 0x587   : > { %v3098_v60 = vmul.f32 %v7522_v25, %v6213_v46  ;;  %v3102_v43 = vmul.f32 %v7523_v5, %v6132_v55  ;;  %v2579_v3 = vadd.f32 %v2577_v13, %v2481_v36  ;;  %v2888_v58 = vadd.f32 %v2886_v35, %v2882_v12  ;;  %s6360_s14 = sld [smem:[#allocation12 + $0x27]] }
 0x588   : > { %v2996_v54 = vadd.f32 %v2994_v18, %v2990_v9  ;;  %v2505_v2 = vmul.f32 %v2503_v24, %v5884_v40  ;;  %v2902_v11 = vadd.f32 %v2900_v63, %v2794_v48  ;;  %v2507_v56 = vstv %s6237_s15  ;;  %s6364_s23 = sld [smem:[#allocation12 + $0x58]] }
 0x589   : > { %v3104_v47 = vadd.f32 %v3102_v43, %v3098_v60  ;;  %v2605_v39 = vstv %s6240_s18  ;;  %v2687_v49 = vadd.f32 %v2685_v33, %v2579_v3  ;;  %v2509_v8 = vmul.f32 %v2507_v56, %v5926_v16  ;;  %s6372_s28 = sld [smem:[#allocation12 + $0x28]] }
 0x58a   : > { %v2607_v0 = vmul.f32 %v2605_v39, %v5896_v31  ;;  %v2609_v36 = vstv %s6247_s22  ;;  %v3010_v63 = vadd.f32 %v3008_v20, %v2902_v11  ;;  %v2713_v34 = vstv %s6257_s21  ;;  %s6475_s26 = sld [smem:[#allocation12 + $0x5f]] }
 0x58b   : > { %v2611_v17 = vmul.f32 %v2609_v36, %v6010_v51  ;;  %v2717_v4 = vstv %s6266_s17  ;;  %v2782_v12 = vadd.f32 %v5774_v19, %v2687_v49  ;;  %v2511_v13 = vadd.f32 %v2509_v8, %v2505_v2  ;;  %s6483_s15 = sld [smem:[#allocation12 + $0x2f]]  ;;  %s4254_s17 = smov 96  }
 0x58c   : > { %v2715_v23 = vmul.f32 %v2713_v34, %v5924_v21  ;;  %v2719_v20 = vmul.f32 %v2717_v4, %v5996_v6  ;;  %v3118_v35 = vadd.f32 %v3116_v59, %v3010_v63  ;;  %v2916_v9 = vstv %s6270_s11  ;;  %s6491_s18 = sld [smem:[#allocation12 + $0x60]] }
 0x58d   : > { %v2613_v57 = vadd.f32 %v2611_v17, %v2607_v0  ;;  %v2920_v27 = vstv %s6274_s29  ;;  %v2890_v19 = vadd.f32 %v2888_v58, %v2782_v12  ;;  %v2918_v48 = vmul.f32 %v2916_v9, %v5904_v10  ;;  %s6502_s22 = sld [smem:[#allocation12 + $0x30]] }
 0x58e   : > { %v2721_v18 = vadd.f32 %v2719_v20, %v2715_v23  ;;  %v2922_v33 = vmul.f32 %v2920_v27, %v6072_v38  ;;  %3200 = vrot.lane.b32.xlu2 %v3118_v35, %s7289_s1  ;;  %v3024_v25 = vstv %s6278_s19  ;;  %v3028_v60 = vstv %s6286_s30  ;;  %s6433_s1 = sld [smem:[#allocation12 + $0x2b]] }
 0x58f   : > { %v2615_v59 = vadd.f32 %v2613_v57, %v2511_v13  ;;  %v3132_v5 = vstv %s6297_s2  ;;  %v2998_v43 = vadd.f32 %v2996_v54, %v2890_v19  ;;  %v3026_v58 = vmul.f32 %v3024_v25, %v5934_v41  ;;  %s6510_s21 = sld [smem:[#allocation12 + $0x61]] }
 0x590   : > { %v2924_v3 = vadd.f32 %v2922_v33, %v2918_v48  ;;  %v3030_v2 = vmul.f32 %v3028_v60, %v6148_v53  ;;  %v3134_v49 = vmul.f32 %v3132_v5, %v6213_v46  ;;  %v3136_v8 = vstv %s6305_s0  ;;  %s3711_s11 = sld [smem:[#allocation12 + $0x46]] }
 0x591   : > { %v2723_v11 = vadd.f32 %v2721_v18, %v2615_v59  ;;  %v2513_v54 = vstv %s6317_s3  ;;  %v3106_v0 = vadd.f32 %v3104_v47, %v2998_v43  ;;  %v3138_v17 = vmul.f32 %v3136_v8, %v6132_v55  ;;  %s3710_s29 = sld [smem:[#allocation12 + $0x15]] }
 0x592   : > { %v3032_v63 = vadd.f32 %v3030_v2, %v3026_v58  ;;  %v2514_v12 = vmul.f32 %v2513_v54, %v5882_v28  ;;  %v2517_v23 = vstv %s6326_s4  ;;  %v2617_v20 = vstv %s6331_s6  ;;  %s3739_s19 = sld [smem:[#allocation12 + $0x48]] }
 0x593   : > { %v2818_v13 = vadd.f32 %v5787_v22, %v2723_v11  ;;  %v2621_v35 = vstv %s6335_s7  ;;  %3184 = vrot.lane.b32.xlu0 %v3106_v0, %s4251_s16  ;;  %v3140_v57 = vadd.f32 %v3138_v17, %v3134_v49  ;;  %v2518_v47 = vmul.f32 %v2517_v23, %v5945_v14  ;;  %s6426_s16 = sld [smem:[#allocation12 + $0x5b]] }
 0x594   : > { %v2618_v19 = vmul.f32 %v2617_v20, %v5888_v15  ;;  %v2622_v22 = vmul.f32 %v2621_v35, %v6006_v26  ;;  %v7303_v48 = vstv %s6344_s12  ;;  %v7304_v33 = vstv %s6351_s13  ;;  %s6588_s30 = sld [smem:[#allocation12 + $0x17]] }
 0x595   : > { %v2926_v18 = vadd.f32 %v2924_v3, %v2818_v13  ;;  %v7291_v59 = vstv %s6360_s14  ;;  %v2520_v43 = vadd.f32 %v2518_v47, %v2514_v12  ;;  %v2726_v2 = vmul.f32 %v7303_v48, %v5914_v45  ;;  %s6592_s2 = sld [smem:[#allocation12 + $0x4a]] }
 0x596   : > { %v2624_v58 = vadd.f32 %v2622_v22, %v2618_v19  ;;  %v2730_v11 = vmul.f32 %v7304_v33, %v5994_v37  ;;  %v2929_v49 = vmul.f32 %v7291_v59, %v5900_v44  ;;  %v7302_v0 = vstv %s6364_s23  ;;  %s6594_s0 = sld [smem:[#allocation12 + $0x19]] }
 0x597   : > { %v3034_v3 = vadd.f32 %v3032_v63, %v2926_v18  ;;  %v7300_v17 = vstv %s6372_s28  ;;  %v2933_v47 = vmul.f32 %v7302_v0, %v6068_v1  ;;  %v7301_v22 = vstv %s6378_s24  ;;  %s6603_s3 = sld [smem:[#allocation12 + $0x1a]] }
 0x598   : > { %v2626_v12 = vadd.f32 %v2624_v58, %v2520_v43  ;;  %v2732_v13 = vadd.f32 %v2730_v11, %v2726_v2  ;;  %v3037_v19 = vmul.f32 %v7300_v17, %v5943_v7  ;;  %v7299_v18 = vstv %s6386_s20  ;;  %s6466_s20 = sld [smem:[#allocation12 + $0x2e]] }
 0x599   : > { %v3142_v63 = vadd.f32 %v3140_v57, %v3034_v3  ;;  %v7298_v59 = vstv %s6393_s25  ;;  %v2935_v58 = vadd.f32 %v2933_v47, %v2929_v49  ;;  %v3041_v2 = vmul.f32 %v7301_v22, %v6144_v42  ;;  %s6609_s4 = sld [smem:[#allocation12 + $0x1b]] }
 0x59a   : > { %v2734_v43 = vadd.f32 %v2732_v13, %v2626_v12  ;;  %v3145_v11 = vmul.f32 %v7299_v18, %v6209_v50  ;;  %v3149_v57 = vmul.f32 %v7298_v59, %v6128_v61  ;;  %v2504_v3 = vmul.f32 %v2503_v24, %v5882_v28  ;;  %s6617_s6 = sld [smem:[#allocation12 + $0x4c]] }
 0x59b   : > { %3225 = vrot.lane.b32.xlu1 %v3142_v63, %s4253_s27  ;;  %v2508_v49 = vmul.f32 %v2507_v56, %v5945_v14  ;;  %v3043_v13 = vadd.f32 %v3041_v2, %v3037_v19  ;;  %v2606_v47 = vmul.f32 %v2605_v39, %v5888_v15  ;;  %v2610_v63 = vmul.f32 %v2609_v36, %v6006_v26  ;;  %s6654_s7 = sld [smem:[#allocation2]] }
 0x59c   : > { %v2829_v12 = vadd.f32 %v5789_v32, %v2734_v43  ;;  %v3151_v24 = vadd.f32 %v3149_v57, %v3145_v11  ;;  %v2714_v56 = vmul.f32 %v2713_v34, %v5914_v45  ;;  %v2718_v32 = vmul.f32 %v2717_v4, %v5994_v37 }
 0x59d   : > { %v2510_v59 = vadd.f32 %v2508_v49, %v2504_v3  ;;  %v2612_v39 = vadd.f32 %v2610_v63, %v2606_v47  ;;  %v2917_v36 = vmul.f32 %v2916_v9, %v5900_v44  ;;  %v2921_v43 = vmul.f32 %v2920_v27, %v6068_v1 }
 0x59e   : > { %v2937_v19 = vadd.f32 %v2935_v58, %v2829_v12  ;;  %v2720_v2 = vadd.f32 %v2718_v32, %v2714_v56  ;;  %v3025_v34 = vmul.f32 %v3024_v25, %v5943_v7  ;;  %v3029_v4 = vmul.f32 %v3028_v60, %v6144_v42 }
 0x59f   : > { %v3133_v58 = vmul.f32 %v3132_v5, %v6209_v50  ;;  %v2614_v27 = vadd.f32 %v2612_v39, %v2510_v59  ;;  %v3137_v11 = vmul.f32 %v3136_v8, %v6128_v61  ;;  %v2523_v57 = vstv %s6418_s5  ;;  %s7589_s5 = sld [smem:[#allocation103_spill]] }
 0x5a0   : > { %v3045_v9 = vadd.f32 %v3043_v13, %v2937_v19  ;;  %v2923_v3 = vadd.f32 %v2921_v43, %v2917_v36  ;;  %v3031_v25 = vadd.f32 %v3029_v4, %v3025_v34  ;;  %v2524_v49 = vmul.f32 %v2523_v57, %v5882_v28 }
 0x5a1   : > { %v2527_v12 = vstv %s6426_s16  ;;  %v2722_v5 = vadd.f32 %v2720_v2, %v2614_v27  ;;  %v2629_v13 = vstv %s6433_s1  ;;  %v3139_v63 = vadd.f32 %v3137_v11, %v3133_v58  ;;  %s6600_s1 = sld [smem:[#allocation12 + $0x4b]] }
 0x5a2   : > { %v3153_v60 = vadd.f32 %v3151_v24, %v3045_v9  ;;  %v2528_v47 = vmul.f32 %v2527_v12, %v5945_v14  ;;  %v2633_v59 = vstv %s6441_s9  ;;  %v2737_v56 = vstv %s6446_s8  ;;  %s7527_s9 = sld [smem:[#allocation94_spill]]  ;;  %s4255_s8 = smov 80  }
 0x5a3   : > { %v2741_v8 = vstv %s6454_s10  ;;  %v2817_v32 = vadd.f32 %v5795_v62, %v2722_v5  ;;  %v2630_v24 = vmul.f32 %v2629_v13, %v5888_v15  ;;  %v2634_v39 = vmul.f32 %v2633_v59, %v6006_v26  ;;  %s3725_s10 = sld [smem:[#allocation12 + $0x47]] }
 0x5a4   : > { %3239 = vrot.lane.b32.xlu2 %v3153_v60, %s4254_s17  ;;  %v2530_v19 = vadd.f32 %v2528_v47, %v2524_v49  ;;  %v2738_v36 = vmul.f32 %v2737_v56, %v5914_v45  ;;  %v2742_v43 = vmul.f32 %v2741_v8, %v5994_v37  ;;  %v2940_v2 = vstv %s6466_s20 }
 0x5a5   : > { %v2944_v34 = vstv %s6475_s26  ;;  %v2925_v4 = vadd.f32 %v2923_v3, %v2817_v32  ;;  %v2636_v58 = vadd.f32 %v2634_v39, %v2630_v24  ;;  %v3048_v27 = vstv %s6483_s15 }
 0x5a6   : > { %v2945_v9 = vmul.f32 %v2944_v34, %v6068_v1  ;;  %v2941_v11 = vmul.f32 %v2940_v2, %v5900_v44  ;;  %v3052_v62 = vstv %s6491_s18  ;;  %v3156_v49 = vstv %s6502_s22 }
 0x5a7   : > { %v3033_v60 = vadd.f32 %v3031_v25, %v2925_v4  ;;  %v2638_v5 = vadd.f32 %v2636_v58, %v2530_v19  ;;  %v2744_v47 = vadd.f32 %v2742_v43, %v2738_v36  ;;  %v3053_v18 = vmul.f32 %v3052_v62, %v6144_v42 }
 0x5a8   : > { %v3049_v17 = vmul.f32 %v3048_v27, %v5943_v7  ;;  %v3160_v22 = vstv %s6510_s21  ;;  %v2529_v0 = vmul.f32 %v2527_v12, %v5926_v16  ;;  %v2947_v32 = vadd.f32 %v2945_v9, %v2941_v11 }
 0x5a9   : > { %v3141_v48 = vadd.f32 %v3139_v63, %v3033_v60  ;;  %v2746_v3 = vadd.f32 %v2744_v47, %v2638_v5  ;;  %v3157_v24 = vmul.f32 %v3156_v49, %v6209_v50  ;;  %v2525_v39 = vmul.f32 %v2523_v57, %v5884_v40 }
 0x5aa   : > { %v2631_v33 = vmul.f32 %v2629_v13, %v5896_v31  ;;  %v2635_v25 = vmul.f32 %v2633_v59, %v6010_v51  ;;  %v3055_v36 = vadd.f32 %v3053_v18, %v3049_v17  ;;  %v3161_v43 = vmul.f32 %v3160_v22, %v6128_v61 }
 0x5ab   : > { %3223 = vrot.lane.b32.xlu0 %v3141_v48, %s4253_s27  ;;  %v2841_v19 = vadd.f32 %v5797_v29, %v2746_v3  ;;  %v2743_v12 = vmul.f32 %v2741_v8, %v5996_v6  ;;  %v2531_v63 = vadd.f32 %v2529_v0, %v2525_v39  ;;  %v2739_v57 = vmul.f32 %v2737_v56, %v5924_v21  ;;  %s3724_s27 = sld [smem:[#allocation12 + $0x16]] }
 0x5ac   : > { %v2637_v4 = vadd.f32 %v2635_v25, %v2631_v33  ;;  %v2946_v13 = vmul.f32 %v2944_v34, %v6072_v38  ;;  %v3163_v48 = vadd.f32 %v3161_v43, %v3157_v24  ;;  %v2942_v29 = vmul.f32 %v2940_v2, %v5904_v10 }
 0x5ad   : > { %v2949_v59 = vadd.f32 %v2947_v32, %v2841_v19  ;;  %v3054_v17 = vmul.f32 %v3052_v62, %v6148_v53  ;;  %v2745_v58 = vadd.f32 %v2743_v12, %v2739_v57  ;;  %v3050_v8 = vmul.f32 %v3048_v27, %v5934_v41 }
 0x5ae   : > { %v2639_v18 = vadd.f32 %v2637_v4, %v2531_v63  ;;  %v3158_v33 = vmul.f32 %v3156_v49, %v6213_v46  ;;  %v2948_v56 = vadd.f32 %v2946_v13, %v2942_v29  ;;  %v2515_v34 = vmul.f32 %v2513_v54, %v5884_v40 }
 0x5af   : > { %v3057_v0 = vadd.f32 %v3055_v36, %v2949_v59  ;;  %v2519_v9 = vmul.f32 %v2517_v23, %v5926_v16  ;;  %v2619_v11 = vmul.f32 %v2617_v20, %v5896_v31  ;;  %v2623_v62 = vmul.f32 %v2621_v35, %v6010_v51 }
 0x5b0   : > { %v2747_v2 = vadd.f32 %v2745_v58, %v2639_v18  ;;  %v7525_v27 = vstv %s6351_s13  ;;  %v3056_v5 = vadd.f32 %v3054_v17, %v3050_v8  ;;  %v3162_v54 = vmul.f32 %v3160_v22, %v6132_v55  ;;  %s7567_s13 = sld [smem:[#allocation28_spill]] }
 0x5b1   : > { %v2731_v49 = vmul.f32 %v7525_v27, %v5996_v6  ;;  %v3165_v60 = vadd.f32 %v3163_v48, %v3057_v0  ;;  %v7526_v47 = vstv %s6344_s12  ;;  %v2521_v32 = vadd.f32 %v2519_v9, %v2515_v34  ;;  %s7537_s12 = sld [smem:[#allocation29_spill]] }
 0x5b2   : > { %v2727_v23 = vmul.f32 %v7526_v47, %v5924_v21  ;;  %v2842_v3 = vadd.f32 %v5799_v52, %v2747_v2  ;;  %v2625_v20 = vadd.f32 %v2623_v62, %v2619_v11  ;;  %v7528_v24 = vstv %s6364_s23 }
 0x5b3   : > { %v2934_v35 = vmul.f32 %v7528_v24, %v6072_v38  ;;  %3255 = vrot.lane.b32.xlu1 %v3165_v60, %s4255_s8  ;;  %v3164_v39 = vadd.f32 %v3162_v54, %v3158_v33  ;;  %v7529_v25 = vstv %s6360_s14  ;;  %v7530_v12 = vstv %s6378_s24 }
 0x5b4   : > { %v2930_v19 = vmul.f32 %v7529_v25, %v5904_v10  ;;  %v2950_v36 = vadd.f32 %v2948_v56, %v2842_v3  ;;  %v2627_v22 = vadd.f32 %v2625_v20, %v2521_v32  ;;  %v2733_v43 = vadd.f32 %v2731_v49, %v2727_v23 }
 0x5b5   : > { %v3042_v63 = vmul.f32 %v7530_v12, %v6148_v53  ;;  %v7531_v52 = vstv %s6372_s28  ;;  %v7532_v48 = vstv %s7527_s9  ;;  %v7533_v8 = vstv %s6393_s25  ;;  %s7584_s28 = sld [smem:[#allocation23_spill]] }
 0x5b6   : > { %v3038_v4 = vmul.f32 %v7531_v52, %v5934_v41  ;;  %v3058_v57 = vadd.f32 %v3056_v5, %v2950_v36  ;;  %v2735_v13 = vadd.f32 %v2733_v43, %v2627_v22  ;;  %v2936_v59 = vadd.f32 %v2934_v35, %v2930_v19  ;;  %s7568_s14 = sshll.u32 %s7567_s13, 9  ;;  %s3554_s22 = scalar_lea.sflag [#allocation5], %s7567_s13 }
 0x5b7   : > { %v3146_v29 = vmul.f32 %v7532_v48, %v6213_v46  ;;  %v3150_v33 = vmul.f32 %v7533_v8, %v6132_v55  ;;  %v2597_v2 = vstv %s3725_s10  ;;  %v2593_v11 = vstv %s3724_s27  ;;  %s6916_s23 = scalar_lea.vmem [#allocation13], %s7568_s14  ;;  %s4176_s10 = scalar_lea.hbm %s7589_s5, 1024 }
 0x5b8   : > { %v3166_v17 = vadd.f32 %v3164_v39, %v3058_v57  ;;  %v2830_v18 = vadd.f32 %v5803_v30, %v2735_v13  ;;  %v3044_v58 = vadd.f32 %v3042_v63, %v3038_v4  ;;  %v2497_v30 = vstv %s3711_s11  ;;  %s3567_s26 = sshll.u32 %s6916_s23, 4  ;;  %s3568_s26 = int_to_ptr.vmem [resolvable:$true] %s3567_s26 }
 0x5b9   : > { %v3152_v56 = vadd.f32 %v3150_v33, %v3146_v29  ;;  %v2493_v62 = vstv %s3710_s29  ;;  %v2598_v27 = vmul.f32 %v2597_v2, %v6006_v26  ;;  %v2599_v49 = vmul.f32 %v2597_v2, %v6010_v51 }
 0x5ba   : > { %3257 = vrot.lane.b32.xlu2 %v3166_v17, %s4255_s8  ;;  %v2938_v0 = vadd.f32 %v2936_v59, %v2830_v18  ;;  %v2498_v60 = vmul.f32 %v2497_v30, %v5945_v14  ;;  %v2499_v5 = vmul.f32 %v2497_v30, %v5926_v16  ;;  %v2594_v54 = vmul.f32 %v2593_v11, %v5888_v15 }
 0x5bb   : > { %v2595_v47 = vmul.f32 %v2593_v11, %v5896_v31  ;;  %v2494_v23 = vmul.f32 %v2493_v62, %v5882_v28  ;;  %v2705_v26 = vstv %s3739_s19  ;;  %v2495_v3 = vmul.f32 %v2493_v62, %v5884_v40  ;;  %s3811_s24 = sshll.u32 %s7584_s28, 9 }
 0x5bc   : > { %v3046_v34 = vadd.f32 %v3044_v58, %v2938_v0  ;;  %v2600_v32 = vadd.f32 %v2598_v27, %v2594_v54  ;;  %v2701_v20 = vstv %s6588_s30  ;;  %v2706_v24 = vmul.f32 %v2705_v26, %v5994_v37  ;;  %v3174_v54 = vld [vmem:[#allocation11] ss:$8 sm:$0x3]  ;;  %s3566_s16 = scalar_lea.hbm %s7589_s5, %s3811_s24 }
 0x5bd   : > { %v2601_v14 = vadd.f32 %v2599_v49, %v2595_v47  ;;  %v2500_v28 = vadd.f32 %v2498_v60, %v2494_v23  ;;  %v2501_v16 = vadd.f32 %v2499_v5, %v2495_v3  ;;  %v2707_v35 = vmul.f32 %v2705_v26, %v5996_v6  ;;  %v3206_v49 = vld [vmem:[#allocation11 + $0x2] ss:$8 sm:$0x3]  ;;  %v3215_v5 = vld [vmem:[#allocation11 + $0x3] ss:$8 sm:$0x3] }
 0x5be   : > { %v3154_v9 = vadd.f32 %v3152_v56, %v3046_v34  ;;  %v2702_v40 = vmul.f32 %v2701_v20, %v5914_v45  ;;  %v2703_v19 = vmul.f32 %v2701_v20, %v5924_v21  ;;  %v2908_v36 = vstv %s6592_s2  ;;  %v7536_v60 = vld [vmem:[#allocation41_spill] sm:$0xff]  ;;  %s3569_s18 = sshll.u32 %s3566_s16, 4  ;;  %s3570_s18 = int_to_ptr.hbm [resolvable:$true] %s3569_s18 }
 0x5bf   : > { %v2602_v39 = vadd.f32 %v2600_v32, %v2500_v28  ;;  %v2603_v25 = vadd.f32 %v2601_v14, %v2501_v16  ;;  %v2904_v12 = vstv %s6594_s0  ;;  %v3016_v63 = vstv %s6600_s1  ;;  %s4170_s21 = sshra.s32 %s3570_s18, 4  ;;  %s4171_s21 = int_to_ptr.hbm [resolvable:$true] %s4170_s21 }
 0x5c0   : > { %3241 = vrot.lane.b32.xlu0 %v3154_v9, %s4254_s17  ;;  %v2708_v22 = vadd.f32 %v2706_v24, %v2702_v40  ;;  %v2709_v43 = vadd.f32 %v2707_v35, %v2703_v19  ;;  %v2909_v52 = vmul.f32 %v2908_v36, %v6068_v1  ;;  %v2910_v37 = vmul.f32 %v2908_v36, %v6072_v38  ;;  %s4172_s17 = scalar_lea.hbm %s4171_s21, 512  ;;  %p4177_p9 = scmp.lt.s32.totalorder %s4171_s21, %s7589_s5 }
 0x5c1   : > { %v3012_v6 = vstv %s6603_s3  ;;  %v3120_v13 = vstv %s6609_s4  ;;  %v2905_v45 = vmul.f32 %v2904_v12, %v5900_v44  ;;  %v2906_v59 = vmul.f32 %v2904_v12, %v5904_v10  ;;  %v7534_v44 = vld [vmem:[#allocation57_spill] sm:$0xff]  ;;  %p4173_p1 = scmp.ne.s32.totalorder %s4171_s21, %s4172_s17  ;;  %p4178_p10 = scmp.lt.s32.totalorder %s4176_s10, %s4172_s17 }
 0x5c2   : > { %v2710_v4 = vadd.f32 %v2708_v22, %v2602_v39  ;;  %v2711_v57 = vadd.f32 %v2709_v43, %v2603_v25  ;;  %v3017_v21 = vmul.f32 %v3016_v63, %v6144_v42  ;;  %v3018_v48 = vmul.f32 %v3016_v63, %v6148_v53  ;;  %v7535_v10 = vld [vmem:[#allocation69_spill] sm:$0xff] }
 0x5c3   : > { %v3013_v29 = vmul.f32 %v3012_v6, %v5943_v7  ;;  %v3014_v17 = vmul.f32 %v3012_v6, %v5934_v41  ;;  %v3124_v18 = vstv %s6617_s6  ;;  %v2911_v58 = vadd.f32 %v2909_v52, %v2905_v45  ;;  %p4174_p4 = pnand %p4173_p1, %p4397_p5  ;;  %p4179_p2 = por %p4178_p10, %p4177_p9 }
 0x5c4   : > { %v2912_v38 = vadd.f32 %v2910_v37, %v2906_v59  ;;  %v3121_v8 = vmul.f32 %v3120_v13, %v6209_v50  ;;  %v3122_v33 = vmul.f32 %v3120_v13, %v6213_v46  ;;  %v2805_v56 = vadd.f32 %v7534_v44, %v2710_v4  ;;  %v3190_v46 = vld [vmem:[#allocation11 + $0x1] ss:$8 sm:$0x3]  ;;  %v3247_v13 = vld [vmem:[#allocation11 + $0x5] ss:$8 sm:$0x3] }
 0x5c5   : > { %v2806_v34 = vadd.f32 %v7535_v10, %v2711_v57  ;;  %v3019_v9 = vadd.f32 %v3017_v21, %v3013_v29  ;;  %v3020_v53 = vadd.f32 %v3018_v48, %v3014_v17  ;;  %v3125_v7 = vmul.f32 %v3124_v18, %v6128_v61  ;;  %v3231_v57 = vld [vmem:[#allocation11 + $0x4] ss:$8 sm:$0x3]  ;;  %p4175_p8 = pneg %p4174_p4 }
 0x5c6   : > { %v3126_v41 = vmul.f32 %v3124_v18, %v6132_v55  ;;  %v2913_v2 = vadd.f32 %v2911_v58, %v2805_v56  ;;  %vm3202_vm12 = vcmp.lt.s32.totalorder %v7536_v60, 16  ;;  %vm3186_vm13 = vcmp.lt.s32.totalorder %v7536_v60, 32 }
 0x5c7   : > { %v2914_v30 = vadd.f32 %v2912_v38, %v2806_v34  ;;  %v3127_v11 = vadd.f32 %v3125_v7, %v3121_v8  ;;  %vm3171_vm14 = vcmp.lt.s32.totalorder %v7536_v60, 48  ;;  %v3208_v23 = vperm.slane %v3206_v49, 0  ;;  %p4180_p11 = pnand %p4179_p2, %p4175_p8 }
 0x5c8   : > { %v3128_v62 = vadd.f32 %v3126_v41, %v3122_v33  ;;  %v3021_v27 = vadd.f32 %v3019_v9, %v2913_v2  ;;  %v3209_v55 = vperm.slane %v3206_v49, 1  ;;  %v3192_v26 = vperm.slane %v3190_v46, 0 }
 0x5c9   : > { %v3022_v50 = vadd.f32 %v3020_v53, %v2914_v30  ;;  %v3193_v3 = vperm.slane %v3190_v46, 1  ;;  %v3176_v35 = vperm.slane %v3174_v54, 0  ;;  %v3177_v40 = vperm.slane %v3174_v54, 1 }
 0x5ca   : > { %v3129_v47 = vadd.f32 %v3127_v11, %v3021_v27  ;;  %v3217_v39 = vperm.slane %v3215_v5, 0  ;;  %v3218_v25 = vperm.slane %v3215_v5, 1  ;;  %vm3227_vm15 = vcmp.lt.s32.totalorder %v7536_v60, 112 }
 0x5cb   : > { %v3130_v61 = vadd.f32 %v3128_v62, %v3022_v50  ;;  %v3233_v29 = vperm.slane %v3231_v57, 0  ;;  %vm3259_vm0 = vcmp.lt.s32.totalorder %v7536_v60, 80  ;;  %vm3243_vm1 = vcmp.lt.s32.totalorder %v7536_v60, 96 }
 0x5cc   : > { %v3221_v6 = vmul.f32 %v3217_v39, %v3129_v47  ;;  %v3249_v18 = vperm.slane %v3247_v13, 0  ;;  %v3278_v11 = vstv %s6654_s7 }
 0x5cd   : > { %v3222_v4 = vmul.f32 %v3218_v25, %v3130_v61  ;;  %v3990_v25 = vld [vmem:[%s7537_s12 + $0x20] sm:$0xff] }
 0x5d4   : > { %v6611_v15 = vpop.permute.xlu2 %3182 }
 0x5e8   : > { %v3201_v0 = vpop.permute.xlu2 %3200 }
 0x5ec   : > { %v6605_v51 = vpop.permute.xlu1 %3169 }
 0x5ed   : > { %v6613_v31 = vpop.permute.xlu0 %3167 }
 0x5ee   : > { %v3172_v36 = vsel %vm3171_vm14, %v6613_v31, %v6605_v51  ;;  %v3173_v22 = vsel %vm3171_vm14, %v6605_v51, %v6613_v31  ;;  %v3234_v51 = vperm.slane %v3231_v57, 1  ;;  %v3263_v31 = vld [vmem:[#allocation11 + $0x6] ss:$8 sm:$0x3] }
 0x5ef   : > { %v3180_v52 = vmul.f32 %v3176_v35, %v3173_v22  ;;  %v3181_v37 = vmul.f32 %v3177_v40, %v3172_v36  ;;  %v3265_v44 = vperm.slane %v3263_v31, 0  ;;  %v3266_v56 = vperm.slane %v3263_v31, 1  ;;  %v3989_v40 = vld [vmem:[%s7537_s12 + $0x8] sm:$0xff] }
 0x5f0   : > { %v3991_v22 = vld [vmem:[%s7537_s12 + $0x28] sm:$0xff] }
 0x5f4   : > { %v3199_v1 = vpop.permute.xlu1 %3198 }
 0x5f5   : > { %v3203_v14 = vsel %vm3202_vm12, %v3199_v1, %v3201_v0  ;;  %v3204_v20 = vsel %vm3202_vm12, %v3201_v0, %v3199_v1  ;;  %v3250_v1 = vperm.slane %v3247_v13, 1  ;;  %v3995_v13 = vld [vmem:[%s7537_s12 + $0x18] sm:$0xff] }
 0x5f6   : > { %v3212_v43 = vmul.f32 %v3208_v23, %v3204_v20  ;;  %v3213_v12 = vmul.f32 %v3209_v55, %v3203_v14 }
 0x5f8   : > { %v3274_v45 = vadd.f32 %v3221_v6, %v3212_v43  ;;  %v3275_v59 = vadd.f32 %v3222_v4, %v3213_v12  ;;  %v3992_v12 = vld [vmem:[%s7537_s12 + $0x1d0] sm:$0xff]  ;;  %v7543_v4 = vld [vmem:[#allocation35_spill] sm:$0xff] }
 0x5f9   : > { %v3994_v6 = vld [vmem:[%s7537_s12 + $0x10] sm:$0xff] }
 0x5fa   : > { %v6692_v57 = vmul.f32 %v3994_v6, %v7543_v4 }
 0x5fe   : > { %v3240_v24 = vpop.permute.xlu2 %3239 }
 0x605   : > { %v3185_v42 = vpop.permute.xlu0 %3184 }
 0x606   : > { %v3187_v28 = vsel %vm3186_vm13, %v6611_v15, %v3185_v42  ;;  %v3188_v16 = vsel %vm3186_vm13, %v3185_v42, %v6611_v15 }
 0x607   : > { %v3196_v63 = vmul.f32 %v3192_v26, %v3188_v16  ;;  %v3197_v15 = vmul.f32 %v3193_v3, %v3187_v28  ;;  %v3988_v16 = vld [vmem:[%s7537_s12] sm:$0xff] }
 0x609   : > { %v3272_v21 = vadd.f32 %v3196_v63, %v3180_v52  ;;  %v3273_v48 = vadd.f32 %v3197_v15, %v3181_v37  ;;  %v7540_v63 = vld [vmem:[#allocation40_spill] sm:$0xff]  ;;  %v3993_v52 = vld [vmem:[%s7537_s12 + $0x1d8] sm:$0xff] }
 0x60a   : > { %v6684_v15 = vmul.f32 %v3992_v12, %v7540_v63  ;;  %v6688_v37 = vmul.f32 %v3993_v52, %v7540_v63  ;;  %v4013_v63 = vld [vmem:[%s7537_s12 + $0x108] sm:$0xff] }
 0x60b   : > { %v3276_v33 = vadd.f32 %v3274_v45, %v3272_v21  ;;  %v3277_v0 = vadd.f32 %v3275_v59, %v3273_v48  ;;  %v6696_v45 = vmul.f32 %v3995_v13, %v7543_v4  ;;  %v3996_v59 = vld [vmem:[%s7537_s12 + $0x40] sm:$0xff]  ;;  %v7544_v21 = vld [vmem:[#allocation37_spill] sm:$0xff] }
 0x60c   : > { %7541 = vst [vmem:[#allocation56_spill] sm:$0xff] %v6684_v15  ;;  %v6700_v48 = vmul.f32 %v3996_v59, %v7544_v21  ;;  %v4014_v13 = vld [vmem:[%s7537_s12 + $0xe0] sm:$0xff] }
 0x60d   : > { %v3226_v32 = vpop.permute.xlu1 %3225  ;;  %v3279_v46 = vadd.f32 %v3278_v11, %v3276_v33  ;;  %v3280_v60 = vadd.f32 %v3278_v11, %v3277_v0  ;;  %7542 = vst [vmem:[#allocation49_spill] sm:$0xff] %v6688_v37  ;;  %v7546_v33 = vld [vmem:[#allocation30_spill] sm:$0xff] }
 0x60e   : > { %v7553_v59 = vld [vmem:[#allocation62_spill] sm:$0xff] }
 0x614   : > { %v3258_v8 = vpop.permute.xlu2 %3257 }
 0x61d   : > { %v3224_v19 = vpop.permute.xlu0 %3223 }
 0x61e   : > { %v3228_v58 = vsel %vm3227_vm15, %v3224_v19, %v3226_v32  ;;  %v3229_v38 = vsel %vm3227_vm15, %v3226_v32, %v3224_v19  ;;  %v7539_v19 = vld [vmem:[#allocation38_spill] sm:$0xff]  ;;  %vm3376_vm15 = vcmask 1040384  }
 0x61f   : > { %v3237_v7 = vmul.f32 %v3233_v29, %v3228_v58  ;;  %v3238_v41 = vmul.f32 %v3234_v51, %v3229_v38  ;;  %v6676_v36 = vmul.f32 %v3990_v25, %v7539_v19  ;;  %v6680_v43 = vmul.f32 %v3991_v22, %v7539_v19  ;;  %v3997_v51 = vld [vmem:[%s7537_s12 + $0x48] sm:$0xff]  ;;  %v4012_v25 = vld [vmem:[%s7537_s12 + $0x100] sm:$0xff]  ;;  %v7552_v19 = vld [vmem:[#allocation61_spill] sm:$0xff] }
 0x620   : > { %v6706_v31 = vmul.f32 %v3997_v51, %v7544_v21  ;;  %v3999_v58 = vld [vmem:[%s7537_s12 + $0x68] sm:$0xff]  ;;  %v6772_v22 = vmul.f32 %v4012_v25, %v7552_v19  ;;  %v6776_v52 = vmul.f32 %v4013_v63, %v7552_v19  ;;  %v6783_v21 = vmul.f32 %v4014_v13, %v7553_v59  ;;  %v7559_v63 = vld [vmem:[#allocation68_spill] sm:$0xff] }
 0x621   : > { %v4024_v13 = vld [vmem:[%s7537_s12 + $0x190] sm:$0xff] }
 0x625   : > { %v3256_v17 = vpop.permute.xlu1 %3255 }
 0x626   : > { %v3260_v34 = vsel %vm3259_vm0, %v3256_v17, %v3258_v8  ;;  %v3261_v42 = vsel %vm3259_vm0, %v3258_v8, %v3256_v17  ;;  %v3998_v17 = vld [vmem:[%s7537_s12 + $0x60] sm:$0xff]  ;;  %v4000_v8 = vld [vmem:[%s7537_s12 + $0x50] sm:$0xff] }
 0x627   : > { %v3269_v62 = vmul.f32 %v3265_v44, %v3260_v34  ;;  %v3270_v27 = vmul.f32 %v3266_v56, %v3261_v42  ;;  %v6718_v0 = vmul.f32 %v4000_v8, %v7546_v33  ;;  %v4001_v56 = vld [vmem:[%s7537_s12 + $0x58] sm:$0xff]  ;;  %v4002_v34 = vld [vmem:[%s7537_s12 + $0x80] sm:$0xff]  ;;  %v7547_v42 = vld [vmem:[#allocation44_spill] sm:$0xff] }
 0x632   : > { %v3242_v10 = vpop.permute.xlu0 %3241 }
 0x633   : > { %v3244_v9 = vsel %vm3243_vm1, %v3240_v24, %v3242_v10  ;;  %v3245_v53 = vsel %vm3243_vm1, %v3242_v10, %v3240_v24  ;;  %v7538_v24 = vld [vmem:[#allocation39_spill] sm:$0xff]  ;;  %v6724_v10 = vmul.f32 %v4001_v56, %v7546_v33  ;;  %v4016_v56 = vld [vmem:[%s7537_s12 + $0x140] sm:$0xff]  ;;  %vm3390_vm1 = vcmask 1046528  }
 0x634   : > { %v3253_v2 = vmul.f32 %v3249_v18, %v3244_v9  ;;  %v3254_v30 = vmul.f32 %v3250_v1, %v3245_v53  ;;  %v6668_v35 = vmul.f32 %v3988_v16, %v7538_v24  ;;  %v6672_v39 = vmul.f32 %v3989_v40, %v7538_v24  ;;  %v7545_v18 = vld [vmem:[#allocation34_spill] sm:$0xff]  ;;  %v4003_v53 = vld [vmem:[%s7537_s12 + $0x88] sm:$0xff] }
 0x635   : > { %v6710_v1 = vmul.f32 %v3998_v17, %v7545_v18  ;;  %v6714_v38 = vmul.f32 %v3999_v58, %v7545_v18  ;;  %v6728_v9 = vmul.f32 %v4002_v34, %v7547_v42  ;;  %v4011_v24 = vld [vmem:[%s7537_s12 + $0xc8] sm:$0xff] }
 0x636   : > { %v3281_v50 = vadd.f32 %v3253_v2, %v3237_v7  ;;  %v3282_v49 = vadd.f32 %v3254_v30, %v3238_v41  ;;  %v6732_v7 = vmul.f32 %v4003_v53, %v7547_v42  ;;  %v4004_v2 = vld [vmem:[%s7537_s12 + $0xa0] sm:$0xff]  ;;  %v4015_v18 = vld [vmem:[%s7537_s12 + $0xe8] sm:$0xff] }
 0x637   : > { %v7548_v30 = vld [vmem:[#allocation50_spill] sm:$0xff]  ;;  %v6790_v58 = vmul.f32 %v4015_v18, %v7553_v59  ;;  %v7554_v34 = vld [vmem:[#allocation63_spill] sm:$0xff] }
 0x638   : > { %v3283_v5 = vadd.f32 %v3281_v50, %v3269_v62  ;;  %v3284_v54 = vadd.f32 %v3282_v49, %v3270_v27  ;;  %v6738_v11 = vmul.f32 %v4004_v2, %v7548_v30  ;;  %v4005_v62 = vld [vmem:[%s7537_s12 + $0xa8] sm:$0xff]  ;;  %v4006_v50 = vld [vmem:[%s7537_s12 + $0x90] sm:$0xff]  ;;  %v7549_v49 = vld [vmem:[#allocation46_spill] sm:$0xff]  ;;  %v6797_v42 = vmul.f32 %v4016_v56, %v7554_v34 }
 0x639   : > { %v6742_v27 = vmul.f32 %v4005_v62, %v7548_v30  ;;  %v4017_v30 = vld [vmem:[%s7537_s12 + $0x148] sm:$0xff]  ;;  %v7560_v59 = vld [vmem:[#allocation70_spill] sm:$0xff] }
 0x63a   : > { %v3285_v47 = vadd.f32 %v3283_v5, %v3279_v46  ;;  %v3286_v61 = vadd.f32 %v3284_v54, %v3280_v60  ;;  %v6746_v46 = vmul.f32 %v4006_v50, %v7549_v49  ;;  %v4007_v5 = vld [vmem:[%s7537_s12 + $0x98] sm:$0xff]  ;;  %v6808_v62 = vmul.f32 %v4017_v30, %v7554_v34  ;;  %v4018_v50 = vld [vmem:[%s7537_s12 + $0x110] sm:$0xff] }
 0x63b   : > { %v6752_v54 = vmul.f32 %v4007_v5, %v7549_v49  ;;  %v7557_v49 = vld [vmem:[#allocation66_spill] sm:$0xff]  ;;  %v4019_v5 = vld [vmem:[%s7537_s12 + $0x118] sm:$0xff] }
 0x63c   : > { %v3287_v23 = vsub.f32 0.0, %v3285_v47  ;;  %v3288_v55 = vsub.f32 0.0, %v3286_v61  ;;  %v4008_v47 = vld [vmem:[%s7537_s12 + $0xd0] sm:$0xff]  ;;  %v7550_v61 = vld [vmem:[#allocation55_spill] sm:$0xff] }
 0x63e   : > { %v3289_v26 = vmul.f32 1.442695, %v3287_v23  ;;  %v3291_v3 = vmul.f32 1.442695, %v3288_v55  ;;  %v6756_v23 = vmul.f32 %v4008_v47, %v7550_v61  ;;  %v4009_v55 = vld [vmem:[%s7537_s12 + $0xd8] sm:$0xff]  ;;  %v6816_v47 = vmul.f32 %v4019_v5, %v7557_v49 }
 0x640   : > { %3964 = vpow2.f32 %v3289_v26  ;;  %v6760_v26 = vmul.f32 %v4009_v55, %v7550_v61  ;;  %v4020_v61 = vld [vmem:[%s7537_s12 + $0x120] sm:$0xff] }
 0x641   : > { %3966 = vpow2.f32 %v3291_v3 }
 0x646   : > { %v3965_v32 = vpop.eup %3964 }
 0x647   : > { %v3967_v14 = vpop.eup %3966  ;;  %v6660_v20 = vadd.f32 1.0, %v3965_v32  ;;  %v4010_v32 = vld [vmem:[%s7537_s12 + $0xc0] sm:$0xff] }
 0x648   : > { %v6662_v28 = vadd.f32 1.0, %v3967_v14  ;;  %v7551_v14 = vld [vmem:[#allocation59_spill] sm:$0xff] }
 0x649   : > { %3968 = vrcp.f32 %v6660_v20  ;;  %v6764_v16 = vmul.f32 %v4010_v32, %v7551_v14  ;;  %v6768_v40 = vmul.f32 %v4011_v24, %v7551_v14  ;;  %vm3300_vm10 = vweird.f32 %v6660_v20  ;;  %v4021_v14 = vld [vmem:[%s7537_s12 + $0x128] sm:$0xff] }
 0x64a   : > { %3970 = vrcp.f32 %v6662_v28  ;;  %v3321_v4 = vand.u32 2147483648, %v6662_v28  ;;  %v3319_v17 = vand.u32 2147483647, %v6662_v28  ;;  %v3306_v33 = vand.u32 2147483648, %v6660_v20 }
 0x64b   : > { %vm3315_vm12 = vweird.f32 %v6662_v28 }
 0x64c   : > { %vm3320_vm14 = vcmp.eq.f32.partialorder %v3319_v17, 8.507059e+37  ;;  %v3307_v25 = vor.u32 1.1754944e-38, %v3306_v33  ;;  %v4025_v17 = vld [vmem:[%s7537_s12 + $0x198] sm:$0xff] }
 0x64d   : > { %v6846_v18 = vmul.f32 %v4025_v17, %v7560_v59  ;;  %v7565_v17 = vld [vmem:[#allocation75_spill] sm:$0xff] }
 0x64f   : > { %v6702_v29 = vpop.eup %3968 }
 0x650   : > { %v6720_v44 = vpop.eup %3970  ;;  %v3296_v41 = vmul.f32 %v6702_v29, %v6660_v20  ;;  %vm3301_vm2 = vweird.f32 %v6702_v29 }
 0x651   : > { %v3311_v60 = vmul.f32 %v6720_v44, %v6662_v28  ;;  %vm3316_vm3 = vweird.f32 %v6720_v44  ;;  %vm6799_vm11 = vmor %vm3300_vm10, %vm3301_vm2  ;;  %v7558_v28 = vld [vmem:[#allocation67_spill] sm:$0xff] }
 0x652   : > { %v3297_v3 = vsub.f32 1.0, %v3296_v41  ;;  %v3304_v41 = vand.u32 2147483647, %v6660_v20  ;;  %vm3317_vm13 = vmor %vm3315_vm12, %vm3316_vm3  ;;  %v3322_v20 = vor.u32 1.1754944e-38, %v3321_v4  ;;  %v6822_v55 = vmul.f32 %v4020_v61, %v7558_v28  ;;  %v4023_v4 = vld [vmem:[%s7537_s12 + $0x158] sm:$0xff] }
 0x653   : > { %v3312_v12 = vsub.f32 1.0, %v3311_v60  ;;  %v6812_v60 = vmul.f32 %v4018_v50, %v7557_v49  ;;  %v6830_v24 = vmul.f32 %v4021_v14, %v7558_v28  ;;  %v4027_v50 = vld [vmem:[%s7537_s12 + $0x188] sm:$0xff]  ;;  %v4028_v14 = vld [vmem:[%s7537_s12 + $0x1c0] sm:$0xff] }
 0x654   : > { %v3298_v6 = vmul.f32 %v6702_v29, %v3297_v3  ;;  %vm3305_vm0 = vcmp.eq.f32.partialorder %v3304_v41, 8.507059e+37  ;;  %v4026_v41 = vld [vmem:[%s7537_s12 + $0x180] sm:$0xff] }
 0x655   : > { %v3313_v51 = vmul.f32 %v6720_v44, %v3312_v12  ;;  %v4022_v12 = vld [vmem:[%s7537_s12 + $0x150] sm:$0xff] }
 0x656   : > { %v3299_v8 = vadd.f32 %v6702_v29, %v3298_v6  ;;  %v6834_v6 = vmul.f32 %v4022_v12, %v7559_v63  ;;  %v4029_v12 = vld [vmem:[%s7537_s12 + $0x1c8] sm:$0xff] }
 0x657   : > { %v3314_v2 = vadd.f32 %v6720_v44, %v3313_v51  ;;  %v6842_v51 = vmul.f32 %v4024_v13, %v7560_v59  ;;  %v4030_v59 = vld [vmem:[%s7537_s12 + $0x160] sm:$0xff] }
 0x658   : > { %v3303_v3 = vsel %vm6799_vm11, %v6702_v29, %v3299_v8  ;;  %v6838_v29 = vmul.f32 %v4023_v4, %v7559_v63 }
 0x659   : > { %v3318_v32 = vsel %vm3317_vm13, %v6720_v44, %v3314_v2  ;;  %v3308_v8 = vsel %vm3305_vm0, %v3307_v25, %v3303_v3  ;;  %v7561_v2 = vld [vmem:[#allocation73_spill] sm:$0xff]  ;;  %v7562_v25 = vld [vmem:[#allocation74_spill] sm:$0xff] }
 0x65a   : > { %v3323_v19 = vsel %vm3320_vm14, %v3322_v20, %v3318_v32  ;;  %v6853_v30 = vmul.f32 %v4026_v41, %v7561_v2  ;;  %v6857_v49 = vmul.f32 %v4027_v50, %v7561_v2  ;;  %v6872_v63 = vmul.f32 %v4029_v12, %v7562_v25 }
 0x65b   : > { %v3375_v44 = vrot.slane %v3323_v19, 7  ;;  %v6868_v19 = vmul.f32 %v4028_v14, %v7562_v25  ;;  %v4033_v14 = vld [vmem:[%s7537_s12 + $0x1a8] sm:$0xff] }
 0x65c   : > { %7564 = vst [vmem:[#allocation48_spill] sm:$0xff] %v6872_v63 }
 0x65d   : > { %v3377_v33 = vsel %vm3376_vm15, %v3308_v8, %v3375_v44  ;;  %v3378_v56 = vsel %vm868_vm4, %v3308_v8, %v3375_v44  ;;  %v3380_v34 = vsel %vm870_vm5, %v3308_v8, %v3375_v44  ;;  %v3382_v53 = vsel %vm872_vm6, %v3308_v8, %v3375_v44  ;;  %7563 = vst [vmem:[#allocation65_spill] sm:$0xff] %v6868_v19 }
 0x65e   : > { %v3379_v5 = vrot.slane %v3378_v56, 1  ;;  %v3384_v20 = vsel %vm874_vm7, %v3308_v8, %v3375_v44  ;;  %v3381_v61 = vrot.slane %v3380_v34, 2  ;;  %v3386_v28 = vsel %vm876_vm8, %v3308_v8, %v3375_v44  ;;  %v4031_v34 = vld [vmem:[%s7537_s12 + $0x168] sm:$0xff] }
 0x65f   : > { %v6862_v3 = vsel %vm878_vm9, %v3308_v8, %v3375_v44  ;;  %v6864_v32 = vsel %vm3390_vm1, %v3375_v44, %v3308_v8  ;;  %v3383_v4 = vrot.slane %v3382_v53, 3  ;;  %v3393_v13 = vperm.slane %v3377_v33, 0  ;;  %v4032_v44 = vld [vmem:[%s7537_s12 + $0x1a0] sm:$0xff] }
 0x660   : > { %v6876_v56 = vmul.f32 %v4030_v59, %v7565_v17  ;;  %v6880_v41 = vmul.f32 %v4031_v34, %v7565_v17  ;;  %v7566_v8 = vld [vmem:[#allocation78_spill] sm:$0xff]  ;;  %v3394_v50 = vperm.slane %v3377_v33, 1  ;;  %v3385_v25 = vrot.slane %v3384_v20, 4 }
 0x661   : > { %v6884_v2 = vmul.f32 %v4032_v44, %v7566_v8  ;;  %v6888_v37 = vmul.f32 %v4033_v14, %v7566_v8  ;;  %v3387_v53 = vrot.slane %v3386_v28, 5  ;;  %v6890_v12 = vperm.slane %v3379_v5, 0 }
 0x662   : > { %v3389_v59 = vrot.slane %v6862_v3, 6  ;;  %v3392_v15 = vrot.slane %v6864_v32, 7  ;;  %v3396_v17 = vperm.slane %v3379_v5, 1  ;;  %v6894_v34 = vperm.slane %v3381_v61, 0 }
 0x663   : > { %v6896_v63 = vperm.slane %v3381_v61, 1  ;;  %v6898_v44 = vperm.slane %v3383_v4, 0  ;;  %v6900_v33 = vperm.slane %v3383_v4, 1  ;;  %v3425_v8 = vmul.f32 %v3393_v13, %v6668_v35 }
 0x664   : > { %v3426_v20 = vmul.f32 %v3394_v50, %v6672_v39  ;;  %v3427_v28 = vmul.f32 %v3393_v13, %v6692_v57  ;;  %v3428_v3 = vmul.f32 %v3394_v50, %v6696_v45  ;;  %v3429_v14 = vmul.f32 %v3393_v13, %v6676_v36  ;;  %v7569_v57 = vld [vmem:[#allocation33_spill] sm:$0xff] }
 0x665   : > { %v6907_v32 = vperm.slane %v3385_v25, 0  ;;  %v6909_v5 = vperm.slane %v3385_v25, 1  ;;  %v3430_v61 = vmul.f32 %v3394_v50, %v6680_v43  ;;  %v3433_v4 = vmul.f32 %v6890_v12, %v6700_v48  ;;  %3489 = vst [vmem:[%s6916_s23] sm:$0xff] %v3425_v8  ;;  %v7570_v48 = vld [vmem:[#allocation32_spill] sm:$0xff] }
 0x666   : > { %v3434_v35 = vmul.f32 %v3396_v17, %v6706_v31  ;;  %v3435_v39 = vmul.f32 %v6890_v12, %v6718_v0  ;;  %v3436_v36 = vmul.f32 %v3396_v17, %v6724_v10  ;;  %v3437_v43 = vmul.f32 %v6890_v12, %v6710_v1  ;;  %3490 = vst [vmem:[%s6916_s23 + $0x8] sm:$0xff] %v3426_v20 }
 0x667   : > { %v3431_v45 = vmul.f32 %v3393_v13, %v7569_v57  ;;  %v3432_v25 = vmul.f32 %v3394_v50, %v7570_v48  ;;  %v3438_v19 = vmul.f32 %v3396_v17, %v6714_v38  ;;  %v3441_v8 = vmul.f32 %v6894_v34, %v6728_v9  ;;  %3491 = vst [vmem:[%s6916_s23 + $0x10] sm:$0xff] %v3427_v28  ;;  %v7581_v57 = vld [vmem:[#allocation84_spill] sm:$0xff]  ;;  %v7583_v48 = vld [vmem:[#allocation90_spill] sm:$0xff] }
 0x668   : > { %v3442_v31 = vmul.f32 %v6896_v63, %v6732_v7  ;;  %v3443_v0 = vmul.f32 %v6894_v34, %v6746_v46  ;;  %v3444_v1 = vmul.f32 %v6896_v63, %v6752_v54  ;;  %v3445_v10 = vmul.f32 %v6894_v34, %v6738_v11  ;;  %3492 = vst [vmem:[%s6916_s23 + $0x18] sm:$0xff] %v3428_v3 }
 0x669   : > { %v6941_v38 = vperm.slane %v3387_v53, 0  ;;  %v6943_v13 = vperm.slane %v3387_v53, 1  ;;  %v3446_v9 = vmul.f32 %v6896_v63, %v6742_v27  ;;  %v3449_v7 = vmul.f32 %v6898_v44, %v6764_v16  ;;  %3493 = vst [vmem:[%s6916_s23 + $0x20] sm:$0xff] %v3429_v14  ;;  %v7575_v14 = vld [vmem:[#allocation56_spill] sm:$0xff] }
 0x66a   : > { %v3450_v46 = vmul.f32 %v6900_v33, %v6768_v40  ;;  %v3451_v11 = vmul.f32 %v6898_v44, %v6756_v23  ;;  %v3452_v54 = vmul.f32 %v6900_v33, %v6760_v26  ;;  %v3453_v50 = vmul.f32 %v6898_v44, %v6783_v21  ;;  %3494 = vst [vmem:[%s6916_s23 + $0x28] sm:$0xff] %v3430_v61  ;;  %v7576_v61 = vld [vmem:[#allocation49_spill] sm:$0xff] }
 0x66b   : > { %v6959_v27 = vperm.slane %v3389_v59, 0  ;;  %v6961_v53 = vperm.slane %v3389_v59, 1  ;;  %v3454_v16 = vmul.f32 %v6900_v33, %v6790_v58  ;;  %v3457_v40 = vmul.f32 %v6907_v32, %v6772_v22  ;;  %3495 = vst [vmem:[%s6916_s23 + $0x30] sm:$0xff] %v3431_v45  ;;  %v7582_v45 = vld [vmem:[#allocation87_spill] sm:$0xff] }
 0x66c   : > { %v3458_v23 = vmul.f32 %v6909_v5, %v6776_v52  ;;  %v3459_v26 = vmul.f32 %v6907_v32, %v6812_v60  ;;  %v3460_v21 = vmul.f32 %v6909_v5, %v6816_v47  ;;  %v3461_v59 = vmul.f32 %v6907_v32, %v6822_v55  ;;  %3496 = vst [vmem:[%s6916_s23 + $0x38] sm:$0xff] %v3432_v25  ;;  %v7585_v25 = vld [vmem:[#allocation91_spill] sm:$0xff] }
 0x66d   : > { %v6977_v58 = vperm.slane %v3392_v15, 0  ;;  %v6979_v20 = vperm.slane %v3392_v15, 1  ;;  %v3462_v22 = vmul.f32 %v6909_v5, %v6830_v24  ;;  %v3465_v52 = vmul.f32 %v6941_v38, %v6797_v42  ;;  %3497 = vst [vmem:[%s6916_s23 + $0x40] sm:$0xff] %v3433_v4  ;;  %v7571_v24 = vld [vmem:[#allocation42_spill] sm:$0xff]  ;;  %v7572_v42 = vld [vmem:[#allocation43_spill] sm:$0xff] }
 0x66e   : > { %v3466_v60 = vmul.f32 %v6943_v13, %v6808_v62  ;;  %v3467_v47 = vmul.f32 %v6941_v38, %v6834_v6  ;;  %v3468_v55 = vmul.f32 %v6943_v13, %v6838_v29  ;;  %v3469_v15 = vmul.f32 %v6941_v38, %v6876_v56  ;;  %3498 = vst [vmem:[%s6916_s23 + $0x48] sm:$0xff] %v3434_v35  ;;  %v7577_v4 = vld [vmem:[#allocation31_spill] sm:$0xff] }
 0x66f   : > { %v3439_v28 = vmul.f32 %v6890_v12, %v7571_v24  ;;  %v3440_v3 = vmul.f32 %v3396_v17, %v7572_v42  ;;  %v3470_v62 = vmul.f32 %v6943_v13, %v6880_v41  ;;  %v3473_v6 = vmul.f32 %v6959_v27, %v6853_v30  ;;  %3499 = vst [vmem:[%s6916_s23 + $0x50] sm:$0xff] %v3435_v39  ;;  %v7573_v17 = vld [vmem:[#allocation65_spill] sm:$0xff]  ;;  %v7578_v39 = vld [vmem:[#allocation36_spill] sm:$0xff] }
 0x670   : > { %v3474_v29 = vmul.f32 %v6961_v53, %v6857_v49  ;;  %v3475_v56 = vmul.f32 %v6959_v27, %v6842_v51  ;;  %v3476_v12 = vmul.f32 %v6961_v53, %v6846_v18  ;;  %v3477_v41 = vmul.f32 %v6959_v27, %v6884_v2  ;;  %3500 = vst [vmem:[%s6916_s23 + $0x58] sm:$0xff] %v3436_v36  ;;  %v7574_v51 = vld [vmem:[#allocation48_spill] sm:$0xff] }
 0x671   : > { %v3478_v30 = vmul.f32 %v6961_v53, %v6888_v37  ;;  %v7016_v49 = vmul.f32 %v6977_v58, %v7573_v17  ;;  %3501 = vst [vmem:[%s6916_s23 + $0x60] sm:$0xff] %v3437_v43  ;;  %v7021_v18 = vmul.f32 %v6979_v20, %v7574_v51  ;;  %v7025_v2 = vmul.f32 %v6977_v58, %v7575_v14  ;;  %v7580_v43 = vld [vmem:[#allocation47_spill] sm:$0xff] }
 0x672   : > { %v7029_v37 = vmul.f32 %v6979_v20, %v7576_v61  ;;  %3502 = vst [vmem:[%s6916_s23 + $0x68] sm:$0xff] %v3438_v19  ;;  %v3447_v35 = vmul.f32 %v6894_v34, %v7577_v4  ;;  %v3448_v36 = vmul.f32 %v6896_v63, %v7578_v39  ;;  %v7579_v19 = vld [vmem:[#allocation45_spill] sm:$0xff]  ;;  %v3456_v63 = vmul.f32 %v6900_v33, %v7580_v43 }
 0x673   : > { %3503 = vst [vmem:[%s6916_s23 + $0x70] sm:$0xff] %v3439_v28  ;;  %v3455_v34 = vmul.f32 %v6898_v44, %v7579_v19  ;;  %v3463_v44 = vmul.f32 %v6907_v32, %v7581_v57  ;;  %v3464_v33 = vmul.f32 %v6909_v5, %v7582_v45  ;;  %v3471_v32 = vmul.f32 %v6941_v38, %v7583_v48  ;;  %v7588_v38 = vld [vmem:[#allocation85_spill] sm:$0xff] }
 0x674   : > { %3504 = vst [vmem:[%s6916_s23 + $0x78] sm:$0xff] %v3440_v3  ;;  %v3472_v5 = vmul.f32 %v6943_v13, %v7585_v25 }
 0x675   : > { %3505 = vst [vmem:[%s6916_s23 + $0x80] sm:$0xff] %v3441_v8  ;;  %v7586_v8 = vld [vmem:[#allocation51_spill] sm:$0xff] }
 0x676   : > { %3506 = vst [vmem:[%s6916_s23 + $0x88] sm:$0xff] %v3442_v31  ;;  %v3479_v31 = vmul.f32 %v6959_v27, %v7586_v8  ;;  %v7592_v27 = vld [vmem:[#allocation93_spill] sm:$0xff] }
 0x677   : > { %3507 = vst [vmem:[%s6916_s23 + $0x90] sm:$0xff] %v3443_v0  ;;  %v7587_v0 = vld [vmem:[#allocation52_spill] sm:$0xff] }
 0x678   : > { %3508 = vst [vmem:[%s6916_s23 + $0x98] sm:$0xff] %v3444_v1  ;;  %v3480_v1 = vmul.f32 %v6961_v53, %v7587_v0  ;;  %v3488_v53 = vmul.f32 %v6979_v20, %v7592_v27 }
 0x679   : > { %3509 = vst [vmem:[%s6916_s23 + $0xa0] sm:$0xff] %v3445_v10  ;;  %v4034_v10 = vld [vmem:[%s7537_s12 + $0x1e0] sm:$0xff] }
 0x67a   : > { %3510 = vst [vmem:[%s6916_s23 + $0xa8] sm:$0xff] %v3446_v9  ;;  %v3371_v13 = vmul.f32 %v4034_v10, %v7588_v38  ;;  %v4035_v9 = vld [vmem:[%s7537_s12 + $0x1e8] sm:$0xff] }
 0x67b   : > { %3511 = vst [vmem:[%s6916_s23 + $0xb0] sm:$0xff] %v3447_v35 }
 0x67c   : > { %3512 = vst [vmem:[%s6916_s23 + $0xb8] sm:$0xff] %v3448_v36 }
 0x67d   : > { %3513 = vst [vmem:[%s6916_s23 + $0xc0] sm:$0xff] %v3449_v7  ;;  %v3372_v7 = vmul.f32 %v4035_v9, %v7588_v38 }
 0x67e   : > { %3514 = vst [vmem:[%s6916_s23 + $0xc8] sm:$0xff] %v3450_v46  ;;  %v3485_v46 = vmul.f32 %v6977_v58, %v3371_v13 }
 0x67f   : > { %3515 = vst [vmem:[%s6916_s23 + $0xd0] sm:$0xff] %v3451_v11  ;;  %v3486_v11 = vmul.f32 %v6979_v20, %v3372_v7 }
 0x680   : > { %3516 = vst [vmem:[%s6916_s23 + $0xd8] sm:$0xff] %v3452_v54  ;;  %v7590_v54 = vld [vmem:[#allocation92_spill] sm:$0xff] }
 0x681   : > { %3517 = vst [vmem:[%s6916_s23 + $0xe0] sm:$0xff] %v3453_v50  ;;  %v3487_v50 = vmul.f32 %v6977_v58, %v7590_v54 }
 0x682   : > { %3518 = vst [vmem:[%s6916_s23 + $0xe8] sm:$0xff] %v3454_v16 }
 0x683   : > { %3519 = vst [vmem:[%s6916_s23 + $0xf0] sm:$0xff] %v3455_v34 }
 0x684   : > { %3520 = vst [vmem:[%s6916_s23 + $0xf8] sm:$0xff] %v3456_v63 }
 0x685   : > { %3521 = vst [vmem:[%s6916_s23 + $0x100] sm:$0xff] %v3457_v40 }
 0x686   : > { %3522 = vst [vmem:[%s6916_s23 + $0x108] sm:$0xff] %v3458_v23 }
 0x687   : > { %3523 = vst [vmem:[%s6916_s23 + $0x110] sm:$0xff] %v3459_v26 }
 0x688   : > { %3524 = vst [vmem:[%s6916_s23 + $0x118] sm:$0xff] %v3460_v21 }
 0x689   : > { %3525 = vst [vmem:[%s6916_s23 + $0x120] sm:$0xff] %v3461_v59 }
 0x68a   : > { %3526 = vst [vmem:[%s6916_s23 + $0x128] sm:$0xff] %v3462_v22 }
 0x68b   : > { %3527 = vst [vmem:[%s6916_s23 + $0x130] sm:$0xff] %v3463_v44 }
 0x68c   : > { %3528 = vst [vmem:[%s6916_s23 + $0x138] sm:$0xff] %v3464_v33 }
 0x68d   : > { %3529 = vst [vmem:[%s6916_s23 + $0x140] sm:$0xff] %v3465_v52 }
 0x68e   : > { %3530 = vst [vmem:[%s6916_s23 + $0x148] sm:$0xff] %v3466_v60 }
 0x68f   : > { %3531 = vst [vmem:[%s6916_s23 + $0x150] sm:$0xff] %v3467_v47 }
 0x690   : > { %3532 = vst [vmem:[%s6916_s23 + $0x158] sm:$0xff] %v3468_v55 }
 0x691   : > { %3533 = vst [vmem:[%s6916_s23 + $0x160] sm:$0xff] %v3469_v15 }
 0x692   : > { %3534 = vst [vmem:[%s6916_s23 + $0x168] sm:$0xff] %v3470_v62 }
 0x693   : > { %3535 = vst [vmem:[%s6916_s23 + $0x170] sm:$0xff] %v3471_v32 }
 0x694   : > { %3536 = vst [vmem:[%s6916_s23 + $0x178] sm:$0xff] %v3472_v5 }
 0x695   : > { %3537 = vst [vmem:[%s6916_s23 + $0x180] sm:$0xff] %v3473_v6 }
 0x696   : > { %3538 = vst [vmem:[%s6916_s23 + $0x188] sm:$0xff] %v3474_v29 }
 0x697   : > { %3539 = vst [vmem:[%s6916_s23 + $0x190] sm:$0xff] %v3475_v56 }
 0x698   : > { %3540 = vst [vmem:[%s6916_s23 + $0x198] sm:$0xff] %v3476_v12 }
 0x699   : > { %3541 = vst [vmem:[%s6916_s23 + $0x1a0] sm:$0xff] %v3477_v41 }
 0x69a   : > { %3542 = vst [vmem:[%s6916_s23 + $0x1a8] sm:$0xff] %v3478_v30 }
 0x69b   : > { %3543 = vst [vmem:[%s6916_s23 + $0x1b0] sm:$0xff] %v3479_v31 }
 0x69c   : > { %3544 = vst [vmem:[%s6916_s23 + $0x1b8] sm:$0xff] %v3480_v1 }
 0x69d   : > { %3545 = vst [vmem:[%s6916_s23 + $0x1c0] sm:$0xff] %v7016_v49 }
 0x69e   : > { %3546 = vst [vmem:[%s6916_s23 + $0x1c8] sm:$0xff] %v7021_v18 }
 0x69f   : > { %3547 = vst [vmem:[%s6916_s23 + $0x1d0] sm:$0xff] %v7025_v2 }
 0x6a0   : > { %3548 = vst [vmem:[%s6916_s23 + $0x1d8] sm:$0xff] %v7029_v37 }
 0x6a1   : > { %3549 = vst [vmem:[%s6916_s23 + $0x1e0] sm:$0xff] %v3485_v46 }
 0x6a2   : > { %3550 = vst [vmem:[%s6916_s23 + $0x1e8] sm:$0xff] %v3486_v11 }
 0x6a3   : > { %3551 = vst [vmem:[%s6916_s23 + $0x1f0] sm:$0xff] %v3487_v50 }
 0x6a4   : > { %3552 = vst [vmem:[%s6916_s23 + $0x1f8] sm:$0xff] %v3488_v53 }
 0x6a5   : > { %4183 = shalt.err (!%p4180_p11)
}
 0x6a6   : > { %s4256_s29 = smov 256   ;;  %s7593_s19 = smov 16  }
 0x6a7   : > { %3830 = dma.vmem_to_hbm [thread:$0]  (%p4397_p5), %s3568_s26, 8192, %s3570_s18, %s3554_s22, %s4256_s29, %s4256_s29, %s7593_s19  }
 0x6a8 PF: > { %s7594_s30 = sld [smem:[#allocation19_spill]] }
 0x6a9   : > { %s7596_s0 = sld [smem:[#allocation22_spill]] }
 0x6ae   : > { %s3584_s1 = sand.u32 1, %s7594_s30  }
 0x6af   : > { %p7597_p12 = scmp.ge.s32.totalorder %s7596_s0, 2  ;;  %s3585_s3 = scalar_lea.sflag [#allocation5], %s3584_s1 }
 0x6b1   : > { %p3850_p13 = pnand %p7597_p12, %p4345_p6 }
 0x6b3   : > { %p3851_p0 = pneg %p3850_p13 }
 0x6b5   : > { %4217 = dma.done.wait (%p3851_p0), %s3585_s3, 8192  }
 0x6b6   : > { %4219 = vsyncadd (%p3851_p0), %s3585_s3, 4294959104  ;;  %s7598_s14 = sld [smem:[#allocation25_spill]] }
 0x6b7   : > { %s7599_s11 = sld [smem:[#allocation20_spill]] }
 0x6b8   : > { %s7600_s12 = sld [smem:[#allocation21_spill]] }
 0x6b9   : > { %s7601_s13 = sld [smem:[#allocation26_spill]] }
 0x6bc   : > { %p26_p3 = scmp.ge.s32.totalorder %s7598_s14, 4  }
 0x6be   :  { %28 = sbr.rel (!%p26_p3) target bundleno = 19 (0x13), region = 131 }
 0x6c3   :  { %3591 = vsyncpa [#allocation4], 1 }
 0x6c4   :  { %3593 = vsyncpa [#allocation4 + $0x1], 1 }
 0x6c5   :  { %3594 = vsyncpa [#allocation10], 1 }
 0x6c6   :  { %3595 = vsyncpa [#allocation5], 1 }
 0x6c7   :  { %3597 = vsyncpa [#allocation5 + $0x1], 1 }
 0x6c8   :  { %3598 = vsyncpa [#allocation6], 1 }
 0x6c9   :  { %3600 = vsyncpa [#allocation6 + $0x1], 1 }
 0x6ca   :  { %3601 = vsyncpa [#allocation7], 1 }
 0x6cb   :  { %3603 = vsyncpa [#allocation7 + $0x1], 1 }

</bundles_post_ra>
